<compile_context>
chip_gen: v7x
topology: tpu7x:2x2x1
jax: 0.10.0
libtpu: 0.0.40
codegen_flags: <defaults>
</compile_context>

<pallas_src>
import jax
import jax.numpy as jnp
from jax.experimental import pallas as pl
from jax.experimental.pallas import tpu as pltpu

_LANE = 128


# -----------------------------------------------------------------------------
# Small helpers
# -----------------------------------------------------------------------------
def _round_up(v, m):
    return ((v + m - 1) // m) * m


def _pad_axis_to(x, size, axis):
    pad = size - x.shape[axis]
    if pad == 0:
        return x
    widths = [(0, 0)] * x.ndim
    widths[axis] = (0, pad)
    return jnp.pad(x, widths)


def _pad_to_multiple(x, mult, axis):
    return _pad_axis_to(x, _round_up(x.shape[axis], mult), axis)


def _vmem_limit_bytes():
    """Generation-aware scoped-VMEM limit."""
    try:
        kind = jax.devices()[0].device_kind.lower()
    except Exception:  # pragma: no cover - defensive
        kind = ""
    if "v7" in kind:
        return 44 * 1024 * 1024          # v7x: 64 MiB physical, leave headroom
    if "v5" in kind or "v6" in kind:
        return 96 * 1024 * 1024          # v5e/v6e: 128 MiB physical
    return 40 * 1024 * 1024              # conservative default


def _select_tiles(n_p, f_x, f_out, budget, x_resident):
    """Largest node tile in {512,256,128} dividing n_p whose buffers fit budget."""
    for t in (512, 256, 128):
        if n_p % t != 0:
            continue
        a_bytes = 2 * t * t * 2                                   # A tile, 2 bufs
        x_bytes = 2 * (n_p if x_resident else t) * f_x * 2        # X (resident/panel)
        w_bytes = 2 * f_x * f_out * 2                             # W resident
        acc_bytes = t * f_x * 4                                   # f32 accumulator
        out_bytes = 2 * t * f_out * 4                             # out block, 2 bufs
        if a_bytes + x_bytes + w_bytes + acc_bytes + out_bytes <= budget:
            return t, t
    return 128, 128


# -----------------------------------------------------------------------------
# Path A: fully-fused multi-layer stack (single pallas_call, everything in VMEM)
# -----------------------------------------------------------------------------
def _make_stack_kernel(layer_specs):
    """layer_specs: tuple of (apply_act, agg_first) per GraphConv layer."""
    n_layers = len(layer_specs)

    def kernel(*refs):
        a_ref, h0_ref = refs[0], refs[1]
        w_refs = refs[2:2 + n_layers]
        b_refs = refs[2 + n_layers:2 + 2 * n_layers]
        o_ref = refs[2 + 2 * n_layers]

        a = a_ref[...]                      # (N, N) bf16, VMEM resident
        h = h0_ref[...]                     # (N, F0) bf16
        for li, (act, agg_first) in enumerate(layer_specs):
            w = w_refs[li][...]
            b = b_refs[li][...]
            if agg_first:                   # (A @ H) @ W  (narrow input side)
                ah = jnp.dot(a, h, preferred_element_type=jnp.float32)
                out = jnp.dot(ah.astype(jnp.bfloat16), w,
                              preferred_element_type=jnp.float32)
            else:                           # A @ (H @ W)  (narrow output side)
                hw = jnp.dot(h, w, preferred_element_type=jnp.float32)
                out = jnp.dot(a, hw.astype(jnp.bfloat16),
                              preferred_element_type=jnp.float32)
            out = out + b                   # (1, F) broadcasts over rows
            if act:
                out = jnp.maximum(out, 0.0)
            if li == n_layers - 1:
                o_ref[...] = out.astype(o_ref.dtype)
            else:
                h = out.astype(jnp.bfloat16)

    return kernel


def gcn_stack_fused(a_bf16, h0_bf16, ws, bs, layer_specs, out_features,
                    vmem_limit):
    n_p = a_bf16.shape[0]
    kernel = _make_stack_kernel(tuple(layer_specs))
    n_in = 2 + len(ws) + len(bs)
    return pl.pallas_call(
        kernel,
        out_shape=jax.ShapeDtypeStruct((n_p, out_features), jnp.float32),
        in_specs=[pl.BlockSpec(memory_space=pltpu.MemorySpace.VMEM)] * n_in,
        out_specs=pl.BlockSpec(memory_space=pltpu.MemorySpace.VMEM),
        compiler_params=pltpu.CompilerParams(vmem_limit_bytes=vmem_limit),
    )(a_bf16, h0_bf16, *ws, *bs)


def _fused_fits(n_p, dims, budget):
    """Rough VMEM estimate (x2 safety) for the fully-fused stack."""
    f_max = max(max(fi, fo) for fi, fo, _ in dims)
    total = n_p * n_p * 2                              # A (bf16)
    total += n_p * dims[0][0] * 2                      # H0 (bf16)
    total += sum(fi * fo * 2 + fo * 4 for fi, fo, _ in dims)   # W + b
    total += n_p * dims[-1][1] * 4                     # output (f32)
    total += 4 * n_p * f_max * 4                       # matmul intermediates
    return 2 * total <= budget


# -----------------------------------------------------------------------------
# Path B (large graphs): tiled aggregation with W / bias / ReLU fused into the
# finalize; optional fully VMEM-resident X.
# -----------------------------------------------------------------------------
def _make_agg_kernel(*, fuse_w, apply_act, x_resident, tk):
    def kernel(*refs):
        if fuse_w:
            a_ref, x_ref, w_ref, b_ref, o_ref, acc_ref = refs
        else:
            a_ref, x_ref, b_ref, o_ref, acc_ref = refs
            w_ref = None

        k = pl.program_id(1)

        @pl.when(k == 0)
        def _init():
            acc_ref[...] = jnp.zeros_like(acc_ref)

        if x_resident:
            off = pl.multiple_of(k * tk, tk)
            x_panel = x_ref[pl.ds(off, tk), :]
        else:
            x_panel = x_ref[...]

        # bf16 x bf16 -> f32 accumulate on the MXU.
        acc_ref[...] += jnp.dot(a_ref[...], x_panel,
                                preferred_element_type=jnp.float32)

        @pl.when(k == pl.num_programs(1) - 1)
        def _finalize():
            out = acc_ref[...]
            if fuse_w:
                out = jnp.dot(out.astype(jnp.bfloat16), w_ref[...],
                              preferred_element_type=jnp.float32)
            out = out + b_ref[...]
            if apply_act:
                out = jnp.maximum(out, 0.0)
            o_ref[...] = out.astype(o_ref.dtype)

    return kernel


def aggregate_fused(a_bf16, x_bf16, w_bf16, b_f32, *, apply_act, out_dtype,
                    budget, vmem_limit):
    """out = act(A @ X [@ W] + b), tiled over (rows, reduction)."""
    n_p = a_bf16.shape[0]
    f_x = x_bf16.shape[1]
    fuse_w = w_bf16 is not None
    f_out = w_bf16.shape[1] if fuse_w else f_x

    x_resident = (2 * n_p * f_x * 2) <= budget // 3
    tm, tk = _select_tiles(n_p, f_x, f_out, budget, x_resident)
    grid = (n_p // tm, n_p // tk)

    kernel = _make_agg_kernel(fuse_w=fuse_w, apply_act=apply_act,
                              x_resident=x_resident, tk=tk)

    in_specs = [pl.BlockSpec((tm, tk), lambda i, k: (i, k))]          # A tile
    args = [a_bf16]
    if x_resident:
        in_specs.append(pl.BlockSpec((n_p, f_x), lambda i, k: (0, 0)))  # X resident
    else:
        in_specs.append(pl.BlockSpec((tk, f_x), lambda i, k: (k, 0)))   # X panel
    args.append(x_bf16)
    if fuse_w:
        in_specs.append(pl.BlockSpec((f_x, f_out), lambda i, k: (0, 0)))  # W resident
        args.append(w_bf16)
    in_specs.append(pl.BlockSpec((1, f_out), lambda i, k: (0, 0)))        # bias
    args.append(b_f32.astype(jnp.float32))

    return pl.pallas_call(
        kernel,
        out_shape=jax.ShapeDtypeStruct((n_p, f_out), out_dtype),
        grid_spec=pltpu.PrefetchScalarGridSpec(
            num_scalar_prefetch=0,
            grid=grid,
            in_specs=in_specs,
            out_specs=pl.BlockSpec((tm, f_out), lambda i, k: (i, 0)),
            scratch_shapes=[pltpu.VMEM((tm, f_x), jnp.float32)],
        ),
        compiler_params=pltpu.CompilerParams(
            dimension_semantics=("parallel", "arbitrary"),
            vmem_limit_bytes=vmem_limit,
        ),
    )(*args)


def _transform_kernel(x_ref, w_ref, o_ref):
    o_ref[...] = jnp.dot(x_ref[...], w_ref[...],
                         preferred_element_type=jnp.float32).astype(o_ref.dtype)


def transform(x_bf16, w_bf16, *, budget, vmem_limit):
    """out = X @ W (no bias / act), row-tiled; used for the A @ (H @ W) path."""
    n_p, f_in = x_bf16.shape
    f_out = w_bf16.shape[1]
    tm = 128
    for t in (512, 256, 128):
        if n_p % t == 0 and (2 * t * f_in * 2 + 2 * f_in * f_out * 2
                             + 2 * t * f_out * 2) <= budget:
            tm = t
            break
    return pl.pallas_call(
        _transform_kernel,
        out_shape=jax.ShapeDtypeStruct((n_p, f_out), jnp.bfloat16),
        grid_spec=pltpu.PrefetchScalarGridSpec(
            num_scalar_prefetch=0,
            grid=(n_p // tm,),
            in_specs=[pl.BlockSpec((tm, f_in), lambda i: (i, 0)),
                      pl.BlockSpec((f_in, f_out), lambda i: (0, 0))],
            out_specs=pl.BlockSpec((tm, f_out), lambda i: (i, 0)),
        ),
        compiler_params=pltpu.CompilerParams(
            dimension_semantics=("parallel",),
            vmem_limit_bytes=vmem_limit,
        ),
    )(x_bf16, w_bf16)


# -----------------------------------------------------------------------------
# GCN forward (eval mode)
# -----------------------------------------------------------------------------
def gcn_forward(a_norm, features, params, n_classes, *, force_tiled=False):
    """params: list of (W_padded_bf16, b_padded_(1,F)_f32, apply_act, (fi, fo))."""
    n = features.shape[0]
    vmem_limit = _vmem_limit_bytes()
    budget = int(vmem_limit * 0.7)

    padded_dims = [(w.shape[0], w.shape[1], act) for (w, _, act, _) in params]
    f0_p = padded_dims[0][0]
    n_p128 = _round_up(n, _LANE)

    if (not force_tiled) and _fused_fits(n_p128, padded_dims, budget):
        # ---- Path A: whole stack in one pallas_call, A / H / W VMEM resident.
        a_p = _pad_axis_to(_pad_axis_to(a_norm, n_p128, 0), n_p128, 1)
        a_p = a_p.astype(jnp.bfloat16)
        h0 = _pad_axis_to(_pad_axis_to(features, n_p128, 0), f0_p, 1)
        h0 = h0.astype(jnp.bfloat16)
        layer_specs, ws, bs = [], [], []
        for (w, b, act, (fi_raw, fo_raw)) in params:
            layer_specs.append((act, fi_raw <= fo_raw))
            ws.append(w)
            bs.append(b.astype(jnp.float32))
        out = gcn_stack_fused(a_p, h0, ws, bs, layer_specs,
                              params[-1][0].shape[1], vmem_limit)
        return out[:n, :n_classes]

    # ---- Path B: per-layer tiled kernels (A streamed; W fused into finalize).
    n_p = _round_up(n, 512)
    a_p = _pad_axis_to(_pad_axis_to(a_norm, n_p, 0), n_p, 1).astype(jnp.bfloat16)
    h = _pad_axis_to(_pad_axis_to(features, n_p, 0), f0_p, 1).astype(jnp.bfloat16)

    n_total = len(params)
    for i, (w, b, act, (fi_raw, fo_raw)) in enumerate(params):
        # if i != 0: h = dropout(h)  -> identity in eval mode
        last = (i == n_total - 1)
        out_dtype = jnp.float32 if last else jnp.bfloat16
        if fi_raw <= fo_raw:
            # (A @ H) @ W : W / bias / ReLU fused into the aggregation finalize.
            h = aggregate_fused(a_p, h, w, b, apply_act=act,
                                out_dtype=out_dtype, budget=budget,
                                vmem_limit=vmem_limit)
        else:
            # A @ (H @ W) : one row-tiled transform, bias/ReLU in the finalize.
            hw = transform(h, w, budget=budget, vmem_limit=vmem_limit)
            h = aggregate_fused(a_p, hw, None, b, apply_act=act,
                                out_dtype=out_dtype, budget=budget,
                                vmem_limit=vmem_limit)
    return h[:n, :n_classes]


# -----------------------------------------------------------------------------
# Problem construction / reference
# -----------------------------------------------------------------------------
def build_normalized_adjacency(key, n):
    """Random undirected graph with self-loops, DGL norm='both' normalization."""
    a = (jax.random.uniform(key, (n, n)) < 0.2).astype(jnp.float32)
    a = jnp.maximum(a, a.T)
    a = jnp.maximum(a, jnp.eye(n, dtype=jnp.float32))
    deg_out = jnp.clip(a.sum(axis=0), 1.0)
    deg_in = jnp.clip(a.sum(axis=1), 1.0)
    return (1.0 / jnp.sqrt(deg_in))[:, None] * a * (1.0 / jnp.sqrt(deg_out))[None, :]


def init_params(key, in_feats, n_hidden, n_classes, n_layers):
    """Layer list matches GCN.__init__:
    [in->hidden (act), (n_layers-1) x hidden->hidden (act), hidden->classes]."""
    dims = [(in_feats, n_hidden, True)]
    for _ in range(n_layers - 1):
        dims.append((n_hidden, n_hidden, True))
    dims.append((n_hidden, n_classes, False))

    padded, raw = [], []
    for i, (fi, fo, act) in enumerate(dims):
        k = jax.random.fold_in(key, i)
        limit = jnp.sqrt(6.0 / (fi + fo))
        w = jax.random.uniform(k, (fi, fo), jnp.float32, -limit, limit)
        b = jnp.zeros((fo,), jnp.float32)
        raw.append((w, b, act))
        w_p = _pad_to_multiple(_pad_to_multiple(w, _LANE, 0), _LANE, 1)
        b_p = _pad_to_multiple(b.reshape(1, -1), _LANE, 1)
        padded.append((w_p.astype(jnp.bfloat16), b_p, act, (fi, fo)))
    return padded, raw


def gcn_reference(a_norm, features, raw_params):
    h = features
    for w, b, act in raw_params:
        h = a_norm @ (h @ w) + b
        if act:
            h = jnp.maximum(h, 0.0)
    return h


if __name__ == "__main__":
    key = jax.random.PRNGKey(0)
    k_graph, k_feat, k_param = jax.random.split(key, 3)

    in_feats, n_hidden, n_classes, n_layers = 16, 32, 8, 2  # -> 3 GraphConv layers

    params, raw_params = init_params(k_param, in_feats, n_hidden, n_classes,
                                     n_layers)

    # --- Small graph: exercises the fully-fused single-pallas_call path.
    n_small = 384
    a_norm = build_normalized_adjacency(k_graph, n_small)
    features = jax.random.normal(k_feat, (n_small, in_feats), jnp.float32)

    out = gcn_forward(a_norm, features, params, n_classes)
    out = jax.block_until_ready(out)
    assert out.shape == (n_small, n_classes)
    assert jnp.all(jnp.isfinite(out))
    ref = gcn_reference(a_norm, features, raw_params)
    rel = jnp.max(jnp.abs(out - ref)) / (jnp.max(jnp.abs(ref)) + 1e-6)
    assert rel < 0.1, f"fused-path relative max error too large: {rel}"

    # --- Larger graph: force the tiled/streamed per-layer path (A blocked in
    #     512 tiles, X VMEM-resident, W fused into the aggregation finalize).
    n_big = 1024
    k_graph2, k_feat2 = jax.random.split(jax.random.fold_in(key, 7))
    a_norm2 = build_normalized_adjacency(k_graph2, n_big)
    features2 = jax.random.normal(k_feat2, (n_big, in_feats), jnp.float32)

    out2 = gcn_forward(a_norm2, features2, params, n_classes, force_tiled=True)
    out2 = jax.block_until_ready(out2)
    assert out2.shape == (n_big, n_classes)
    assert jnp.all(jnp.isfinite(out2))
    ref2 = gcn_reference(a_norm2, features2, raw_params)
    rel2 = jnp.max(jnp.abs(out2 - ref2)) / (jnp.max(jnp.abs(ref2)) + 1e-6)
    assert rel2 < 0.1, f"tiled-path relative max error too large: {rel2}"

    print("KERNEL_OK")
</pallas_src>

<mosaic_0001>
module attributes {stable_mosaic.version = 11 : i64} {
  func.func @kernel(%arg0: memref<384x384xbf16, #tpu.memory_space<vmem>>, %arg1: memref<384x128xbf16, #tpu.memory_space<vmem>>, %arg2: memref<128x128xbf16, #tpu.memory_space<vmem>>, %arg3: memref<128x128xbf16, #tpu.memory_space<vmem>>, %arg4: memref<128x128xbf16, #tpu.memory_space<vmem>>, %arg5: memref<1x128xf32, #tpu.memory_space<vmem>>, %arg6: memref<1x128xf32, #tpu.memory_space<vmem>>, %arg7: memref<1x128xf32, #tpu.memory_space<vmem>>, %arg8: memref<384x128xf32, #tpu.memory_space<vmem>>) attributes {dimension_semantics = [], scalar_prefetch = 0 : i64, scratch_operands = 0 : i64, tpu.core_type = #tpu.core_type<tc>} {
    %c0 = arith.constant 0 : index
    %c0_0 = arith.constant 0 : index
    %0 = vector.load %arg0[%c0, %c0_0] : memref<384x384xbf16, #tpu.memory_space<vmem>>, vector<384x384xbf16>
    %c0_1 = arith.constant 0 : index
    %c0_2 = arith.constant 0 : index
    %1 = vector.load %arg1[%c0_1, %c0_2] : memref<384x128xbf16, #tpu.memory_space<vmem>>, vector<384x128xbf16>
    %c0_3 = arith.constant 0 : index
    %c0_4 = arith.constant 0 : index
    %2 = vector.load %arg2[%c0_3, %c0_4] : memref<128x128xbf16, #tpu.memory_space<vmem>>, vector<128x128xbf16>
    %c0_5 = arith.constant 0 : index
    %c0_6 = arith.constant 0 : index
    %3 = vector.load %arg5[%c0_5, %c0_6] : memref<1x128xf32, #tpu.memory_space<vmem>>, vector<1x128xf32>
    %cst = arith.constant dense<0.000000e+00> : vector<384x128xf32>
    %4 = tpu.matmul %0, %1, %cst {dimension_numbers = #tpu.dot_dimension_numbers<[1], [0], [0], [1], [0, 0, 1, 1], [], []>} : vector<384x384xbf16>, vector<384x128xbf16>, vector<384x128xf32> -> vector<384x128xf32>
    %5 = arith.truncf %4 : vector<384x128xf32> to vector<384x128xbf16>
    %cst_7 = arith.constant dense<0.000000e+00> : vector<384x128xf32>
    %6 = tpu.matmul %5, %2, %cst_7 {dimension_numbers = #tpu.dot_dimension_numbers<[1], [0], [0], [1], [0, 0, 1, 1], [], []>} : vector<384x128xbf16>, vector<128x128xbf16>, vector<384x128xf32> -> vector<384x128xf32>
    %7 = vector.broadcast %3 : vector<1x128xf32> to vector<384x128xf32>
    %8 = arith.addf %6, %7 : vector<384x128xf32>
    %cst_8 = arith.constant 0.000000e+00 : f32
    %9 = vector.broadcast %cst_8 : f32 to vector<384x128xf32>
    %10 = arith.maximumf %8, %9 : vector<384x128xf32>
    %11 = arith.truncf %10 : vector<384x128xf32> to vector<384x128xbf16>
    %c0_9 = arith.constant 0 : index
    %c0_10 = arith.constant 0 : index
    %12 = vector.load %arg3[%c0_9, %c0_10] : memref<128x128xbf16, #tpu.memory_space<vmem>>, vector<128x128xbf16>
    %c0_11 = arith.constant 0 : index
    %c0_12 = arith.constant 0 : index
    %13 = vector.load %arg6[%c0_11, %c0_12] : memref<1x128xf32, #tpu.memory_space<vmem>>, vector<1x128xf32>
    %cst_13 = arith.constant dense<0.000000e+00> : vector<384x128xf32>
    %14 = tpu.matmul %0, %11, %cst_13 {dimension_numbers = #tpu.dot_dimension_numbers<[1], [0], [0], [1], [0, 0, 1, 1], [], []>} : vector<384x384xbf16>, vector<384x128xbf16>, vector<384x128xf32> -> vector<384x128xf32>
    %15 = arith.truncf %14 : vector<384x128xf32> to vector<384x128xbf16>
    %cst_14 = arith.constant dense<0.000000e+00> : vector<384x128xf32>
    %16 = tpu.matmul %15, %12, %cst_14 {dimension_numbers = #tpu.dot_dimension_numbers<[1], [0], [0], [1], [0, 0, 1, 1], [], []>} : vector<384x128xbf16>, vector<128x128xbf16>, vector<384x128xf32> -> vector<384x128xf32>
    %17 = vector.broadcast %13 : vector<1x128xf32> to vector<384x128xf32>
    %18 = arith.addf %16, %17 : vector<384x128xf32>
    %cst_15 = arith.constant 0.000000e+00 : f32
    %19 = vector.broadcast %cst_15 : f32 to vector<384x128xf32>
    %20 = arith.maximumf %18, %19 : vector<384x128xf32>
    %21 = arith.truncf %20 : vector<384x128xf32> to vector<384x128xbf16>
    %c0_16 = arith.constant 0 : index
    %c0_17 = arith.constant 0 : index
    %22 = vector.load %arg4[%c0_16, %c0_17] : memref<128x128xbf16, #tpu.memory_space<vmem>>, vector<128x128xbf16>
    %c0_18 = arith.constant 0 : index
    %c0_19 = arith.constant 0 : index
    %23 = vector.load %arg7[%c0_18, %c0_19] : memref<1x128xf32, #tpu.memory_space<vmem>>, vector<1x128xf32>
    %cst_20 = arith.constant dense<0.000000e+00> : vector<384x128xf32>
    %24 = tpu.matmul %21, %22, %cst_20 {dimension_numbers = #tpu.dot_dimension_numbers<[1], [0], [0], [1], [0, 0, 1, 1], [], []>} : vector<384x128xbf16>, vector<128x128xbf16>, vector<384x128xf32> -> vector<384x128xf32>
    %25 = arith.truncf %24 : vector<384x128xf32> to vector<384x128xbf16>
    %cst_21 = arith.constant dense<0.000000e+00> : vector<384x128xf32>
    %26 = tpu.matmul %0, %25, %cst_21 {dimension_numbers = #tpu.dot_dimension_numbers<[1], [0], [0], [1], [0, 0, 1, 1], [], []>} : vector<384x384xbf16>, vector<384x128xbf16>, vector<384x128xf32> -> vector<384x128xf32>
    %27 = vector.broadcast %23 : vector<1x128xf32> to vector<384x128xf32>
    %28 = arith.addf %26, %27 : vector<384x128xf32>
    %c0_22 = arith.constant 0 : index
    %c0_23 = arith.constant 0 : index
    %29 = vector.load %arg8[%c0_22, %c0_23] : memref<384x128xf32, #tpu.memory_space<vmem>>, vector<384x128xf32>
    tpu.vector_store %arg8[%c0_22, %c0_23], %28 {strides = array<i32>} : memref<384x128xf32, #tpu.memory_space<vmem>>, vector<384x128xf32>,
    return
  }
}

</mosaic_0001>

<bundles_post_ra>
// kernel: tpu_custom_call.1
= control target key start
LH: loop header
LB: loop body
LE: loop exit
PB: predicated region body
PF: predicated region fallthrough
CT: control target
= control target key end

     0   :  { %13 = vsyncpa [#allocation3], 0  ;;  %s4949_s0 = inlined_call_operand.hbm [shape: bf16[384,384], index: 0, kind: input, shape index: {}]   ;;  %s4950_s1 = inlined_call_operand.hbm [shape: bf16[384,128], index: 1, kind: input, shape index: {}]   ;;  %s4951_s2 = inlined_call_operand.hbm [shape: bf16[128,128], index: 2, kind: input, shape index: {}]   ;;  %s4952_s3 = inlined_call_operand.hbm [shape: bf16[128,128], index: 3, kind: input, shape index: {}]   ;;  %s4953_s4 = inlined_call_operand.hbm [shape: bf16[128,128], index: 4, kind: input, shape index: {}]   ;;  %s4954_s5 = inlined_call_operand.vmem [shape: f32[1,128], index: 5, kind: input, shape index: {}]   ;;  %s4955_s6 = inlined_call_operand.vmem [shape: f32[1,128], index: 6, kind: input, shape index: {}]   ;;  %s4956_s7 = inlined_call_operand.vmem [shape: f32[1,128], index: 7, kind: input, shape index: {}]   ;;  %s4957_s8 = inlined_call_operand.hbm [shape: f32[384,128], index: 8, kind: output, shape index: {}]  }
   0x1   :  { %14 = vsyncpa [#allocation6], 0 }
   0x2   :  { %15 = vsyncpa [#allocation9], 0 }
   0x3   :  { %16 = vsyncpa [#allocation4], 0  ;;  %s4431_s27 = smov [#allocation5]   ;;  %s4291_s9 = scalar_lea.hbm %s4950_s1, 3072 }
   0x4   :  { %s34_s28 = sshll.u32 %s4431_s27, 4  ;;  %p4292_p0 = scmp.ne.s32.totalorder %s4950_s1, %s4291_s9  ;;  %s35_s28 = int_to_ptr.vmem [resolvable:$true] %s34_s28 }
   0x5   :  { %p4295_p1 = scmp.lt.u32.totalorder %s4291_s9, %s4950_s1 }
   0x7   :  { %p4297_p2 = pnand %p4295_p1, %p4292_p0 }
   0x9   :  { %4300 = shalt.err (!%p4297_p2)
}
   0xa   :  { %s4301_s14 = scalar_lea.vmem %s35_s28, 3072  ;;  %p4306_p4 = scmp.lt.s32.totalorder %s35_s28, %s35_s28 }
   0xb   :  { %p4302_p3 = scmp.ne.s32.totalorder %s35_s28, %s4301_s14  ;;  %p4307_p5 = scmp.lt.s32.totalorder %s4301_s14, %s4301_s14 }
   0xd   :  { %p4308_p6 = por %p4307_p5, %p4306_p4 }
   0xf   :  { %p4309_p7 = pnand %p4308_p6, %p4302_p3 }
  0x11   :  { %4312 = shalt.err (!%p4309_p7)
}
  0x12   :  { %s4432_s15 = smov 64   ;;  %s4433_s16 = smov 4  }
  0x13   :  { %40 = dma.hbm_to_vmem [thread:$0]  %s4950_s1, 3072, %s35_s28, [#allocation6], %s4432_s15, %s4432_s15, %s4433_s16  }
  0x14   :  { %s4434_s19 = smov [#allocation8]   ;;  %s4435_s21 = smov [#allocation2]  }
  0x15   :  { %s58_s20 = sshll.u32 %s4434_s19, 4  ;;  %s22_s22 = sshll.u32 %s4435_s21, 4  ;;  %s59_s20 = int_to_ptr.vmem [resolvable:$true] %s58_s20  ;;  %s23_s22 = int_to_ptr.vmem [resolvable:$true] %s22_s22 }
  0x16   :  { %s4313_s25 = scalar_lea.hbm %s4952_s3, 1024 }
  0x17   :  { %p4314_p8 = scmp.ne.s32.totalorder %s4952_s3, %s4313_s25  ;;  %p4317_p9 = scmp.lt.u32.totalorder %s4313_s25, %s4952_s3 }
  0x19   :  { %p4319_p10 = pnand %p4317_p9, %p4314_p8 }
  0x1b   :  { %4322 = shalt.err (!%p4319_p10)
}
  0x1c   :  { %s4323_s1 = scalar_lea.vmem %s59_s20, 1024  ;;  %p4328_p12 = scmp.lt.s32.totalorder %s59_s20, %s59_s20 }
  0x1d   :  { %p4324_p11 = scmp.ne.s32.totalorder %s59_s20, %s4323_s1  ;;  %p4329_p13 = scmp.lt.s32.totalorder %s4323_s1, %s4323_s1 }
  0x1f   :  { %p4330_p0 = por %p4329_p13, %p4328_p12 }
  0x21   :  { %p4331_p1 = pnand %p4330_p0, %p4324_p11 }
  0x23   :  { %4334 = shalt.err (!%p4331_p1)
}
  0x24   :  { %64 = dma.hbm_to_vmem [thread:$0]  %s4952_s3, 1024, %s59_s20, [#allocation9], %s4432_s15, %s4432_s15, %s4433_s16  }
  0x25   :  { %s4335_s12 = scalar_lea.hbm %s4949_s0, 9216 }
  0x26   :  { %p4336_p2 = scmp.ne.s32.totalorder %s4949_s0, %s4335_s12  ;;  %p4339_p3 = scmp.lt.u32.totalorder %s4335_s12, %s4949_s0 }
  0x28   :  { %p4341_p4 = pnand %p4339_p3, %p4336_p2 }
  0x2a   :  { %4344 = shalt.err (!%p4341_p4)
}
  0x2b   :  { %s4345_s19 = scalar_lea.vmem %s23_s22, 9216  ;;  %p4350_p6 = scmp.lt.s32.totalorder %s23_s22, %s23_s22 }
  0x2c   :  { %p4346_p5 = scmp.ne.s32.totalorder %s23_s22, %s4345_s19  ;;  %p4351_p7 = scmp.lt.s32.totalorder %s4345_s19, %s4345_s19 }
  0x2e   :  { %p4352_p8 = por %p4351_p7, %p4350_p6 }
  0x30   :  { %p4353_p9 = pnand %p4352_p8, %p4346_p5 }
  0x32   :  { %4356 = shalt.err (!%p4353_p9)
}
  0x33   :  { %s4436_s3 = smov 192   ;;  %s4437_s20 = smov 12  }
  0x34   :  { %28 = dma.hbm_to_vmem [thread:$0]  %s4949_s0, 9216, %s23_s22, [#allocation3], %s4436_s3, %s4436_s3, %s4437_s20  }
  0x35   :  { %s4438_s24 = smov [#allocation7]   ;;  %s4439_s26 = smov [#allocation10]  }
  0x36   :  { %s46_s25 = sshll.u32 %s4438_s24, 4  ;;  %s70_s27 = sshll.u32 %s4439_s26, 4  ;;  %s47_s25 = int_to_ptr.vmem [resolvable:$true] %s46_s25  ;;  %s71_s27 = int_to_ptr.vmem [resolvable:$true] %s70_s27 }
  0x37   :  { %s4357_s1 = scalar_lea.hbm %s4951_s2, 1024 }
  0x38   :  { %p4358_p10 = scmp.ne.s32.totalorder %s4951_s2, %s4357_s1  ;;  %p4361_p11 = scmp.lt.u32.totalorder %s4357_s1, %s4951_s2 }
  0x3a   :  { %p4363_p12 = pnand %p4361_p11, %p4358_p10 }
  0x3c   :  { %4366 = shalt.err (!%p4363_p12)
}
  0x3d   :  { %s4367_s0 = scalar_lea.vmem %s47_s25, 1024  ;;  %p4372_p0 = scmp.lt.s32.totalorder %s47_s25, %s47_s25 }
  0x3e   :  { %p4368_p13 = scmp.ne.s32.totalorder %s47_s25, %s4367_s0  ;;  %p4373_p1 = scmp.lt.s32.totalorder %s4367_s0, %s4367_s0 }
  0x40   :  { %p4374_p2 = por %p4373_p1, %p4372_p0 }
  0x42   :  { %p4375_p3 = pnand %p4374_p2, %p4368_p13 }
  0x44   :  { %4378 = shalt.err (!%p4375_p3)
}
  0x45   :  { %52 = dma.hbm_to_vmem [thread:$0]  %s4951_s2, 1024, %s47_s25, [#allocation6], %s4432_s15, %s4432_s15, %s4433_s16  }
  0x46   :  { %s4379_s17 = scalar_lea.hbm %s4953_s4, 1024 }
  0x47   :  { %p4380_p4 = scmp.ne.s32.totalorder %s4953_s4, %s4379_s17  ;;  %p4383_p5 = scmp.lt.u32.totalorder %s4379_s17, %s4953_s4 }
  0x49   :  { %p4385_p6 = pnand %p4383_p5, %p4380_p4 }
  0x4b   :  { %4388 = shalt.err (!%p4385_p6)
}
  0x4c   :  { %s4389_s21 = scalar_lea.vmem %s71_s27, 1024  ;;  %p4394_p8 = scmp.lt.s32.totalorder %s71_s27, %s71_s27 }
  0x4d   :  { %p4390_p7 = scmp.ne.s32.totalorder %s71_s27, %s4389_s21  ;;  %p4395_p9 = scmp.lt.s32.totalorder %s4389_s21, %s4389_s21 }
  0x4f   :  { %p4396_p10 = por %p4395_p9, %p4394_p8 }
  0x51   :  { %p4397_p11 = pnand %p4396_p10, %p4390_p7 }
  0x53   :  { %4400 = shalt.err (!%p4397_p11)
}
  0x54   :  { %76 = dma.hbm_to_vmem [thread:$0]  %s4953_s4, 1024, %s71_s27, [#allocation9], %s4432_s15, %s4432_s15, %s4433_s16  }
  0x55   :  { %4423 = dma.done.wait [#allocation3], 9216  }
  0x56   :  { %4424 = vsyncadd [#allocation3], 4294958080 }
  0x57   :  { %4425 = dma.done.wait [#allocation6], 4096  }
  0x58   :  { %4426 = vsyncadd [#allocation6], 4294963200 }
  0x59   :  { %4427 = dma.done.wait [#allocation9], 2048  }
  0x5a   :  { %4428 = vsyncadd [#allocation9], 4294965248  ;;  %v4440_v0 = vmov 0   ;;  %v4004_v1 = vld [vmem:[#allocation5] sm:$0xff]   ;;  %v4005_v2 = vld [vmem:[#allocation5 + $0x8] sm:$0xff]  }
  0x5b   :  { %788 = vmatprep.subr.bf16.mxu0 %v4440_v0  ;;  %v4006_v3 = vld [vmem:[#allocation5 + $0x10] sm:$0xff]   ;;  %v4012_v4 = vld [vmem:[#allocation5 + $0x80] sm:$0xff]   ;;  %v4007_v5 = vld [vmem:[#allocation5 + $0x18] sm:$0xff]  }
  0x5c   :  { %789 = vmatpush1.bf16.msra.mxu0 %v4004_v1  ;;  %3607 = vmatprep.subr.bf16.mxu1 %v4012_v4  ;;  %v4014_v6 = vld [vmem:[#allocation5 + $0x88] sm:$0xff]   ;;  %v4016_v7 = vld [vmem:[#allocation5 + $0x90] sm:$0xff]   ;;  %v4008_v8 = vld [vmem:[#allocation5 + $0x20] sm:$0xff]  }
  0x5d   :  { %790 = vmatprep.subr.bf16.mxu0 %v4440_v0  ;;  %3608 = vmatpush3.bf16.msra.mxu1 %v4012_v4  ;;  %v4018_v9 = vld [vmem:[#allocation5 + $0x98] sm:$0xff]   ;;  %v4009_v10 = vld [vmem:[#allocation5 + $0x28] sm:$0xff]   ;;  %v4020_v11 = vld [vmem:[#allocation5 + $0xa0] sm:$0xff]  }
  0x5e   :  { %3609 = vmatprep.subr.bf16.mxu1 %v4014_v6  ;;  %v4010_v12 = vld [vmem:[#allocation5 + $0x30] sm:$0xff]   ;;  %v4022_v13 = vld [vmem:[#allocation5 + $0xa8] sm:$0xff]   ;;  %v4011_v16 = vld [vmem:[#allocation5 + $0x38] sm:$0xff]  }
  0x5f   :  { %v4568_v14 = vld [vmem:[#allocation2 + $0x8] ss:$12 sps:$4 sm:$0xff]   ;;  %v4029_v15 = vld [vmem:[#allocation2 + $0x4] ss:$12 sps:$4 sm:$0xff]   ;;  %v4026_v19 = vld [vmem:[#allocation5 + $0xb8] sm:$0xff]  }
  0x60   :  { %791 = vmatpush1.bf16.msra.mxu0 %v4005_v2  ;;  %3623 = vmatprep.mubr.bf16.mxu1 %v4568_v14  ;;  %v4024_v17 = vld [vmem:[#allocation5 + $0xb0] sm:$0xff]   ;;  %v4013_v18 = vld [vmem:[#allocation5 + $0x40] sm:$0xff]   ;;  %v4015_v20 = vld [vmem:[#allocation5 + $0x48] sm:$0xff]  }
  0x61   :  { %792 = vmatprep.subr.bf16.mxu0 %v4440_v0  ;;  %3610 = vmatpush3.bf16.msra.mxu1 %v4014_v6  ;;  %v4017_v21 = vld [vmem:[#allocation5 + $0x50] sm:$0xff]   ;;  %v4031_v22 = vld [vmem:[#allocation2 + $0x20] ss:$12 sps:$4 sm:$0xff]   ;;  %v4036_v23 = vld [vmem:[#allocation2 + $0x38] ss:$12 sps:$4 sm:$0xff]  }
  0x62   :  { %3611 = vmatprep.subr.bf16.mxu1 %v4016_v7  ;;  %820 = vmatprep.mubr.bf16.mxu0 %v4029_v15  ;;  %v4019_v24 = vld [vmem:[#allocation5 + $0x58] sm:$0xff]   ;;  %v4021_v25 = vld [vmem:[#allocation5 + $0x60] sm:$0xff]   ;;  %v4044_v27 = vld [vmem:[#allocation2 + $0x68] ss:$12 sps:$4 sm:$0xff]  }
  0x63   :  { %v4039_v26 = vld [vmem:[#allocation2 + $0x50] ss:$12 sps:$4 sm:$0xff]   ;;  %v4023_v28 = vld [vmem:[#allocation5 + $0x68] sm:$0xff]   ;;  %v4052_v31 = vld [vmem:[#allocation2 + $0x98] ss:$12 sps:$4 sm:$0xff]  }
  0x64   :  { %793 = vmatpush1.bf16.msra.mxu0 %v4006_v3  ;;  %v4025_v29 = vld [vmem:[#allocation5 + $0x70] sm:$0xff]   ;;  %v4047_v30 = vld [vmem:[#allocation2 + $0x80] ss:$12 sps:$4 sm:$0xff]   ;;  %v4027_v32 = vld [vmem:[#allocation5 + $0x78] sm:$0xff]  }
  0x65   :  { %794 = vmatprep.subr.bf16.mxu0 %v4440_v0  ;;  %3612 = vmatpush3.bf16.msra.mxu1 %v4016_v7  ;;  %v4032_v33 = vld [vmem:[#allocation2] ss:$12 sps:$4 sm:$0xff]   ;;  %v4033_v34 = vld [vmem:[#allocation2 + $0x1c] ss:$12 sps:$4 sm:$0xff]   ;;  %v4035_v37 = vld [vmem:[#allocation2 + $0x18] ss:$12 sps:$4 sm:$0xff]  }
  0x66   :  { %3613 = vmatprep.subr.bf16.mxu1 %v4018_v9  ;;  %v4055_v35 = vld [vmem:[#allocation2 + $0xb0] ss:$12 sps:$4 sm:$0xff]   ;;  %v4060_v36 = vld [vmem:[#allocation2 + $0xc8] ss:$12 sps:$4 sm:$0xff]   ;;  %v4063_v39 = vld [vmem:[#allocation2 + $0xe0] ss:$12 sps:$4 sm:$0xff]  }
  0x67   :  { %v4037_v38 = vld [vmem:[#allocation2 + $0x34] ss:$12 sps:$4 sm:$0xff]   ;;  %v4068_v40 = vld [vmem:[#allocation2 + $0xf8] ss:$12 sps:$4 sm:$0xff]   ;;  %v4040_v41 = vld [vmem:[#allocation2 + $0x30] ss:$12 sps:$4 sm:$0xff]  }
  0x68   :  { %795 = vmatpush1.bf16.msra.mxu0 %v4007_v5  ;;  %v4041_v42 = vld [vmem:[#allocation2 + $0x4c] ss:$12 sps:$4 sm:$0xff]   ;;  %v4071_v43 = vld [vmem:[#allocation2 + $0x110] ss:$12 sps:$4 sm:$0xff]   ;;  %v4076_v44 = vld [vmem:[#allocation2 + $0x128] ss:$12 sps:$4 sm:$0xff]  }
  0x69   :  { %796 = vmatprep.subr.bf16.mxu0 %v4440_v0  ;;  %3614 = vmatpush3.bf16.msra.mxu1 %v4018_v9  ;;  %v4043_v45 = vld [vmem:[#allocation2 + $0x48] ss:$12 sps:$4 sm:$0xff]   ;;  %v4045_v46 = vld [vmem:[#allocation2 + $0x64] ss:$12 sps:$4 sm:$0xff]   ;;  %v4079_v47 = vld [vmem:[#allocation2 + $0x140] ss:$12 sps:$4 sm:$0xff]  }
  0x6a   :  { %3615 = vmatprep.subr.bf16.mxu1 %v4020_v11  ;;  %v4084_v48 = vld [vmem:[#allocation2 + $0x158] ss:$12 sps:$4 sm:$0xff]   ;;  %v4109_v50 = vld [vmem:[#allocation7 + $0x8] sm:$0xff]   ;;  %v4110_v52 = vld [vmem:[#allocation7 + $0x10] sm:$0xff]  }
  0x6b   :  { %v4108_v49 = vld [vmem:[#allocation7] sm:$0xff]   ;;  %v4049_v53 = vld [vmem:[#allocation2 + $0x7c] ss:$12 sps:$4 sm:$0xff]   ;;  %v4057_v62 = vld [vmem:[#allocation2 + $0xac] ss:$12 sps:$4 sm:$0xff]  }
  0x6c   :  { %797 = vmatpush1.bf16.msra.mxu0 %v4008_v8  ;;  %v4048_v51 = vld [vmem:[#allocation2 + $0x60] ss:$12 sps:$4 sm:$0xff]   ;;  %v4087_v54 = vld [vmem:[#allocation2 + $0x170] ss:$12 sps:$4 sm:$0xff]   ;;  %v4092_v55 = vld [vmem:[#allocation2 + $0x188] ss:$12 sps:$4 sm:$0xff]  }
  0x6d   :  { %798 = vmatprep.subr.bf16.mxu0 %v4440_v0  ;;  %3616 = vmatpush3.bf16.msra.mxu1 %v4020_v11  ;;  %v4111_v56 = vld [vmem:[#allocation7 + $0x18] sm:$0xff]   ;;  %v4053_v58 = vld [vmem:[#allocation2 + $0x94] ss:$12 sps:$4 sm:$0xff]   ;;  %v4061_v3 = vld [vmem:[#allocation2 + $0xc4] ss:$12 sps:$4 sm:$0xff]  }
  0x6e   :  { %3617 = vmatprep.subr.bf16.mxu1 %v4022_v13  ;;  %v4051_v57 = vld [vmem:[#allocation2 + $0x78] ss:$12 sps:$4 sm:$0xff]   ;;  %v4095_v59 = vld [vmem:[#allocation2 + $0x1a0] ss:$12 sps:$4 sm:$0xff]   ;;  %v4056_v61 = vld [vmem:[#allocation2 + $0x90] ss:$12 sps:$4 sm:$0xff]  }
  0x6f   :  { %v4103_v60 = vld [vmem:[#allocation2 + $0x1b8] ss:$12 sps:$4 sm:$0xff]   ;;  %v4104_v63 = vld [vmem:[#allocation2 + $0x1d0] ss:$12 sps:$4 sm:$0xff]   ;;  %v4112_v1 = vld [vmem:[#allocation2 + $0x1e8] ss:$12 sps:$4 sm:$0xff]  }
  0x70   :  { %799 = vmatpush1.bf16.msra.mxu0 %v4009_v10  ;;  %v4059_v2 = vld [vmem:[#allocation2 + $0xa8] ss:$12 sps:$4 sm:$0xff]   ;;  %v4113_v4 = vld [vmem:[#allocation2 + $0x200] ss:$12 sps:$4 sm:$0xff]   ;;  %v4119_v5 = vld [vmem:[#allocation2 + $0x218] ss:$12 sps:$4 sm:$0xff]  }
  0x71   :  { %800 = vmatprep.subr.bf16.mxu0 %v4440_v0  ;;  %3618 = vmatpush3.bf16.msra.mxu1 %v4022_v13  ;;  %v4064_v6 = vld [vmem:[#allocation2 + $0xc0] ss:$12 sps:$4 sm:$0xff]   ;;  %v4065_v8 = vld [vmem:[#allocation2 + $0xdc] ss:$12 sps:$4 sm:$0xff]   ;;  %v4067_v10 = vld [vmem:[#allocation2 + $0xd8] ss:$12 sps:$4 sm:$0xff]  }
  0x72   :  { %3619 = vmatprep.subr.bf16.mxu1 %v4024_v17  ;;  %v4114_v7 = vld [vmem:[#allocation7 + $0x20] sm:$0xff]   ;;  %v4120_v9 = vld [vmem:[#allocation2 + $0x230] ss:$12 sps:$4 sm:$0xff]   ;;  %v4073_v13 = vld [vmem:[#allocation2 + $0x10c] ss:$12 sps:$4 sm:$0xff]  }
  0x73   :  { %v4069_v11 = vld [vmem:[#allocation2 + $0xf4] ss:$12 sps:$4 sm:$0xff]  }
  0x74   :  { %801 = vmatpush1.bf16.msra.mxu0 %v4010_v12  ;;  %v4072_v12 = vld [vmem:[#allocation2 + $0xf0] ss:$12 sps:$4 sm:$0xff]   ;;  %v4075_v15 = vld [vmem:[#allocation2 + $0x108] ss:$12 sps:$4 sm:$0xff]  }
  0x75   :  { %802 = vmatprep.subr.bf16.mxu0 %v4440_v0  ;;  %3620 = vmatpush3.bf16.msra.mxu1 %v4024_v17  ;;  %v4077_v17 = vld [vmem:[#allocation2 + $0x124] ss:$12 sps:$4 sm:$0xff]  }
  0x76   :  { %3621 = vmatprep.subr.bf16.mxu1 %v4026_v19 }
  0x78   :  { %803 = vmatpush1.bf16.msra.mxu0 %v4011_v16  ;;  %v4118_v16 = vld [vmem:[#allocation7 + $0x28] sm:$0xff]  }
  0x79   :  { %804 = vmatprep.subr.bf16.mxu0 %v4440_v0  ;;  %3622 = vmatpush3.bf16.msra.mxu1 %v4026_v19  ;;  %v4080_v19 = vld [vmem:[#allocation2 + $0x120] ss:$12 sps:$4 sm:$0xff]  }
  0x7a   :  { %3671 = vmatprep.subr.bf16.mxu1 %v4108_v49 }
  0x7c   :  { %805 = vmatpush1.bf16.msra.mxu0 %v4013_v18  ;;  %3624 = vmatmul.mubr.bf16.vlgmr.msra.gmra.mrb[0].mxu1 %v4031_v22  ;;  %v4121_v18 = vld [vmem:[#allocation7 + $0x30] sm:$0xff]   ;;  %v4083_v22 = vld [vmem:[#allocation2 + $0x138] ss:$12 sps:$4 sm:$0xff]  }
  0x7d   :  { %806 = vmatprep.subr.bf16.mxu0 %v4440_v0  ;;  %3627 = vmatprep.mubr.bf16.mxu1 %v4036_v23  ;;  %v4085_v23 = vld [vmem:[#allocation2 + $0x154] ss:$12 sps:$4 sm:$0xff]  }
  0x7e   :  { %3672 = vmatpush3.bf16.msra.mxu1 %v4108_v49 }
  0x7f   :  { %3673 = vmatprep.subr.bf16.mxu1 %v4109_v50 }
  0x80   :  { %807 = vmatpush1.bf16.msra.mxu0 %v4015_v20  ;;  %v4125_v20 = vld [vmem:[#allocation7 + $0x38] sm:$0xff]  }
  0x81   :  { %808 = vmatprep.subr.bf16.mxu0 %v4440_v0 }
  0x82   :  { %3674 = vmatpush3.bf16.msra.mxu1 %v4109_v50 }
  0x83   :  { %3675 = vmatprep.subr.bf16.mxu1 %v4110_v52 }
  0x84   :  { %809 = vmatpush1.bf16.msra.mxu0 %v4017_v21  ;;  %3628 = vmatmul.mubr.bf16.gmra.mrb[4].mxu1 %v4039_v26  ;;  %v4081_v21 = vld [vmem:[#allocation2 + $0x13c] ss:$12 sps:$4 sm:$0xff]  }
  0x85   :  { %810 = vmatprep.subr.bf16.mxu0 %v4440_v0  ;;  %3631 = vmatprep.mubr.bf16.mxu1 %v4044_v27  ;;  %v4091_v26 = vld [vmem:[#allocation2 + $0x168] ss:$12 sps:$4 sm:$0xff]   ;;  %v4093_v27 = vld [vmem:[#allocation2 + $0x184] ss:$12 sps:$4 sm:$0xff]  }
  0x86   :  { %3676 = vmatpush3.bf16.msra.mxu1 %v4110_v52 }
  0x87   :  { %3677 = vmatprep.subr.bf16.mxu1 %v4111_v56 }
  0x88   :  { %811 = vmatpush1.bf16.msra.mxu0 %v4019_v24  ;;  %v4088_v24 = vld [vmem:[#allocation2 + $0x150] ss:$12 sps:$4 sm:$0xff]  }
  0x89   :  { %812 = vmatprep.subr.bf16.mxu0 %v4440_v0 }
  0x8a   :  { %3678 = vmatpush3.bf16.msra.mxu1 %v4111_v56 }
  0x8b   :  { %3679 = vmatprep.subr.bf16.mxu1 %v4114_v7 }
  0x8c   :  { %813 = vmatpush1.bf16.msra.mxu0 %v4021_v25  ;;  %3632 = vmatmul.mubr.bf16.gmra.mrb[8].mxu1 %v4047_v30  ;;  %v4089_v25 = vld [vmem:[#allocation2 + $0x16c] ss:$12 sps:$4 sm:$0xff]  }
  0x8d   :  { %814 = vmatprep.subr.bf16.mxu0 %v4440_v0  ;;  %3635 = vmatprep.mubr.bf16.mxu1 %v4052_v31  ;;  %v4099_v30 = vld [vmem:[#allocation2 + $0x198] ss:$12 sps:$4 sm:$0xff]   ;;  %v4100_v31 = vld [vmem:[#allocation2 + $0x1b4] ss:$12 sps:$4 sm:$0xff]  }
  0x8e   :  { %3680 = vmatpush3.bf16.msra.mxu1 %v4114_v7 }
  0x8f   :  { %3681 = vmatprep.subr.bf16.mxu1 %v4118_v16 }
  0x90   :  { %815 = vmatpush1.bf16.msra.mxu0 %v4023_v28  ;;  %v4096_v28 = vld [vmem:[#allocation2 + $0x180] ss:$12 sps:$4 sm:$0xff]  }
  0x91   :  { %816 = vmatprep.subr.bf16.mxu0 %v4440_v0 }
  0x92   :  { %3682 = vmatpush3.bf16.msra.mxu1 %v4118_v16 }
  0x93   :  { %3683 = vmatprep.subr.bf16.mxu1 %v4121_v18 }
  0x94   :  { %817 = vmatpush1.bf16.msra.mxu0 %v4025_v29  ;;  %3636 = vmatmul.mubr.bf16.gmra.mrb[12].mxu1 %v4055_v35  ;;  %v4097_v29 = vld [vmem:[#allocation2 + $0x19c] ss:$12 sps:$4 sm:$0xff]   ;;  %v4115_v35 = vld [vmem:[#allocation2 + $0x1e4] ss:$12 sps:$4 sm:$0xff]  }
  0x95   :  { %818 = vmatprep.subr.bf16.mxu0 %v4440_v0  ;;  %3639 = vmatprep.mubr.bf16.mxu1 %v4060_v36  ;;  %v4117_v36 = vld [vmem:[#allocation2 + $0x1e0] ss:$12 sps:$4 sm:$0xff]  }
  0x96   :  { %3684 = vmatpush3.bf16.msra.mxu1 %v4121_v18 }
  0x97   :  { %3685 = vmatprep.subr.bf16.mxu1 %v4125_v20 }
  0x98   :  { %819 = vmatpush1.bf16.msra.mxu0 %v4027_v32  ;;  %v4102_v32 = vld [vmem:[#allocation2 + $0x1b0] ss:$12 sps:$4 sm:$0xff]  }
  0x9a   :  { %3686 = vmatpush3.bf16.msra.mxu1 %v4125_v20 }
  0x9b   :  { %821 = vmatmul.mubr.bf16.vlgmr.msra.gmra.mrb[0].mxu0 %v4032_v33  ;;  %1630 = vmatprep.subr.bf16.mxu1 %v4440_v0  ;;  %v4105_v33 = vld [vmem:[#allocation2 + $0x1cc] ss:$12 sps:$4 sm:$0xff]  }
  0x9c   :  { %828 = vmatprep.mubr.bf16.mxu0 %v4033_v34  ;;  %3640 = vmatmul.mubr.bf16.gmra.mrb[16].mxu1 %v4063_v39  ;;  %v4107_v34 = vld [vmem:[#allocation2 + $0x1c8] ss:$12 sps:$4 sm:$0xff]  }
  0x9d   :  { %3643 = vmatprep.mubr.bf16.mxu1 %v4068_v40  ;;  %v4126_v39 = vld [vmem:[#allocation2 + $0x214] ss:$12 sps:$4 sm:$0xff]   ;;  %v4128_v40 = vld [vmem:[#allocation2 + $0x210] ss:$12 sps:$4 sm:$0xff]  }
  0xa3   :  { %829 = vmatmul.mubr.bf16.gmra.mrb[4].mxu0 %v4035_v37  ;;  %v4122_v37 = vld [vmem:[#allocation2 + $0x1fc] ss:$12 sps:$4 sm:$0xff]  }
  0xa4   :  { %836 = vmatprep.mubr.bf16.mxu0 %v4037_v38  ;;  %3644 = vmatmul.mubr.bf16.gmra.mrb[20].mxu1 %v4071_v43  ;;  %v4124_v38 = vld [vmem:[#allocation2 + $0x1f8] ss:$12 sps:$4 sm:$0xff]  }
  0xa5   :  { %3647 = vmatprep.mubr.bf16.mxu1 %v4076_v44 }
  0xab   :  { %837 = vmatmul.mubr.bf16.gmra.mrb[8].mxu0 %v4040_v41  ;;  %v4129_v41 = vld [vmem:[#allocation2 + $0x22c] ss:$12 sps:$4 sm:$0xff]  }
  0xac   :  { %844 = vmatprep.mubr.bf16.mxu0 %v4041_v42  ;;  %3648 = vmatmul.mubr.bf16.gmra.mrb[24].mxu1 %v4079_v47  ;;  %v4131_v42 = vld [vmem:[#allocation2 + $0x228] ss:$12 sps:$4 sm:$0xff]  }
  0xad   :  { %3651 = vmatprep.mubr.bf16.mxu1 %v4084_v48 }
  0xb3   :  { %845 = vmatmul.mubr.bf16.gmra.mrb[12].mxu0 %v4043_v45 }
  0xb4   :  { %852 = vmatprep.mubr.bf16.mxu0 %v4045_v46  ;;  %3652 = vmatmul.mubr.bf16.gmra.mrb[28].mxu1 %v4087_v54 }
  0xb5   :  { %3655 = vmatprep.mubr.bf16.mxu1 %v4092_v55 }
  0xbb   :  { %853 = vmatmul.mubr.bf16.gmra.mrb[16].mxu0 %v4048_v51 }
  0xbc   :  { %860 = vmatprep.mubr.bf16.mxu0 %v4049_v53  ;;  %3656 = vmatmul.mubr.bf16.gmra.mrb[32].mxu1 %v4095_v59 }
  0xbd   :  { %3659 = vmatprep.mubr.bf16.mxu1 %v4103_v60 }
  0xc3   :  { %861 = vmatmul.mubr.bf16.gmra.mrb[20].mxu0 %v4051_v57 }
  0xc4   :  { %868 = vmatprep.mubr.bf16.mxu0 %v4053_v58  ;;  %3660 = vmatmul.mubr.bf16.gmra.mrb[36].mxu1 %v4104_v63 }
  0xc5   :  { %3663 = vmatprep.mubr.bf16.mxu1 %v4112_v1 }
  0xcb   :  { %869 = vmatmul.mubr.bf16.gmra.mrb[24].mxu0 %v4056_v61 }
  0xcc   :  { %876 = vmatprep.mubr.bf16.mxu0 %v4057_v62  ;;  %3664 = vmatmul.mubr.bf16.gmra.mrb[40].mxu1 %v4113_v4 }
  0xcd   :  { %3667 = vmatprep.mubr.bf16.mxu1 %v4119_v5 }
  0xd3   :  { %877 = vmatmul.mubr.bf16.gmra.mrb[28].mxu0 %v4059_v2 }
  0xd4   :  { %884 = vmatprep.mubr.bf16.mxu0 %v4061_v3  ;;  %3668 = vmatmul.mubr.bf16.gmra.mrb[44].mxu1 %v4120_v9 }
  0xdb   :  { %885 = vmatmul.mubr.bf16.gmra.mrb[32].mxu0 %v4064_v6 }
  0xdc   :  { %892 = vmatprep.mubr.bf16.mxu0 %v4065_v8 }
  0xe3   :  { %893 = vmatmul.mubr.bf16.gmra.mrb[36].mxu0 %v4067_v10 }
  0xe4   :  { %900 = vmatprep.mubr.bf16.mxu0 %v4069_v11 }
  0xeb   :  { %901 = vmatmul.mubr.bf16.gmra.mrb[40].mxu0 %v4072_v12 }
  0xec   :  { %908 = vmatprep.mubr.bf16.mxu0 %v4073_v13 }
  0xf3   :  { %909 = vmatmul.mubr.bf16.gmra.mrb[44].mxu0 %v4075_v15 }
  0xf4   :  { %916 = vmatprep.mubr.bf16.mxu0 %v4077_v17 }
  0xfb   :  { %917 = vmatmul.mubr.bf16.gmra.mrb[48].mxu0 %v4080_v19 }
  0xfc   :  { %924 = vmatprep.mubr.bf16.mxu0 %v4081_v21 }
 0x103   :  { %925 = vmatmul.mubr.bf16.gmra.mrb[52].mxu0 %v4083_v22 }
 0x104   :  { %932 = vmatprep.mubr.bf16.mxu0 %v4085_v23 }
 0x10b   :  { %933 = vmatmul.mubr.bf16.gmra.mrb[56].mxu0 %v4088_v24 }
 0x10c   :  { %940 = vmatprep.mubr.bf16.mxu0 %v4089_v25 }
 0x113   :  { %941 = vmatmul.mubr.bf16.gmra.mrb[60].mxu0 %v4091_v26 }
 0x114   :  { %948 = vmatprep.mubr.bf16.mxu0 %v4093_v27 }
 0x11b   :  { %949 = vmatmul.mubr.bf16.gmra.mrb[64].mxu0 %v4096_v28 }
 0x11c   :  { %956 = vmatprep.mubr.bf16.mxu0 %v4097_v29 }
 0x123   :  { %957 = vmatmul.mubr.bf16.gmra.mrb[68].mxu0 %v4099_v30 }
 0x124   :  { %964 = vmatprep.mubr.bf16.mxu0 %v4100_v31 }
 0x12b   :  { %965 = vmatmul.mubr.bf16.gmra.mrb[72].mxu0 %v4102_v32 }
 0x12c   :  { %972 = vmatprep.mubr.bf16.mxu0 %v4105_v33 }
 0x133   :  { %973 = vmatmul.mubr.bf16.gmra.mrb[76].mxu0 %v4107_v34 }
 0x134   :  { %980 = vmatprep.mubr.bf16.mxu0 %v4115_v35 }
 0x13b   :  { %981 = vmatmul.mubr.bf16.gmra.mrb[80].mxu0 %v4117_v36 }
 0x13c   :  { %988 = vmatprep.mubr.bf16.mxu0 %v4122_v37 }
 0x143   :  { %989 = vmatmul.mubr.bf16.gmra.mrb[84].mxu0 %v4124_v38 }
 0x144   :  { %996 = vmatprep.mubr.bf16.mxu0 %v4126_v39 }
 0x14b   :  { %997 = vmatmul.mubr.bf16.gmra.mrb[88].mxu0 %v4128_v40 }
 0x14c   :  { %1004 = vmatprep.mubr.bf16.mxu0 %v4129_v41 }
 0x14f   :  { %v3625_v43 = vpop.f32.mrb[0].mxu1 }
 0x150   :  { %v1047_v44 = vpop.f32.mrb[1].mxu1 }
 0x151   :  { %v3626_v45 = vpop.f32.mrb[2].mxu1 }
 0x152   :  { %v1050_v46 = vpop.f32.mrb[3].mxu1 }
 0x153   :  { %1005 = vmatmul.mubr.bf16.gmra.mrb[92].mxu0 %v4131_v42 }
 0x154   :  { %3751 = vmatprep.mubr.bf16.mxu0 %v4568_v14 }
 0x157   :  { %v3629_v47 = vpop.f32.mrb[4].mxu1 }
 0x158   :  { %v1063_v48 = vpop.f32.mrb[5].mxu1 }
 0x159   :  { %v3630_v49 = vpop.f32.mrb[6].mxu1 }
 0x15a   :  { %v1066_v50 = vpop.f32.mrb[7].mxu1 }
 0x15f   :  { %v4582_v51 = vpop.f32.mrb[8].mxu1 }
 0x160   :  { %v1079_v52 = vpop.f32.mrb[9].mxu1 }
 0x161   :  { %v4584_v53 = vpop.f32.mrb[10].mxu1 }
 0x162   :  { %v1082_v54 = vpop.f32.mrb[11].mxu1 }
 0x167   :  { %v4586_v58 = vpop.f32.mrb[12].mxu1 }
 0x168   :  { %v4588_v59 = vpop.f32.mrb[13].mxu1 }
 0x169   :  { %v4590_v62 = vpop.f32.mrb[14].mxu1 }
 0x16a   :  { %v4592_v63 = vpop.f32.mrb[15].mxu1 }
 0x16e   :  { %v822_v55 = vpop.f32.mrb[0].mxu0 }
 0x16f   :  { %v1048_v56 = vadd.f32 %v1047_v44, %v822_v55  ;;  %v824_v57 = vpop.f32.mrb[1].mxu0  ;;  %v4594_v5 = vpop.f32.mrb[16].mxu1 }
 0x170   :  { %v825_v14 = vpop.f32.mrb[2].mxu0  ;;  %v4596_v7 = vpop.f32.mrb[17].mxu1 }
 0x171   :  { %v1051_v60 = vadd.f32 %v1050_v46, %v825_v14  ;;  %v827_v61 = vpop.f32.mrb[3].mxu0  ;;  %v4598_v10 = vpop.f32.mrb[18].mxu1 }
 0x172   :  { %v4600_v11 = vpop.f32.mrb[19].mxu1 }
 0x173   :  { %v1238_v1 = vpack.c.bf16 %v1051_v60, %v1048_v56 }
 0x175   :  { %3687 = vmatprep.mubr.bf16.mxu1 %v1238_v1 }
 0x176   :  { %v830_v2 = vpop.f32.mrb[4].mxu0 }
 0x177   :  { %v1056_v3 = vadd.f32 %v3625_v43, %v830_v2  ;;  %v832_v4 = vpop.f32.mrb[5].mxu0  ;;  %v4602_v17 = vpop.f32.mrb[20].mxu1 }
 0x178   :  { %v833_v6 = vpop.f32.mrb[6].mxu0  ;;  %v4604_v19 = vpop.f32.mrb[21].mxu1 }
 0x179   :  { %v1059_v8 = vadd.f32 %v3626_v45, %v833_v6  ;;  %v835_v9 = vpop.f32.mrb[7].mxu0  ;;  %v4606_v22 = vpop.f32.mrb[22].mxu1 }
 0x17a   :  { %v4608_v23 = vpop.f32.mrb[23].mxu1 }
 0x17b   :  { %v1239_v12 = vpack.c.bf16 %v1059_v8, %v1056_v3 }
 0x17d   :  { %3688 = vmatmul.mubr.bf16.vlgmr.msra.gmra.mrb[48].mxu1 %v1239_v12 }
 0x17e   :  { %v838_v13 = vpop.f32.mrb[8].mxu0 }
 0x17f   :  { %v1064_v15 = vadd.f32 %v1063_v48, %v838_v13  ;;  %v840_v16 = vpop.f32.mrb[9].mxu0  ;;  %v4610_v28 = vpop.f32.mrb[24].mxu1 }
 0x180   :  { %v841_v18 = vpop.f32.mrb[10].mxu0  ;;  %v4612_v30 = vpop.f32.mrb[25].mxu1 }
 0x181   :  { %v1067_v20 = vadd.f32 %v1066_v50, %v841_v18  ;;  %v843_v21 = vpop.f32.mrb[11].mxu0  ;;  %v4614_v33 = vpop.f32.mrb[26].mxu1 }
 0x182   :  { %v4616_v34 = vpop.f32.mrb[27].mxu1 }
 0x183   :  { %v1240_v24 = vpack.c.bf16 %v1067_v20, %v1064_v15 }
 0x185   :  { %3691 = vmatprep.mubr.bf16.mxu1 %v1240_v24 }
 0x186   :  { %v846_v25 = vpop.f32.mrb[12].mxu0 }
 0x187   :  { %v1072_v26 = vadd.f32 %v3629_v47, %v846_v25  ;;  %v848_v27 = vpop.f32.mrb[13].mxu0  ;;  %v4618_v39 = vpop.f32.mrb[28].mxu1 }
 0x188   :  { %v849_v29 = vpop.f32.mrb[14].mxu0  ;;  %v4620_v41 = vpop.f32.mrb[29].mxu1 }
 0x189   :  { %v1075_v31 = vadd.f32 %v3630_v49, %v849_v29  ;;  %v851_v32 = vpop.f32.mrb[15].mxu0  ;;  %v4622_v44 = vpop.f32.mrb[30].mxu1 }
 0x18a   :  { %v4624_v45 = vpop.f32.mrb[31].mxu1 }
 0x18b   :  { %v1241_v35 = vpack.c.bf16 %v1075_v31, %v1072_v26 }
 0x18d   :  { %3692 = vmatmul.mubr.bf16.gmra.mrb[52].mxu1 %v1241_v35 }
 0x18e   :  { %v854_v36 = vpop.f32.mrb[16].mxu0 }
 0x18f   :  { %v1080_v37 = vadd.f32 %v1079_v52, %v854_v36  ;;  %v856_v38 = vpop.f32.mrb[17].mxu0  ;;  %v4627_v50 = vpop.f32.mrb[32].mxu1 }
 0x190   :  { %v857_v40 = vpop.f32.mrb[18].mxu0  ;;  %v4629_v55 = vpop.f32.mrb[33].mxu1 }
 0x191   :  { %v1083_v42 = vadd.f32 %v1082_v54, %v857_v40  ;;  %v859_v43 = vpop.f32.mrb[19].mxu0  ;;  %v4632_v54 = vpop.f32.mrb[34].mxu1 }
 0x192   :  { %v4634_v14 = vpop.f32.mrb[35].mxu1 }
 0x193   :  { %v1242_v46 = vpack.c.bf16 %v1083_v42, %v1080_v37 }
 0x195   :  { %3695 = vmatprep.mubr.bf16.mxu1 %v1242_v46 }
 0x196   :  { %v862_v47 = vpop.f32.mrb[20].mxu0 }
 0x197   :  { %v1088_v48 = vadd.f32 %v4582_v51, %v862_v47  ;;  %v864_v49 = vpop.f32.mrb[21].mxu0  ;;  %v4637_v51 = vpop.f32.mrb[36].mxu1 }
 0x198   :  { %v865_v52 = vpop.f32.mrb[22].mxu0  ;;  %v4639_v4 = vpop.f32.mrb[37].mxu1 }
 0x199   :  { %v1091_v56 = vadd.f32 %v4584_v53, %v865_v52  ;;  %v867_v57 = vpop.f32.mrb[23].mxu0  ;;  %v4642_v53 = vpop.f32.mrb[38].mxu1 }
 0x19a   :  { %v4644_v9 = vpop.f32.mrb[39].mxu1 }
 0x19b   :  { %v1243_v60 = vpack.c.bf16 %v1091_v56, %v1088_v48 }
 0x19d   :  { %3696 = vmatmul.mubr.bf16.gmra.mrb[56].mxu1 %v1243_v60 }
 0x19e   :  { %v870_v61 = vpop.f32.mrb[24].mxu0 }
 0x19f   :  { %v1096_v1 = vadd.f32 %v4588_v59, %v870_v61  ;;  %v872_v2 = vpop.f32.mrb[25].mxu0  ;;  %v4647_v59 = vpop.f32.mrb[40].mxu1 }
 0x1a0   :  { %v873_v3 = vpop.f32.mrb[26].mxu0  ;;  %v4649_v20 = vpop.f32.mrb[41].mxu1 }
 0x1a1   :  { %v1099_v6 = vadd.f32 %v4592_v63, %v873_v3  ;;  %v875_v8 = vpop.f32.mrb[27].mxu0  ;;  %v4652_v63 = vpop.f32.mrb[42].mxu1 }
 0x1a2   :  { %v4654_v25 = vpop.f32.mrb[43].mxu1 }
 0x1a3   :  { %v1244_v12 = vpack.c.bf16 %v1099_v6, %v1096_v1 }
 0x1a5   :  { %3699 = vmatprep.mubr.bf16.mxu1 %v1244_v12 }
 0x1a6   :  { %v878_v13 = vpop.f32.mrb[28].mxu0 }
 0x1a7   :  { %v1104_v15 = vadd.f32 %v4586_v58, %v878_v13  ;;  %v880_v16 = vpop.f32.mrb[29].mxu0  ;;  %v4657_v58 = vpop.f32.mrb[44].mxu1 }
 0x1a8   :  { %v881_v18 = vpop.f32.mrb[30].mxu0  ;;  %v4659_v35 = vpop.f32.mrb[45].mxu1 }
 0x1a9   :  { %v1107_v21 = vadd.f32 %v4590_v62, %v881_v18  ;;  %v883_v24 = vpop.f32.mrb[31].mxu0  ;;  %v4662_v62 = vpop.f32.mrb[46].mxu1 }
 0x1aa   :  { %v4664_v38 = vpop.f32.mrb[47].mxu1 }
 0x1ab   :  { %v1245_v26 = vpack.c.bf16 %v1107_v21, %v1104_v15 }
 0x1ad   :  { %3700 = vmatmul.mubr.bf16.gmra.mrb[60].mxu1 %v1245_v26 }
 0x1ae   :  { %v886_v27 = vpop.f32.mrb[32].mxu0 }
 0x1af   :  { %v1112_v29 = vadd.f32 %v4596_v7, %v886_v27  ;;  %v888_v31 = vpop.f32.mrb[33].mxu0 }
 0x1b0   :  { %v889_v32 = vpop.f32.mrb[34].mxu0 }
 0x1b1   :  { %v1115_v36 = vadd.f32 %v4600_v11, %v889_v32  ;;  %v891_v37 = vpop.f32.mrb[35].mxu0 }
 0x1b3   :  { %v1246_v40 = vpack.c.bf16 %v1115_v36, %v1112_v29 }
 0x1b5   :  { %3703 = vmatprep.mubr.bf16.mxu1 %v1246_v40 }
 0x1b6   :  { %v894_v42 = vpop.f32.mrb[36].mxu0 }
 0x1b7   :  { %v1120_v43 = vadd.f32 %v4594_v5, %v894_v42  ;;  %v896_v46 = vpop.f32.mrb[37].mxu0 }
 0x1b8   :  { %v897_v7 = vpop.f32.mrb[38].mxu0 }
 0x1b9   :  { %v1123_v47 = vadd.f32 %v4598_v10, %v897_v7  ;;  %v899_v48 = vpop.f32.mrb[39].mxu0 }
 0x1bb   :  { %v1247_v49 = vpack.c.bf16 %v1123_v47, %v1120_v43 }
 0x1bd   :  { %3704 = vmatmul.mubr.bf16.gmra.mrb[64].mxu1 %v1247_v49 }
 0x1be   :  { %v902_v52 = vpop.f32.mrb[40].mxu0 }
 0x1bf   :  { %v1128_v11 = vadd.f32 %v4604_v19, %v902_v52  ;;  %v904_v56 = vpop.f32.mrb[41].mxu0 }
 0x1c0   :  { %v905_v57 = vpop.f32.mrb[42].mxu0 }
 0x1c1   :  { %v1131_v60 = vadd.f32 %v4608_v23, %v905_v57  ;;  %v907_v61 = vpop.f32.mrb[43].mxu0 }
 0x1c3   :  { %v1248_v1 = vpack.c.bf16 %v1131_v60, %v1128_v11 }
 0x1c5   :  { %3707 = vmatprep.mubr.bf16.mxu1 %v1248_v1 }
 0x1c6   :  { %v910_v2 = vpop.f32.mrb[44].mxu0 }
 0x1c7   :  { %v1136_v5 = vadd.f32 %v4602_v17, %v910_v2  ;;  %v912_v3 = vpop.f32.mrb[45].mxu0 }
 0x1c8   :  { %v913_v6 = vpop.f32.mrb[46].mxu0 }
 0x1c9   :  { %v1139_v10 = vadd.f32 %v4606_v22, %v913_v6  ;;  %v915_v8 = vpop.f32.mrb[47].mxu0 }
 0x1cb   :  { %v1249_v12 = vpack.c.bf16 %v1139_v10, %v1136_v5 }
 0x1cd   :  { %3708 = vmatmul.mubr.bf16.gmra.mrb[68].mxu1 %v1249_v12 }
 0x1ce   :  { %v918_v13 = vpop.f32.mrb[48].mxu0 }
 0x1cf   :  { %v1144_v19 = vadd.f32 %v4612_v30, %v918_v13  ;;  %v920_v15 = vpop.f32.mrb[49].mxu0 }
 0x1d0   :  { %v921_v16 = vpop.f32.mrb[50].mxu0 }
 0x1d1   :  { %v1147_v23 = vadd.f32 %v4616_v34, %v921_v16  ;;  %v923_v18 = vpop.f32.mrb[51].mxu0 }
 0x1d3   :  { %v1250_v21 = vpack.c.bf16 %v1147_v23, %v1144_v19 }
 0x1d5   :  { %3711 = vmatprep.mubr.bf16.mxu1 %v1250_v21 }
 0x1d6   :  { %v926_v24 = vpop.f32.mrb[52].mxu0 }
 0x1d7   :  { %v1152_v17 = vadd.f32 %v4610_v28, %v926_v24  ;;  %v928_v26 = vpop.f32.mrb[53].mxu0 }
 0x1d8   :  { %v929_v27 = vpop.f32.mrb[54].mxu0 }
 0x1d9   :  { %v1155_v22 = vadd.f32 %v4614_v33, %v929_v27  ;;  %v931_v29 = vpop.f32.mrb[55].mxu0 }
 0x1db   :  { %v1251_v31 = vpack.c.bf16 %v1155_v22, %v1152_v17 }
 0x1dd   :  { %3712 = vmatmul.mubr.bf16.gmra.mrb[72].mxu1 %v1251_v31 }
 0x1de   :  { %v934_v32 = vpop.f32.mrb[56].mxu0 }
 0x1df   :  { %v1160_v30 = vadd.f32 %v4620_v41, %v934_v32  ;;  %v936_v36 = vpop.f32.mrb[57].mxu0 }
 0x1e0   :  { %v937_v37 = vpop.f32.mrb[58].mxu0 }
 0x1e1   :  { %v1163_v34 = vadd.f32 %v4624_v45, %v937_v37  ;;  %v939_v40 = vpop.f32.mrb[59].mxu0 }
 0x1e3   :  { %v1252_v42 = vpack.c.bf16 %v1163_v34, %v1160_v30 }
 0x1e5   :  { %3715 = vmatprep.mubr.bf16.mxu1 %v1252_v42 }
 0x1e6   :  { %v942_v43 = vpop.f32.mrb[60].mxu0 }
 0x1e7   :  { %v1168_v28 = vadd.f32 %v4618_v39, %v942_v43  ;;  %v944_v46 = vpop.f32.mrb[61].mxu0 }
 0x1e8   :  { %v945_v7 = vpop.f32.mrb[62].mxu0 }
 0x1e9   :  { %v1171_v33 = vadd.f32 %v4622_v44, %v945_v7  ;;  %v947_v47 = vpop.f32.mrb[63].mxu0 }
 0x1eb   :  { %v1253_v48 = vpack.c.bf16 %v1171_v33, %v1168_v28  ;;  %v4148_v33 = vld [vmem:[#allocation2 + $0x4] ss:$12 sps:$4 sm:$0xff]  }
 0x1ed   :  { %3716 = vmatmul.mubr.bf16.gmra.mrb[76].mxu1 %v1253_v48 }
 0x1ee   :  { %v950_v49 = vpop.f32.mrb[64].mxu0 }
 0x1ef   :  { %v1176_v41 = vadd.f32 %v4629_v55, %v950_v49  ;;  %v952_v52 = vpop.f32.mrb[65].mxu0 }
 0x1f0   :  { %v953_v11 = vpop.f32.mrb[66].mxu0 }
 0x1f1   :  { %v1179_v45 = vadd.f32 %v4634_v14, %v953_v11  ;;  %v955_v56 = vpop.f32.mrb[67].mxu0 }
 0x1f3   :  { %v1254_v57 = vpack.c.bf16 %v1179_v45, %v1176_v41 }
 0x1f5   :  { %3719 = vmatprep.mubr.bf16.mxu1 %v1254_v57 }
 0x1f6   :  { %v958_v60 = vpop.f32.mrb[68].mxu0 }
 0x1f7   :  { %v1184_v39 = vadd.f32 %v4627_v50, %v958_v60  ;;  %v960_v61 = vpop.f32.mrb[69].mxu0 }
 0x1f8   :  { %v961_v1 = vpop.f32.mrb[70].mxu0 }
 0x1f9   :  { %v1187_v44 = vadd.f32 %v4632_v54, %v961_v1  ;;  %v963_v2 = vpop.f32.mrb[71].mxu0 }
 0x1fb   :  { %v1255_v5 = vpack.c.bf16 %v1187_v44, %v1184_v39 }
 0x1fd   :  { %3720 = vmatmul.mubr.bf16.gmra.mrb[80].mxu1 %v1255_v5 }
 0x1fe   :  { %v966_v3 = vpop.f32.mrb[72].mxu0 }
 0x1ff   :  { %v968_v6 = vpop.f32.mrb[73].mxu0  ;;  %v1192_v55 = vadd.f32 %v4639_v4, %v966_v3 }
 0x200   :  { %v969_v10 = vpop.f32.mrb[74].mxu0 }
 0x201   :  { %v971_v8 = vpop.f32.mrb[75].mxu0  ;;  %v1195_v14 = vadd.f32 %v4644_v9, %v969_v10 }
 0x203   :  { %v1256_v12 = vpack.c.bf16 %v1195_v14, %v1192_v55 }
 0x205   :  { %3723 = vmatprep.mubr.bf16.mxu1 %v1256_v12 }
 0x206   :  { %v974_v13 = vpop.f32.mrb[76].mxu0 }
 0x207   :  { %v1200_v50 = vadd.f32 %v4637_v51, %v974_v13  ;;  %v976_v19 = vpop.f32.mrb[77].mxu0 }
 0x208   :  { %v977_v15 = vpop.f32.mrb[78].mxu0 }
 0x209   :  { %v1203_v54 = vadd.f32 %v4642_v53, %v977_v15  ;;  %v979_v16 = vpop.f32.mrb[79].mxu0 }
 0x20b   :  { %v1257_v23 = vpack.c.bf16 %v1203_v54, %v1200_v50 }
 0x20d   :  { %3724 = vmatmul.mubr.bf16.gmra.mrb[84].mxu1 %v1257_v23 }
 0x20e   :  { %v982_v18 = vpop.f32.mrb[80].mxu0 }
 0x20f   :  { %v984_v21 = vpop.f32.mrb[81].mxu0  ;;  %v1208_v4 = vadd.f32 %v4649_v20, %v982_v18 }
 0x210   :  { %v985_v24 = vpop.f32.mrb[82].mxu0 }
 0x211   :  { %v987_v17 = vpop.f32.mrb[83].mxu0  ;;  %v1211_v9 = vadd.f32 %v4654_v25, %v985_v24 }
 0x213   :  { %v1258_v26 = vpack.c.bf16 %v1211_v9, %v1208_v4 }
 0x215   :  { %3727 = vmatprep.mubr.bf16.mxu1 %v1258_v26 }
 0x216   :  { %v990_v27 = vpop.f32.mrb[84].mxu0 }
 0x217   :  { %v1216_v51 = vadd.f32 %v4647_v59, %v990_v27  ;;  %v992_v22 = vpop.f32.mrb[85].mxu0 }
 0x218   :  { %v993_v29 = vpop.f32.mrb[86].mxu0 }
 0x219   :  { %v1219_v53 = vadd.f32 %v4652_v63, %v993_v29  ;;  %v995_v31 = vpop.f32.mrb[87].mxu0 }
 0x21b   :  { %v1259_v32 = vpack.c.bf16 %v1219_v53, %v1216_v51 }
 0x21d   :  { %3728 = vmatmul.mubr.bf16.gmra.mrb[88].mxu1 %v1259_v32 }
 0x21e   :  { %v998_v30 = vpop.f32.mrb[88].mxu0 }
 0x21f   :  { %v1224_v36 = vadd.f32 %v4659_v35, %v998_v30  ;;  %v1000_v20 = vpop.f32.mrb[89].mxu0  ;;  %v4699_v35 = vld [vmem:[%s4954_s5] ss:$0 sm:$0xff] }
 0x220   :  { %v1001_v37 = vpop.f32.mrb[90].mxu0 }
 0x221   :  { %v1227_v34 = vadd.f32 %v4664_v38, %v1001_v37  ;;  %v1003_v25 = vpop.f32.mrb[91].mxu0 }
 0x223   :  { %v1260_v40 = vpack.c.bf16 %v1227_v34, %v1224_v36 }
 0x225   :  { %3731 = vmatprep.mubr.bf16.mxu1 %v1260_v40 }
 0x226   :  { %v1006_v42 = vpop.f32.mrb[92].mxu0 }
 0x227   :  { %v1232_v59 = vadd.f32 %v4657_v58, %v1006_v42  ;;  %v1008_v43 = vpop.f32.mrb[93].mxu0 }
 0x228   :  { %v1009_v28 = vpop.f32.mrb[94].mxu0 }
 0x229   :  { %v1235_v63 = vadd.f32 %v4662_v62, %v1009_v28  ;;  %v1011_v46 = vpop.f32.mrb[95].mxu0 }
 0x22b   :  { %v1261_v7 = vpack.c.bf16 %v1235_v63, %v1232_v59 }
 0x22d   :  { %3732 = vmatmul.mubr.bf16.gmra.mrb[92].mxu1 %v1261_v7 }
 0x22e   :  { %1662 = vmatprep.mubr.bf16.mxu1 %v4148_v33 }
 0x250   :  { %v3689_v38 = vpop.f32.mrb[48].mxu1 }
 0x251   :  { %v1359_v47 = vadd.f32 %v3689_v38, %v4699_v35  ;;  %v1350_v48 = vpop.f32.mrb[49].mxu1 }
 0x252   :  { %v1351_v58 = vadd.f32 %v4699_v35, %v1350_v48  ;;  %v3690_v49 = vpop.f32.mrb[50].mxu1 }
 0x253   :  { %v1362_v41 = vadd.f32 %v3690_v49, %v4699_v35  ;;  %v1353_v62 = vpop.f32.mrb[51].mxu1  ;;  %v1543_v11 = vmax.f32 %v1359_v47, 0.0 }
 0x254   :  { %v1354_v52 = vadd.f32 %v4699_v35, %v1353_v62  ;;  %v1541_v56 = vmax.f32 %v1351_v58, 0.0 }
 0x255   :  { %v1544_v45 = vmax.f32 %v1362_v41, 0.0 }
 0x256   :  { %v1542_v57 = vmax.f32 %v1354_v52, 0.0 }
 0x257   :  { %v1590_v60 = vpack.c.bf16 %v1544_v45, %v1543_v11 }
 0x258   :  { %v1589_v39 = vpack.c.bf16 %v1542_v57, %v1541_v56 }
 0x25a   :  { %1631 = vmatpush1.bf16.msra.mxu1 %v1589_v39 }
 0x25b   :  { %1632 = vmatprep.subr.bf16.mxu1 %v4440_v0 }
 0x25e   :  { %1633 = vmatpush1.bf16.msra.mxu1 %v1590_v60 }
 0x25f   :  { %1634 = vmatprep.subr.bf16.mxu1 %v4440_v0 }
 0x260   :  { %v3693_v61 = vpop.f32.mrb[52].mxu1 }
 0x261   :  { %v1375_v1 = vadd.f32 %v3693_v61, %v4699_v35  ;;  %v1366_v44 = vpop.f32.mrb[53].mxu1 }
 0x262   :  { %v1367_v2 = vadd.f32 %v4699_v35, %v1366_v44  ;;  %v3694_v5 = vpop.f32.mrb[54].mxu1 }
 0x263   :  { %v1378_v3 = vadd.f32 %v3694_v5, %v4699_v35  ;;  %v1369_v6 = vpop.f32.mrb[55].mxu1  ;;  %v1547_v10 = vmax.f32 %v1375_v1, 0.0 }
 0x264   :  { %v1370_v55 = vadd.f32 %v4699_v35, %v1369_v6  ;;  %v1545_v14 = vmax.f32 %v1367_v2, 0.0 }
 0x265   :  { %v1548_v8 = vmax.f32 %v1378_v3, 0.0 }
 0x266   :  { %v1546_v12 = vmax.f32 %v1370_v55, 0.0 }
 0x267   :  { %v1592_v13 = vpack.c.bf16 %v1548_v8, %v1547_v10 }
 0x268   :  { %v1591_v50 = vpack.c.bf16 %v1546_v12, %v1545_v14 }
 0x26a   :  { %1635 = vmatpush1.bf16.msra.mxu1 %v1591_v50 }
 0x26b   :  { %1636 = vmatprep.subr.bf16.mxu1 %v4440_v0 }
 0x26e   :  { %1637 = vmatpush1.bf16.msra.mxu1 %v1592_v13 }
 0x26f   :  { %1638 = vmatprep.subr.bf16.mxu1 %v4440_v0 }
 0x270   :  { %v3697_v19 = vpop.f32.mrb[56].mxu1 }
 0x271   :  { %v1391_v15 = vadd.f32 %v3697_v19, %v4699_v35  ;;  %v1382_v54 = vpop.f32.mrb[57].mxu1 }
 0x272   :  { %v1383_v16 = vadd.f32 %v4699_v35, %v1382_v54  ;;  %v3698_v23 = vpop.f32.mrb[58].mxu1 }
 0x273   :  { %v1394_v18 = vadd.f32 %v3698_v23, %v4699_v35  ;;  %v1385_v21 = vpop.f32.mrb[59].mxu1  ;;  %v1551_v24 = vmax.f32 %v1391_v15, 0.0 }
 0x274   :  { %v1386_v4 = vadd.f32 %v4699_v35, %v1385_v21  ;;  %v1549_v9 = vmax.f32 %v1383_v16, 0.0 }
 0x275   :  { %v1552_v17 = vmax.f32 %v1394_v18, 0.0 }
 0x276   :  { %v1550_v26 = vmax.f32 %v1386_v4, 0.0 }
 0x277   :  { %v1594_v27 = vpack.c.bf16 %v1552_v17, %v1551_v24 }
 0x278   :  { %v1593_v51 = vpack.c.bf16 %v1550_v26, %v1549_v9 }
 0x27a   :  { %1639 = vmatpush1.bf16.msra.mxu1 %v1593_v51 }
 0x27b   :  { %1640 = vmatprep.subr.bf16.mxu1 %v4440_v0 }
 0x27e   :  { %1641 = vmatpush1.bf16.msra.mxu1 %v1594_v27 }
 0x27f   :  { %1642 = vmatprep.subr.bf16.mxu1 %v4440_v0 }
 0x280   :  { %v3701_v22 = vpop.f32.mrb[60].mxu1 }
 0x281   :  { %v1407_v29 = vadd.f32 %v3701_v22, %v4699_v35  ;;  %v1398_v53 = vpop.f32.mrb[61].mxu1 }
 0x282   :  { %v1399_v31 = vadd.f32 %v4699_v35, %v1398_v53  ;;  %v3702_v32 = vpop.f32.mrb[62].mxu1 }
 0x283   :  { %v1410_v30 = vadd.f32 %v3702_v32, %v4699_v35  ;;  %v1401_v36 = vpop.f32.mrb[63].mxu1  ;;  %v1555_v37 = vmax.f32 %v1407_v29, 0.0 }
 0x284   :  { %v1402_v20 = vadd.f32 %v4699_v35, %v1401_v36  ;;  %v1553_v25 = vmax.f32 %v1399_v31, 0.0 }
 0x285   :  { %v1556_v34 = vmax.f32 %v1410_v30, 0.0 }
 0x286   :  { %v1554_v40 = vmax.f32 %v1402_v20, 0.0 }
 0x287   :  { %v1596_v42 = vpack.c.bf16 %v1556_v34, %v1555_v37 }
 0x288   :  { %v1595_v59 = vpack.c.bf16 %v1554_v40, %v1553_v25  ;;  %v4149_v40 = vld [vmem:[#allocation2] ss:$12 sps:$4 sm:$0xff]  }
 0x28a   :  { %1643 = vmatpush1.bf16.msra.mxu1 %v1595_v59 }
 0x28b   :  { %1644 = vmatprep.subr.bf16.mxu1 %v4440_v0 }
 0x28e   :  { %1645 = vmatpush1.bf16.msra.mxu1 %v1596_v42 }
 0x28f   :  { %1646 = vmatprep.subr.bf16.mxu1 %v4440_v0 }
 0x290   :  { %v3705_v43 = vpop.f32.mrb[64].mxu1 }
 0x291   :  { %v1423_v28 = vadd.f32 %v3705_v43, %v4699_v35  ;;  %v1414_v63 = vpop.f32.mrb[65].mxu1  ;;  %v4150_v43 = vld [vmem:[#allocation2 + $0x1c] ss:$12 sps:$4 sm:$0xff]  }
 0x292   :  { %v1415_v46 = vadd.f32 %v4699_v35, %v1414_v63  ;;  %v3706_v7 = vpop.f32.mrb[66].mxu1 }
 0x293   :  { %v1426_v33 = vadd.f32 %v3706_v7, %v4699_v35  ;;  %v1417_v38 = vpop.f32.mrb[67].mxu1  ;;  %v1559_v48 = vmax.f32 %v1423_v28, 0.0 }
 0x294   :  { %v1418_v47 = vadd.f32 %v4699_v35, %v1417_v38  ;;  %v1557_v49 = vmax.f32 %v1415_v46, 0.0 }
 0x295   :  { %v1560_v58 = vmax.f32 %v1426_v33, 0.0 }
 0x296   :  { %v1558_v41 = vmax.f32 %v1418_v47, 0.0 }
 0x297   :  { %v1598_v62 = vpack.c.bf16 %v1560_v58, %v1559_v48 }
 0x298   :  { %v1597_v52 = vpack.c.bf16 %v1558_v41, %v1557_v49  ;;  %v4151_v49 = vld [vmem:[#allocation2 + $0x18] ss:$12 sps:$4 sm:$0xff]   ;;  %v4152_v41 = vld [vmem:[#allocation2 + $0x34] ss:$12 sps:$4 sm:$0xff]  }
 0x29a   :  { %1647 = vmatpush1.bf16.msra.mxu1 %v1597_v52 }
 0x29b   :  { %1648 = vmatprep.subr.bf16.mxu1 %v4440_v0 }
 0x29e   :  { %1649 = vmatpush1.bf16.msra.mxu1 %v1598_v62 }
 0x29f   :  { %1650 = vmatprep.subr.bf16.mxu1 %v4440_v0 }
 0x2a0   :  { %v3709_v11 = vpop.f32.mrb[68].mxu1 }
 0x2a1   :  { %v1439_v45 = vadd.f32 %v3709_v11, %v4699_v35  ;;  %v1430_v56 = vpop.f32.mrb[69].mxu1 }
 0x2a2   :  { %v1431_v57 = vadd.f32 %v4699_v35, %v1430_v56  ;;  %v3710_v60 = vpop.f32.mrb[70].mxu1 }
 0x2a3   :  { %v1442_v39 = vadd.f32 %v3710_v60, %v4699_v35  ;;  %v1433_v61 = vpop.f32.mrb[71].mxu1  ;;  %v1563_v44 = vmax.f32 %v1439_v45, 0.0  ;;  %v4153_v45 = vld [vmem:[#allocation2 + $0x30] ss:$12 sps:$4 sm:$0xff]   ;;  %v4154_v60 = vld [vmem:[#allocation2 + $0x4c] ss:$12 sps:$4 sm:$0xff]  }
 0x2a4   :  { %v1434_v1 = vadd.f32 %v4699_v35, %v1433_v61  ;;  %v1561_v5 = vmax.f32 %v1431_v57, 0.0 }
 0x2a5   :  { %v1564_v2 = vmax.f32 %v1442_v39, 0.0 }
 0x2a6   :  { %v1562_v3 = vmax.f32 %v1434_v1, 0.0 }
 0x2a7   :  { %v1600_v6 = vpack.c.bf16 %v1564_v2, %v1563_v44 }
 0x2a8   :  { %v1599_v55 = vpack.c.bf16 %v1562_v3, %v1561_v5 }
 0x2aa   :  { %1651 = vmatpush1.bf16.msra.mxu1 %v1599_v55 }
 0x2ab   :  { %1652 = vmatprep.subr.bf16.mxu1 %v4440_v0 }
 0x2ae   :  { %1653 = vmatpush1.bf16.msra.mxu1 %v1600_v6 }
 0x2af   :  { %1654 = vmatprep.subr.bf16.mxu1 %v4440_v0 }
 0x2b0   :  { %v3713_v10 = vpop.f32.mrb[72].mxu1 }
 0x2b1   :  { %v1455_v8 = vadd.f32 %v3713_v10, %v4699_v35  ;;  %v1446_v14 = vpop.f32.mrb[73].mxu1  ;;  %v4155_v10 = vld [vmem:[#allocation2 + $0x48] ss:$12 sps:$4 sm:$0xff]  }
 0x2b2   :  { %v1447_v12 = vadd.f32 %v4699_v35, %v1446_v14  ;;  %v3714_v13 = vpop.f32.mrb[74].mxu1 }
 0x2b3   :  { %v1458_v50 = vadd.f32 %v3714_v13, %v4699_v35  ;;  %v1449_v19 = vpop.f32.mrb[75].mxu1  ;;  %v1567_v54 = vmax.f32 %v1455_v8, 0.0  ;;  %v4156_v8 = vld [vmem:[#allocation2 + $0x64] ss:$12 sps:$4 sm:$0xff]  }
 0x2b4   :  { %v1450_v15 = vadd.f32 %v4699_v35, %v1449_v19  ;;  %v1565_v23 = vmax.f32 %v1447_v12, 0.0 }
 0x2b5   :  { %v1568_v16 = vmax.f32 %v1458_v50, 0.0  ;;  %v4157_v50 = vld [vmem:[#allocation2 + $0x60] ss:$12 sps:$4 sm:$0xff]  }
 0x2b6   :  { %v1566_v18 = vmax.f32 %v1450_v15, 0.0 }
 0x2b7   :  { %v1602_v21 = vpack.c.bf16 %v1568_v16, %v1567_v54  ;;  %v4158_v54 = vld [vmem:[#allocation2 + $0x7c] ss:$12 sps:$4 sm:$0xff]  }
 0x2b8   :  { %v1601_v4 = vpack.c.bf16 %v1566_v18, %v1565_v23 }
 0x2ba   :  { %1655 = vmatpush1.bf16.msra.mxu1 %v1601_v4 }
 0x2bb   :  { %1656 = vmatprep.subr.bf16.mxu1 %v4440_v0 }
 0x2be   :  { %1657 = vmatpush1.bf16.msra.mxu1 %v1602_v21 }
 0x2bf   :  { %1658 = vmatprep.subr.bf16.mxu1 %v4440_v0 }
 0x2c0   :  { %v3717_v24 = vpop.f32.mrb[76].mxu1 }
 0x2c1   :  { %v1471_v17 = vadd.f32 %v3717_v24, %v4699_v35  ;;  %v1462_v9 = vpop.f32.mrb[77].mxu1 }
 0x2c2   :  { %v1463_v26 = vadd.f32 %v4699_v35, %v1462_v9  ;;  %v3718_v27 = vpop.f32.mrb[78].mxu1 }
 0x2c3   :  { %v1474_v51 = vadd.f32 %v3718_v27, %v4699_v35  ;;  %v1465_v22 = vpop.f32.mrb[79].mxu1  ;;  %v1571_v53 = vmax.f32 %v1471_v17, 0.0  ;;  %v4159_v27 = vld [vmem:[#allocation2 + $0x78] ss:$12 sps:$4 sm:$0xff]  }
 0x2c4   :  { %v1466_v29 = vadd.f32 %v4699_v35, %v1465_v22  ;;  %v1569_v32 = vmax.f32 %v1463_v26, 0.0 }
 0x2c5   :  { %v1572_v31 = vmax.f32 %v1474_v51, 0.0  ;;  %v4160_v51 = vld [vmem:[#allocation2 + $0x94] ss:$12 sps:$4 sm:$0xff]  }
 0x2c6   :  { %v1570_v30 = vmax.f32 %v1466_v29, 0.0 }
 0x2c7   :  { %v1604_v36 = vpack.c.bf16 %v1572_v31, %v1571_v53  ;;  %v4161_v31 = vld [vmem:[#allocation2 + $0x90] ss:$12 sps:$4 sm:$0xff]  }
 0x2c8   :  { %v1603_v20 = vpack.c.bf16 %v1570_v30, %v1569_v32 }
 0x2ca   :  { %1659 = vmatpush1.bf16.msra.mxu1 %v1603_v20 }
 0x2cb   :  { %1660 = vmatprep.subr.bf16.mxu1 %v4440_v0 }
 0x2ce   :  { %1661 = vmatpush1.bf16.msra.mxu1 %v1604_v36  ;;  %v4162_v36 = vld [vmem:[#allocation2 + $0xac] ss:$12 sps:$4 sm:$0xff]  }
 0x2d0   :  { %v3721_v37 = vpop.f32.mrb[80].mxu1 }
 0x2d1   :  { %v1487_v34 = vadd.f32 %v3721_v37, %v4699_v35  ;;  %v1478_v25 = vpop.f32.mrb[81].mxu1  ;;  %1663 = vmatmul.mubr.bf16.vlgmr.msra.gmra.mrb[96].mxu1 %v4149_v40 }
 0x2d2   :  { %v1479_v42 = vadd.f32 %v4699_v35, %v1478_v25  ;;  %v3722_v59 = vpop.f32.mrb[82].mxu1  ;;  %1670 = vmatprep.mubr.bf16.mxu1 %v4150_v43 }
 0x2d3   :  { %v1490_v28 = vadd.f32 %v3722_v59, %v4699_v35  ;;  %v1481_v63 = vpop.f32.mrb[83].mxu1  ;;  %v1575_v7 = vmax.f32 %v1487_v34, 0.0 }
 0x2d4   :  { %v1482_v46 = vadd.f32 %v4699_v35, %v1481_v63  ;;  %v1573_v38 = vmax.f32 %v1479_v42, 0.0  ;;  %v4163_v63 = vld [vmem:[#allocation2 + $0xa8] ss:$12 sps:$4 sm:$0xff]  }
 0x2d5   :  { %v1576_v33 = vmax.f32 %v1490_v28, 0.0 }
 0x2d6   :  { %v1574_v47 = vmax.f32 %v1482_v46, 0.0  ;;  %v4164_v46 = vld [vmem:[#allocation2 + $0xc4] ss:$12 sps:$4 sm:$0xff]  }
 0x2d7   :  { %v1606_v48 = vpack.c.bf16 %v1576_v33, %v1575_v7  ;;  %v4132_v7 = vld [vmem:[#allocation8] sm:$0xff]   ;;  %v4133_v33 = vld [vmem:[#allocation8 + $0x8] sm:$0xff]  }
 0x2d8   :  { %v1605_v58 = vpack.c.bf16 %v1574_v47, %v1573_v38  ;;  %v4165_v38 = vld [vmem:[#allocation2 + $0xc0] ss:$12 sps:$4 sm:$0xff]   ;;  %v4167_v47 = vld [vmem:[#allocation2 + $0xdc] ss:$12 sps:$4 sm:$0xff]  }
 0x2d9   :  { %1671 = vmatmul.mubr.bf16.gmra.mrb[100].mxu1 %v4151_v49  ;;  %v4135_v49 = vld [vmem:[#allocation8 + $0x18] sm:$0xff]  }
 0x2da   :  { %3735 = vmatprep.subr.bf16.mxu0 %v1605_v58  ;;  %1678 = vmatprep.mubr.bf16.mxu1 %v4152_v41  ;;  %v4169_v41 = vld [vmem:[#allocation2 + $0xd8] ss:$12 sps:$4 sm:$0xff]  }
 0x2db   :  { %3736 = vmatpush3.bf16.msra.mxu0 %v1605_v58  ;;  %v4134_v58 = vld [vmem:[#allocation8 + $0x10] sm:$0xff]  }
 0x2dc   :  { %3737 = vmatprep.subr.bf16.mxu0 %v1606_v48 }
 0x2df   :  { %3738 = vmatpush3.bf16.msra.mxu0 %v1606_v48  ;;  %v4168_v48 = vld [vmem:[#allocation2 + $0x38] ss:$12 sps:$4 sm:$0xff]  }
 0x2e0   :  { %v3725_v62 = vpop.f32.mrb[84].mxu1 }
 0x2e1   :  { %v1503_v52 = vadd.f32 %v3725_v62, %v4699_v35  ;;  %v1494_v11 = vpop.f32.mrb[85].mxu1  ;;  %1679 = vmatmul.mubr.bf16.gmra.mrb[104].mxu1 %v4153_v45  ;;  %v4170_v62 = vld [vmem:[#allocation2 + $0x50] ss:$12 sps:$4 sm:$0xff]   ;;  %v4136_v45 = vld [vmem:[#allocation8 + $0x20] sm:$0xff]  }
 0x2e2   :  { %v1495_v56 = vadd.f32 %v4699_v35, %v1494_v11  ;;  %v3726_v57 = vpop.f32.mrb[86].mxu1  ;;  %1686 = vmatprep.mubr.bf16.mxu1 %v4154_v60  ;;  %v4172_v11 = vld [vmem:[#allocation2 + $0x68] ss:$12 sps:$4 sm:$0xff]   ;;  %v4174_v60 = vld [vmem:[#allocation2 + $0x80] ss:$12 sps:$4 sm:$0xff]  }
 0x2e3   :  { %v1506_v39 = vadd.f32 %v3726_v57, %v4699_v35  ;;  %v1497_v61 = vpop.f32.mrb[87].mxu1  ;;  %v1579_v44 = vmax.f32 %v1503_v52, 0.0  ;;  %v4171_v52 = vld [vmem:[#allocation2 + $0xf4] ss:$12 sps:$4 sm:$0xff]   ;;  %v4173_v57 = vld [vmem:[#allocation2 + $0xf0] ss:$12 sps:$4 sm:$0xff]  }
 0x2e4   :  { %v1498_v1 = vadd.f32 %v4699_v35, %v1497_v61  ;;  %v1577_v5 = vmax.f32 %v1495_v56, 0.0  ;;  %v4137_v56 = vld [vmem:[#allocation8 + $0x28] sm:$0xff]   ;;  %v4176_v61 = vld [vmem:[#allocation2 + $0x98] ss:$12 sps:$4 sm:$0xff]  }
 0x2e5   :  { %v1580_v2 = vmax.f32 %v1506_v39, 0.0  ;;  %v4175_v39 = vld [vmem:[#allocation2 + $0x10c] ss:$12 sps:$4 sm:$0xff]  }
 0x2e6   :  { %v1578_v3 = vmax.f32 %v1498_v1, 0.0  ;;  %v4177_v1 = vld [vmem:[#allocation2 + $0x108] ss:$12 sps:$4 sm:$0xff]  }
 0x2e7   :  { %v1608_v6 = vpack.c.bf16 %v1580_v2, %v1579_v44  ;;  %v4178_v44 = vld [vmem:[#allocation2 + $0x124] ss:$12 sps:$4 sm:$0xff]  }
 0x2e8   :  { %v1607_v55 = vpack.c.bf16 %v1578_v3, %v1577_v5  ;;  %v4179_v2 = vld [vmem:[#allocation2 + $0xb0] ss:$12 sps:$4 sm:$0xff]   ;;  %v4180_v5 = vld [vmem:[#allocation2 + $0xc8] ss:$12 sps:$4 sm:$0xff]   ;;  %v4181_v3 = vld [vmem:[#allocation2 + $0x120] ss:$12 sps:$4 sm:$0xff]  }
 0x2e9   :  { %1687 = vmatmul.mubr.bf16.gmra.mrb[108].mxu1 %v4155_v10  ;;  %v4184_v10 = vld [vmem:[#allocation2 + $0xf8] ss:$12 sps:$4 sm:$0xff]  }
 0x2ea   :  { %3739 = vmatprep.subr.bf16.mxu0 %v1607_v55  ;;  %1694 = vmatprep.mubr.bf16.mxu1 %v4156_v8  ;;  %v4185_v8 = vld [vmem:[#allocation2 + $0x138] ss:$12 sps:$4 sm:$0xff]  }
 0x2eb   :  { %3740 = vmatpush3.bf16.msra.mxu0 %v1607_v55  ;;  %v4183_v55 = vld [vmem:[#allocation2 + $0xe0] ss:$12 sps:$4 sm:$0xff]  }
 0x2ec   :  { %3741 = vmatprep.subr.bf16.mxu0 %v1608_v6 }
 0x2ef   :  { %3742 = vmatpush3.bf16.msra.mxu0 %v1608_v6  ;;  %v4182_v6 = vld [vmem:[#allocation2 + $0x13c] ss:$12 sps:$4 sm:$0xff]  }
 0x2f0   :  { %v3729_v14 = vpop.f32.mrb[88].mxu1 }
 0x2f1   :  { %v1519_v12 = vadd.f32 %v3729_v14, %v4699_v35  ;;  %v1510_v13 = vpop.f32.mrb[89].mxu1  ;;  %1695 = vmatmul.mubr.bf16.gmra.mrb[112].mxu1 %v4157_v50  ;;  %v4186_v14 = vld [vmem:[#allocation2 + $0x154] ss:$12 sps:$4 sm:$0xff]   ;;  %v4189_v50 = vld [vmem:[#allocation2 + $0x150] ss:$12 sps:$4 sm:$0xff]  }
 0x2f2   :  { %v1511_v19 = vadd.f32 %v4699_v35, %v1510_v13  ;;  %v3730_v15 = vpop.f32.mrb[90].mxu1  ;;  %1702 = vmatprep.mubr.bf16.mxu1 %v4158_v54  ;;  %v4188_v13 = vld [vmem:[#allocation2 + $0x128] ss:$12 sps:$4 sm:$0xff]   ;;  %v4192_v54 = vld [vmem:[#allocation2 + $0x158] ss:$12 sps:$4 sm:$0xff]  }
 0x2f3   :  { %v1522_v16 = vadd.f32 %v3730_v15, %v4699_v35  ;;  %v1513_v23 = vpop.f32.mrb[91].mxu1  ;;  %v1583_v21 = vmax.f32 %v1519_v12, 0.0  ;;  %v4187_v12 = vld [vmem:[#allocation2 + $0x110] ss:$12 sps:$4 sm:$0xff]   ;;  %v4191_v15 = vld [vmem:[#allocation2 + $0x140] ss:$12 sps:$4 sm:$0xff]  }
 0x2f4   :  { %v1514_v18 = vadd.f32 %v4699_v35, %v1513_v23  ;;  %v1581_v24 = vmax.f32 %v1511_v19, 0.0  ;;  %v4190_v19 = vld [vmem:[#allocation2 + $0x16c] ss:$12 sps:$4 sm:$0xff]   ;;  %v4194_v23 = vld [vmem:[#allocation2 + $0x184] ss:$12 sps:$4 sm:$0xff]  }
 0x2f5   :  { %v1584_v4 = vmax.f32 %v1522_v16, 0.0  ;;  %v4193_v16 = vld [vmem:[#allocation2 + $0x168] ss:$12 sps:$4 sm:$0xff]  }
 0x2f6   :  { %v1582_v17 = vmax.f32 %v1514_v18, 0.0  ;;  %v4195_v18 = vld [vmem:[#allocation2 + $0x170] ss:$12 sps:$4 sm:$0xff]  }
 0x2f7   :  { %v1610_v9 = vpack.c.bf16 %v1584_v4, %v1583_v21  ;;  %v4196_v21 = vld [vmem:[#allocation2 + $0x188] ss:$12 sps:$4 sm:$0xff]   ;;  %v4197_v4 = vld [vmem:[#allocation2 + $0x180] ss:$12 sps:$4 sm:$0xff]  }
 0x2f8   :  { %v1609_v26 = vpack.c.bf16 %v1582_v17, %v1581_v24  ;;  %v4198_v24 = vld [vmem:[#allocation2 + $0x19c] ss:$12 sps:$4 sm:$0xff]   ;;  %v4199_v17 = vld [vmem:[#allocation2 + $0x1a0] ss:$12 sps:$4 sm:$0xff]  }
 0x2f9   :  { %1703 = vmatmul.mubr.bf16.gmra.mrb[116].mxu1 %v4159_v27  ;;  %v4202_v27 = vld [vmem:[#allocation2 + $0x1b4] ss:$12 sps:$4 sm:$0xff]  }
 0x2fa   :  { %3743 = vmatprep.subr.bf16.mxu0 %v1609_v26  ;;  %1710 = vmatprep.mubr.bf16.mxu1 %v4160_v51  ;;  %v4203_v51 = vld [vmem:[#allocation2 + $0x1d0] ss:$12 sps:$4 sm:$0xff]  }
 0x2fb   :  { %3744 = vmatpush3.bf16.msra.mxu0 %v1609_v26  ;;  %v4201_v26 = vld [vmem:[#allocation2 + $0x198] ss:$12 sps:$4 sm:$0xff]  }
 0x2fc   :  { %3745 = vmatprep.subr.bf16.mxu0 %v1610_v9 }
 0x2ff   :  { %3746 = vmatpush3.bf16.msra.mxu0 %v1610_v9  ;;  %v4200_v9 = vld [vmem:[#allocation2 + $0x1b8] ss:$12 sps:$4 sm:$0xff]  }
 0x300   :  { %v3733_v22 = vpop.f32.mrb[92].mxu1 }
 0x301   :  { %v1535_v29 = vadd.f32 %v3733_v22, %v4699_v35  ;;  %v1526_v53 = vpop.f32.mrb[93].mxu1  ;;  %1711 = vmatmul.mubr.bf16.gmra.mrb[120].mxu1 %v4161_v31  ;;  %v4204_v22 = vld [vmem:[#allocation2 + $0x1e8] ss:$12 sps:$4 sm:$0xff]   ;;  %v4207_v31 = vld [vmem:[#allocation2 + $0x200] ss:$12 sps:$4 sm:$0xff]  }
 0x302   :  { %v1527_v32 = vadd.f32 %v4699_v35, %v1526_v53  ;;  %v3734_v30 = vpop.f32.mrb[94].mxu1  ;;  %1718 = vmatprep.mubr.bf16.mxu1 %v4162_v36  ;;  %v4206_v53 = vld [vmem:[#allocation2 + $0x1cc] ss:$12 sps:$4 sm:$0xff]  }
 0x303   :  { %v1538_v20 = vadd.f32 %v3734_v30, %v4699_v35  ;;  %v1529_v37 = vpop.f32.mrb[95].mxu1  ;;  %v1587_v25 = vmax.f32 %v1535_v29, 0.0  ;;  %v4205_v29 = vld [vmem:[#allocation2 + $0x1b0] ss:$12 sps:$4 sm:$0xff]  }
 0x304   :  { %v1530_v34 = vadd.f32 %v4699_v35, %v1529_v37  ;;  %v1585_v42 = vmax.f32 %v1527_v32, 0.0  ;;  %v4166_v35 = vld [vmem:[#allocation2 + $0x20] ss:$12 sps:$4 sm:$0xff]   ;;  %v4208_v32 = vld [vmem:[#allocation2 + $0x218] ss:$12 sps:$4 sm:$0xff]   ;;  %v4138_v30 = vld [vmem:[#allocation8 + $0x30] sm:$0xff]  }
 0x305   :  { %v1588_v40 = vmax.f32 %v1538_v20, 0.0  ;;  %v4139_v36 = vld [vmem:[#allocation8 + $0x38] sm:$0xff]   ;;  %v4209_v20 = vld [vmem:[#allocation2 + $0x1c8] ss:$12 sps:$4 sm:$0xff]   ;;  %v4210_v37 = vld [vmem:[#allocation2 + $0x1e4] ss:$12 sps:$4 sm:$0xff]  }
 0x306   :  { %v1586_v59 = vmax.f32 %v1530_v34, 0.0  ;;  %v4211_v34 = vld [vmem:[#allocation2 + $0x230] ss:$12 sps:$4 sm:$0xff]  }
 0x307   :  { %v1612_v43 = vpack.c.bf16 %v1588_v40, %v1587_v25  ;;  %v4212_v25 = vld [vmem:[#allocation2 + $0x1e0] ss:$12 sps:$4 sm:$0xff]   ;;  %v4213_v40 = vld [vmem:[#allocation2 + $0x1fc] ss:$12 sps:$4 sm:$0xff]  }
 0x308   :  { %v1611_v28 = vpack.c.bf16 %v1586_v59, %v1585_v42  ;;  %v4214_v42 = vld [vmem:[#allocation2 + $0x1f8] ss:$12 sps:$4 sm:$0xff]   ;;  %v4215_v59 = vld [vmem:[#allocation2 + $0x214] ss:$12 sps:$4 sm:$0xff]  }
 0x309   :  { %1719 = vmatmul.mubr.bf16.gmra.mrb[124].mxu1 %v4163_v63  ;;  %v4218_v63 = vld [vmem:[#allocation2 + $0x228] ss:$12 sps:$4 sm:$0xff]  }
 0x30a   :  { %3747 = vmatprep.subr.bf16.mxu0 %v1611_v28  ;;  %1726 = vmatprep.mubr.bf16.mxu1 %v4164_v46 }
 0x30b   :  { %3748 = vmatpush3.bf16.msra.mxu0 %v1611_v28  ;;  %v4217_v28 = vld [vmem:[#allocation2 + $0x22c] ss:$12 sps:$4 sm:$0xff]  }
 0x30c   :  { %3749 = vmatprep.subr.bf16.mxu0 %v1612_v43 }
 0x30f   :  { %3750 = vmatpush3.bf16.msra.mxu0 %v1612_v43  ;;  %v4216_v43 = vld [vmem:[#allocation2 + $0x210] ss:$12 sps:$4 sm:$0xff]  }
 0x310   :  { %3799 = vmatprep.subr.bf16.mxu0 %v4132_v7 }
 0x311   :  { %1727 = vmatmul.mubr.bf16.gmra.mrb[128].mxu1 %v4165_v38 }
 0x312   :  { %3752 = vmatmul.mubr.bf16.vlgmr.msra.gmra.mrb[96].mxu0 %v4166_v35  ;;  %1734 = vmatprep.mubr.bf16.mxu1 %v4167_v47 }
 0x313   :  { %3755 = vmatprep.mubr.bf16.mxu0 %v4168_v48  ;;  %3800 = vmatpush3.bf16.msra.mxu0 %v4132_v7 }
 0x314   :  { %3801 = vmatprep.subr.bf16.mxu0 %v4133_v33 }
 0x317   :  { %3802 = vmatpush3.bf16.msra.mxu0 %v4133_v33 }
 0x318   :  { %3803 = vmatprep.subr.bf16.mxu0 %v4134_v58 }
 0x319   :  { %1735 = vmatmul.mubr.bf16.gmra.mrb[132].mxu1 %v4169_v41 }
 0x31a   :  { %3756 = vmatmul.mubr.bf16.gmra.mrb[100].mxu0 %v4170_v62  ;;  %1742 = vmatprep.mubr.bf16.mxu1 %v4171_v52  ;;  %v4140_v52 = vld [vmem:[#allocation10] sm:$0xff]  }
 0x31b   :  { %3759 = vmatprep.mubr.bf16.mxu0 %v4172_v11  ;;  %3804 = vmatpush3.bf16.msra.mxu0 %v4134_v58 }
 0x31c   :  { %3805 = vmatprep.subr.bf16.mxu0 %v4135_v49  ;;  %3863 = vmatprep.subr.bf16.mxu1 %v4140_v52 }
 0x31d   :  { %3864 = vmatpush3.bf16.msra.mxu1 %v4140_v52 }
 0x31f   :  { %3806 = vmatpush3.bf16.msra.mxu0 %v4135_v49 }
 0x320   :  { %3807 = vmatprep.subr.bf16.mxu0 %v4136_v45 }
 0x321   :  { %1743 = vmatmul.mubr.bf16.gmra.mrb[136].mxu1 %v4173_v57 }
 0x322   :  { %3760 = vmatmul.mubr.bf16.gmra.mrb[104].mxu0 %v4174_v60  ;;  %1750 = vmatprep.mubr.bf16.mxu1 %v4175_v39 }
 0x323   :  { %3763 = vmatprep.mubr.bf16.mxu0 %v4176_v61  ;;  %3808 = vmatpush3.bf16.msra.mxu0 %v4136_v45 }
 0x324   :  { %3809 = vmatprep.subr.bf16.mxu0 %v4137_v56 }
 0x327   :  { %3810 = vmatpush3.bf16.msra.mxu0 %v4137_v56 }
 0x328   :  { %3811 = vmatprep.subr.bf16.mxu0 %v4138_v30 }
 0x329   :  { %1751 = vmatmul.mubr.bf16.gmra.mrb[140].mxu1 %v4177_v1 }
 0x32a   :  { %1758 = vmatprep.mubr.bf16.mxu1 %v4178_v44  ;;  %3764 = vmatmul.mubr.bf16.gmra.mrb[108].mxu0 %v4179_v2 }
 0x32b   :  { %3767 = vmatprep.mubr.bf16.mxu0 %v4180_v5  ;;  %3812 = vmatpush3.bf16.msra.mxu0 %v4138_v30 }
 0x32c   :  { %3813 = vmatprep.subr.bf16.mxu0 %v4139_v36 }
 0x32f   :  { %3814 = vmatpush3.bf16.msra.mxu0 %v4139_v36 }
 0x330   :  { %2775 = vmatprep.subr.bf16.mxu0 %v4440_v0 }
 0x331   :  { %1759 = vmatmul.mubr.bf16.gmra.mrb[144].mxu1 %v4181_v3 }
 0x332   :  { %1766 = vmatprep.mubr.bf16.mxu1 %v4182_v6  ;;  %3768 = vmatmul.mubr.bf16.gmra.mrb[112].mxu0 %v4183_v55 }
 0x333   :  { %3771 = vmatprep.mubr.bf16.mxu0 %v4184_v10 }
 0x339   :  { %1767 = vmatmul.mubr.bf16.gmra.mrb[148].mxu1 %v4185_v8 }
 0x33a   :  { %1774 = vmatprep.mubr.bf16.mxu1 %v4186_v14  ;;  %3772 = vmatmul.mubr.bf16.gmra.mrb[116].mxu0 %v4187_v12 }
 0x33b   :  { %3775 = vmatprep.mubr.bf16.mxu0 %v4188_v13 }
 0x341   :  { %1775 = vmatmul.mubr.bf16.gmra.mrb[152].mxu1 %v4189_v50 }
 0x342   :  { %1782 = vmatprep.mubr.bf16.mxu1 %v4190_v19  ;;  %3776 = vmatmul.mubr.bf16.gmra.mrb[120].mxu0 %v4191_v15  ;;  %v4141_v15 = vld [vmem:[#allocation10 + $0x8] sm:$0xff]  }
 0x343   :  { %3779 = vmatprep.mubr.bf16.mxu0 %v4192_v54  ;;  %3865 = vmatprep.subr.bf16.mxu1 %v4141_v15  ;;  %v4142_v54 = vld [vmem:[#allocation10 + $0x10] sm:$0xff]  }
 0x344   :  { %3866 = vmatpush3.bf16.msra.mxu1 %v4141_v15 }
 0x345   :  { %3867 = vmatprep.subr.bf16.mxu1 %v4142_v54 }
 0x348   :  { %3868 = vmatpush3.bf16.msra.mxu1 %v4142_v54 }
 0x349   :  { %1783 = vmatmul.mubr.bf16.gmra.mrb[156].mxu1 %v4193_v16 }
 0x34a   :  { %1790 = vmatprep.mubr.bf16.mxu1 %v4194_v23  ;;  %3780 = vmatmul.mubr.bf16.gmra.mrb[124].mxu0 %v4195_v18 }
 0x34b   :  { %3783 = vmatprep.mubr.bf16.mxu0 %v4196_v21  ;;  %v4143_v21 = vld [vmem:[#allocation10 + $0x18] sm:$0xff]  }
 0x34c   :  { %3869 = vmatprep.subr.bf16.mxu1 %v4143_v21 }
 0x34d   :  { %3870 = vmatpush3.bf16.msra.mxu1 %v4143_v21 }
 0x351   :  { %1791 = vmatmul.mubr.bf16.gmra.mrb[160].mxu1 %v4197_v4 }
 0x352   :  { %1798 = vmatprep.mubr.bf16.mxu1 %v4198_v24  ;;  %3784 = vmatmul.mubr.bf16.gmra.mrb[128].mxu0 %v4199_v17 }
 0x353   :  { %3787 = vmatprep.mubr.bf16.mxu0 %v4200_v9 }
 0x359   :  { %1799 = vmatmul.mubr.bf16.gmra.mrb[164].mxu1 %v4201_v26 }
 0x35a   :  { %1806 = vmatprep.mubr.bf16.mxu1 %v4202_v27  ;;  %3788 = vmatmul.mubr.bf16.gmra.mrb[132].mxu0 %v4203_v51 }
 0x35b   :  { %3791 = vmatprep.mubr.bf16.mxu0 %v4204_v22 }
 0x361   :  { %1807 = vmatmul.mubr.bf16.gmra.mrb[168].mxu1 %v4205_v29 }
 0x362   :  { %1814 = vmatprep.mubr.bf16.mxu1 %v4206_v53  ;;  %3792 = vmatmul.mubr.bf16.gmra.mrb[136].mxu0 %v4207_v31  ;;  %v4144_v53 = vld [vmem:[#allocation10 + $0x20] sm:$0xff]  }
 0x363   :  { %3795 = vmatprep.mubr.bf16.mxu0 %v4208_v32  ;;  %3871 = vmatprep.subr.bf16.mxu1 %v4144_v53 }
 0x364   :  { %3872 = vmatpush3.bf16.msra.mxu1 %v4144_v53 }
 0x369   :  { %1815 = vmatmul.mubr.bf16.gmra.mrb[172].mxu1 %v4209_v20 }
 0x36a   :  { %1822 = vmatprep.mubr.bf16.mxu1 %v4210_v37  ;;  %3796 = vmatmul.mubr.bf16.gmra.mrb[140].mxu0 %v4211_v34  ;;  %v4145_v37 = vld [vmem:[#allocation10 + $0x28] sm:$0xff]  }
 0x36b   :  { %3873 = vmatprep.subr.bf16.mxu1 %v4145_v37 }
 0x36c   :  { %3874 = vmatpush3.bf16.msra.mxu1 %v4145_v37 }
 0x371   :  { %1823 = vmatmul.mubr.bf16.gmra.mrb[176].mxu1 %v4212_v25 }
 0x372   :  { %1830 = vmatprep.mubr.bf16.mxu1 %v4213_v40 }
 0x379   :  { %1831 = vmatmul.mubr.bf16.gmra.mrb[180].mxu1 %v4214_v42 }
 0x37a   :  { %1838 = vmatprep.mubr.bf16.mxu1 %v4215_v59 }
 0x381   :  { %1839 = vmatmul.mubr.bf16.gmra.mrb[184].mxu1 %v4216_v43 }
 0x382   :  { %1846 = vmatprep.mubr.bf16.mxu1 %v4217_v28 }
 0x389   :  { %1847 = vmatmul.mubr.bf16.gmra.mrb[188].mxu1 %v4218_v63 }
 0x3a4   :  { %v1664_v46 = vpop.f32.mrb[96].mxu1 }
 0x3a5   :  { %v1666_v7 = vpop.f32.mrb[97].mxu1 }
 0x3a6   :  { %v1667_v33 = vpop.f32.mrb[98].mxu1 }
 0x3a7   :  { %v1669_v38 = vpop.f32.mrb[99].mxu1 }
 0x3ac   :  { %v1672_v35 = vpop.f32.mrb[100].mxu1 }
 0x3ad   :  { %v1674_v47 = vpop.f32.mrb[101].mxu1 }
 0x3ae   :  { %v1675_v48 = vpop.f32.mrb[102].mxu1 }
 0x3af   :  { %v1677_v58 = vpop.f32.mrb[103].mxu1 }
 0x3b4   :  { %v1680_v49 = vpop.f32.mrb[104].mxu1 }
 0x3b5   :  { %v1682_v41 = vpop.f32.mrb[105].mxu1 }
 0x3b6   :  { %v4765_v62 = vpop.f32.mrb[106].mxu1 }
 0x3b7   :  { %v1685_v11 = vpop.f32.mrb[107].mxu1 }
 0x3bc   :  { %v1688_v45 = vpop.f32.mrb[108].mxu1 }
 0x3bd   :  { %v1690_v56 = vpop.f32.mrb[109].mxu1 }
 0x3be   :  { %v1691_v57 = vpop.f32.mrb[110].mxu1 }
 0x3bf   :  { %v1693_v60 = vpop.f32.mrb[111].mxu1 }
 0x3c4   :  { %v4767_v39 = vpop.f32.mrb[112].mxu1 }
 0x3c5   :  { %v1698_v61 = vpop.f32.mrb[113].mxu1 }
 0x3c6   :  { %v4769_v1 = vpop.f32.mrb[114].mxu1 }
 0x3c7   :  { %v1701_v44 = vpop.f32.mrb[115].mxu1 }
 0x3cc   :  { %v4771_v2 = vpop.f32.mrb[116].mxu1 }
 0x3cd   :  { %v1706_v5 = vpop.f32.mrb[117].mxu1 }
 0x3ce   :  { %v4773_v3 = vpop.f32.mrb[118].mxu1 }
 0x3cf   :  { %v1709_v6 = vpop.f32.mrb[119].mxu1 }
 0x3d4   :  { %v4775_v55 = vpop.f32.mrb[120].mxu1 }
 0x3d5   :  { %v1714_v10 = vpop.f32.mrb[121].mxu1 }
 0x3d6   :  { %v4777_v8 = vpop.f32.mrb[122].mxu1 }
 0x3d7   :  { %v1717_v14 = vpop.f32.mrb[123].mxu1 }
 0x3dc   :  { %v4779_v12 = vpop.f32.mrb[124].mxu1 }
 0x3dd   :  { %v1722_v13 = vpop.f32.mrb[125].mxu1 }
 0x3de   :  { %v4781_v50 = vpop.f32.mrb[126].mxu1 }
 0x3df   :  { %v1725_v19 = vpop.f32.mrb[127].mxu1 }
 0x3e4   :  { %v4783_v16 = vpop.f32.mrb[128].mxu1 }
 0x3e5   :  { %v3753_v23 = vpop.f32.mrb[96].mxu0  ;;  %v1730_v18 = vpop.f32.mrb[129].mxu1 }
 0x3e6   :  { %v1889_v4 = vpop.f32.mrb[97].mxu0  ;;  %v1898_v24 = vadd.f32 %v3753_v23, %v1672_v35  ;;  %v4785_v17 = vpop.f32.mrb[130].mxu1 }
 0x3e7   :  { %v1890_v9 = vadd.f32 %v1889_v4, %v1664_v46  ;;  %v3754_v26 = vpop.f32.mrb[98].mxu0  ;;  %v1733_v27 = vpop.f32.mrb[131].mxu1 }
 0x3e8   :  { %v1892_v51 = vpop.f32.mrb[99].mxu0  ;;  %v1901_v22 = vadd.f32 %v3754_v26, %v1675_v48 }
 0x3e9   :  { %v1893_v29 = vadd.f32 %v1892_v51, %v1667_v33 }
 0x3ea   :  { %v2081_v31 = vpack.c.bf16 %v1901_v22, %v1898_v24 }
 0x3eb   :  { %v2080_v32 = vpack.c.bf16 %v1893_v29, %v1890_v9 }
 0x3ec   :  { %v1736_v30 = vpop.f32.mrb[132].mxu1 }
 0x3ed   :  { %3815 = vmatprep.mubr.bf16.mxu0 %v2080_v32  ;;  %v3757_v36 = vpop.f32.mrb[100].mxu0  ;;  %v1738_v20 = vpop.f32.mrb[133].mxu1 }
 0x3ee   :  { %3816 = vmatmul.mubr.bf16.vlgmr.msra.gmra.mrb[144].mxu0 %v2081_v31  ;;  %v1905_v34 = vpop.f32.mrb[101].mxu0  ;;  %v1914_v25 = vadd.f32 %v3757_v36, %v1688_v45  ;;  %v1739_v40 = vpop.f32.mrb[134].mxu1 }
 0x3ef   :  { %v1906_v42 = vadd.f32 %v1905_v34, %v1680_v49  ;;  %v3758_v59 = vpop.f32.mrb[102].mxu0  ;;  %v1741_v43 = vpop.f32.mrb[135].mxu1 }
 0x3f0   :  { %v1908_v28 = vpop.f32.mrb[103].mxu0  ;;  %v1917_v63 = vadd.f32 %v3758_v59, %v1691_v57 }
 0x3f1   :  { %v1909_v46 = vadd.f32 %v1908_v28, %v4765_v62 }
 0x3f2   :  { %v2083_v7 = vpack.c.bf16 %v1917_v63, %v1914_v25 }
 0x3f3   :  { %v2082_v33 = vpack.c.bf16 %v1909_v46, %v1906_v42 }
 0x3f4   :  { %v1744_v38 = vpop.f32.mrb[136].mxu1 }
 0x3f5   :  { %3819 = vmatprep.mubr.bf16.mxu0 %v2082_v33  ;;  %v3761_v35 = vpop.f32.mrb[104].mxu0  ;;  %v1746_v47 = vpop.f32.mrb[137].mxu1 }
 0x3f6   :  { %3820 = vmatmul.mubr.bf16.gmra.mrb[148].mxu0 %v2083_v7  ;;  %v1921_v48 = vpop.f32.mrb[105].mxu0  ;;  %v1930_v58 = vadd.f32 %v3761_v35, %v4771_v2  ;;  %v1747_v49 = vpop.f32.mrb[138].mxu1 }
 0x3f7   :  { %v1922_v41 = vadd.f32 %v1921_v48, %v4767_v39  ;;  %v3762_v52 = vpop.f32.mrb[106].mxu0  ;;  %v1749_v11 = vpop.f32.mrb[139].mxu1 }
 0x3f8   :  { %v1924_v45 = vpop.f32.mrb[107].mxu0  ;;  %v1933_v62 = vadd.f32 %v3762_v52, %v4773_v3 }
 0x3f9   :  { %v1925_v56 = vadd.f32 %v1924_v45, %v4769_v1 }
 0x3fa   :  { %v2085_v57 = vpack.c.bf16 %v1933_v62, %v1930_v58 }
 0x3fb   :  { %v2084_v60 = vpack.c.bf16 %v1925_v56, %v1922_v41 }
 0x3fc   :  { %v1752_v61 = vpop.f32.mrb[140].mxu1 }
 0x3fd   :  { %3823 = vmatprep.mubr.bf16.mxu0 %v2084_v60  ;;  %v3765_v44 = vpop.f32.mrb[108].mxu0  ;;  %v1754_v5 = vpop.f32.mrb[141].mxu1 }
 0x3fe   :  { %3824 = vmatmul.mubr.bf16.gmra.mrb[152].mxu0 %v2085_v57  ;;  %v1937_v6 = vpop.f32.mrb[109].mxu0  ;;  %v1946_v2 = vadd.f32 %v3765_v44, %v4779_v12  ;;  %v1755_v10 = vpop.f32.mrb[142].mxu1 }
 0x3ff   :  { %v1938_v39 = vadd.f32 %v1937_v6, %v4775_v55  ;;  %v3766_v14 = vpop.f32.mrb[110].mxu0  ;;  %v1757_v13 = vpop.f32.mrb[143].mxu1 }
 0x400   :  { %v1940_v19 = vpop.f32.mrb[111].mxu0  ;;  %v1949_v3 = vadd.f32 %v3766_v14, %v4781_v50 }
 0x401   :  { %v1941_v1 = vadd.f32 %v1940_v19, %v4777_v8 }
 0x402   :  { %v2087_v15 = vpack.c.bf16 %v1949_v3, %v1946_v2 }
 0x403   :  { %v2086_v54 = vpack.c.bf16 %v1941_v1, %v1938_v39 }
 0x404   :  { %v1760_v23 = vpop.f32.mrb[144].mxu1 }
 0x405   :  { %3827 = vmatprep.mubr.bf16.mxu0 %v2086_v54  ;;  %v3769_v18 = vpop.f32.mrb[112].mxu0  ;;  %v1762_v21 = vpop.f32.mrb[145].mxu1 }
 0x406   :  { %3828 = vmatmul.mubr.bf16.gmra.mrb[156].mxu0 %v2087_v15  ;;  %v1953_v4 = vpop.f32.mrb[113].mxu0  ;;  %v1962_v24 = vadd.f32 %v3769_v18, %v1736_v30  ;;  %v1763_v12 = vpop.f32.mrb[146].mxu1 }
 0x407   :  { %v1954_v9 = vadd.f32 %v1953_v4, %v4783_v16  ;;  %v3770_v55 = vpop.f32.mrb[114].mxu0  ;;  %v1765_v26 = vpop.f32.mrb[147].mxu1 }
 0x408   :  { %v1956_v27 = vpop.f32.mrb[115].mxu0  ;;  %v1965_v51 = vadd.f32 %v3770_v55, %v1739_v40 }
 0x409   :  { %v1957_v50 = vadd.f32 %v1956_v27, %v4785_v17 }
 0x40a   :  { %v2089_v22 = vpack.c.bf16 %v1965_v51, %v1962_v24 }
 0x40b   :  { %v2088_v8 = vpack.c.bf16 %v1957_v50, %v1954_v9 }
 0x40c   :  { %v1768_v29 = vpop.f32.mrb[148].mxu1 }
 0x40d   :  { %3831 = vmatprep.mubr.bf16.mxu0 %v2088_v8  ;;  %v3773_v53 = vpop.f32.mrb[116].mxu0  ;;  %v1770_v31 = vpop.f32.mrb[149].mxu1 }
 0x40e   :  { %3832 = vmatmul.mubr.bf16.gmra.mrb[160].mxu0 %v2089_v22  ;;  %v1969_v32 = vpop.f32.mrb[117].mxu0  ;;  %v1978_v36 = vadd.f32 %v3773_v53, %v1752_v61  ;;  %v1771_v20 = vpop.f32.mrb[150].mxu1 }
 0x40f   :  { %v1970_v30 = vadd.f32 %v1969_v32, %v1744_v38  ;;  %v3774_v37 = vpop.f32.mrb[118].mxu0  ;;  %v1773_v34 = vpop.f32.mrb[151].mxu1 }
 0x410   :  { %v1972_v16 = vpop.f32.mrb[119].mxu0  ;;  %v1981_v25 = vadd.f32 %v3774_v37, %v1755_v10 }
 0x411   :  { %v1973_v42 = vadd.f32 %v1972_v16, %v1747_v49 }
 0x412   :  { %v2091_v59 = vpack.c.bf16 %v1981_v25, %v1978_v36 }
 0x413   :  { %v2090_v40 = vpack.c.bf16 %v1973_v42, %v1970_v30 }
 0x414   :  { %v1776_v43 = vpop.f32.mrb[152].mxu1 }
 0x415   :  { %3835 = vmatprep.mubr.bf16.mxu0 %v2090_v40  ;;  %v3777_v17 = vpop.f32.mrb[120].mxu0  ;;  %v1778_v28 = vpop.f32.mrb[153].mxu1 }
 0x416   :  { %3836 = vmatmul.mubr.bf16.gmra.mrb[164].mxu0 %v2091_v59  ;;  %v1985_v63 = vpop.f32.mrb[121].mxu0  ;;  %v1994_v46 = vadd.f32 %v3777_v17, %v1768_v29  ;;  %v1779_v7 = vpop.f32.mrb[154].mxu1 }
 0x417   :  { %v1986_v33 = vadd.f32 %v1985_v63, %v1760_v23  ;;  %v3778_v35 = vpop.f32.mrb[122].mxu0  ;;  %v1781_v47 = vpop.f32.mrb[155].mxu1 }
 0x418   :  { %v1988_v48 = vpop.f32.mrb[123].mxu0  ;;  %v1997_v38 = vadd.f32 %v3778_v35, %v1771_v20 }
 0x419   :  { %v1989_v58 = vadd.f32 %v1988_v48, %v1763_v12  ;;  %v4146_v48 = vld [vmem:[#allocation10 + $0x30] sm:$0xff]  }
 0x41a   :  { %v2093_v41 = vpack.c.bf16 %v1997_v38, %v1994_v46  ;;  %3875 = vmatprep.subr.bf16.mxu1 %v4146_v48 }
 0x41b   :  { %v2092_v52 = vpack.c.bf16 %v1989_v58, %v1986_v33  ;;  %3876 = vmatpush3.bf16.msra.mxu1 %v4146_v48 }
 0x41c   :  { %v1784_v11 = vpop.f32.mrb[156].mxu1 }
 0x41d   :  { %v3781_v49 = vpop.f32.mrb[124].mxu0  ;;  %3839 = vmatprep.mubr.bf16.mxu0 %v2092_v52  ;;  %v1786_v45 = vpop.f32.mrb[157].mxu1 }
 0x41e   :  { %v2001_v62 = vpop.f32.mrb[125].mxu0  ;;  %3840 = vmatmul.mubr.bf16.gmra.mrb[168].mxu0 %v2093_v41  ;;  %v2010_v56 = vadd.f32 %v3781_v49, %v1784_v11  ;;  %v1787_v57 = vpop.f32.mrb[158].mxu1  ;;  %v4147_v11 = vld [vmem:[#allocation10 + $0x38] sm:$0xff]  }
 0x41f   :  { %v2002_v60 = vadd.f32 %v2001_v62, %v1776_v43  ;;  %v3782_v61 = vpop.f32.mrb[126].mxu0  ;;  %v1789_v44 = vpop.f32.mrb[159].mxu1  ;;  %3877 = vmatprep.subr.bf16.mxu1 %v4147_v11 }
 0x420   :  { %v2004_v5 = vpop.f32.mrb[127].mxu0  ;;  %v2013_v6 = vadd.f32 %v3782_v61, %v1787_v57  ;;  %3878 = vmatpush3.bf16.msra.mxu1 %v4147_v11 }
 0x421   :  { %v2005_v2 = vadd.f32 %v2004_v5, %v1779_v7 }
 0x422   :  { %v2095_v10 = vpack.c.bf16 %v2013_v6, %v2010_v56 }
 0x423   :  { %v2094_v39 = vpack.c.bf16 %v2005_v2, %v2002_v60 }
 0x424   :  { %v1792_v14 = vpop.f32.mrb[160].mxu1 }
 0x425   :  { %v1794_v13 = vpop.f32.mrb[161].mxu1  ;;  %v3785_v19 = vpop.f32.mrb[128].mxu0  ;;  %3843 = vmatprep.mubr.bf16.mxu0 %v2094_v39 }
 0x426   :  { %v1795_v3 = vpop.f32.mrb[162].mxu1  ;;  %v2017_v1 = vpop.f32.mrb[129].mxu0  ;;  %3844 = vmatmul.mubr.bf16.gmra.mrb[172].mxu0 %v2095_v10 }
 0x427   :  { %v1797_v15 = vpop.f32.mrb[163].mxu1  ;;  %v2018_v54 = vadd.f32 %v2017_v1, %v1792_v14  ;;  %v3786_v23 = vpop.f32.mrb[130].mxu0 }
 0x428   :  { %v2020_v18 = vpop.f32.mrb[131].mxu0 }
 0x429   :  { %v2021_v21 = vadd.f32 %v2020_v18, %v1795_v3 }
 0x42b   :  { %v2096_v4 = vpack.c.bf16 %v2021_v21, %v2018_v54 }
 0x42c   :  { %v1800_v24 = vpop.f32.mrb[164].mxu1 }
 0x42d   :  { %v2026_v12 = vadd.f32 %v3785_v19, %v1800_v24  ;;  %v1802_v9 = vpop.f32.mrb[165].mxu1  ;;  %v3789_v55 = vpop.f32.mrb[132].mxu0  ;;  %3847 = vmatprep.mubr.bf16.mxu0 %v2096_v4  ;;  %v4219_v24 = vld [vmem:[#allocation2 + $0x4] ss:$12 sps:$4 sm:$0xff]  }
 0x42e   :  { %v1803_v26 = vpop.f32.mrb[166].mxu1  ;;  %v2033_v27 = vpop.f32.mrb[133].mxu0 }
 0x42f   :  { %v2029_v51 = vadd.f32 %v3786_v23, %v1803_v26  ;;  %v1805_v50 = vpop.f32.mrb[167].mxu1  ;;  %v3790_v22 = vpop.f32.mrb[134].mxu0 }
 0x430   :  { %v2036_v8 = vpop.f32.mrb[135].mxu0 }
 0x431   :  { %v2097_v29 = vpack.c.bf16 %v2029_v51, %v2026_v12  ;;  %v4801_v12 = vld [vmem:[%s4955_s6] ss:$0 sm:$0xff] }
 0x433   :  { %3848 = vmatmul.mubr.bf16.gmra.mrb[176].mxu0 %v2097_v29 }
 0x434   :  { %v1808_v53 = vpop.f32.mrb[168].mxu1 }
 0x435   :  { %v1810_v31 = vpop.f32.mrb[169].mxu1  ;;  %v2034_v32 = vadd.f32 %v2033_v27, %v1808_v53  ;;  %v3793_v36 = vpop.f32.mrb[136].mxu0 }
 0x436   :  { %v1811_v20 = vpop.f32.mrb[170].mxu1  ;;  %v2049_v30 = vpop.f32.mrb[137].mxu0 }
 0x437   :  { %v1813_v37 = vpop.f32.mrb[171].mxu1  ;;  %v2037_v34 = vadd.f32 %v2036_v8, %v1811_v20  ;;  %v3794_v16 = vpop.f32.mrb[138].mxu0 }
 0x438   :  { %v2052_v25 = vpop.f32.mrb[139].mxu0 }
 0x439   :  { %v2098_v42 = vpack.c.bf16 %v2037_v34, %v2034_v32 }
 0x43b   :  { %3851 = vmatprep.mubr.bf16.mxu0 %v2098_v42 }
 0x43c   :  { %v1816_v59 = vpop.f32.mrb[172].mxu1 }
 0x43d   :  { %v2042_v40 = vadd.f32 %v3789_v55, %v1816_v59  ;;  %v1818_v43 = vpop.f32.mrb[173].mxu1  ;;  %v3797_v17 = vpop.f32.mrb[140].mxu0 }
 0x43e   :  { %v1819_v28 = vpop.f32.mrb[174].mxu1  ;;  %v2065_v63 = vpop.f32.mrb[141].mxu0 }
 0x43f   :  { %v2045_v46 = vadd.f32 %v3790_v22, %v1819_v28  ;;  %v1821_v7 = vpop.f32.mrb[175].mxu1  ;;  %v3798_v33 = vpop.f32.mrb[142].mxu0 }
 0x440   :  { %v2068_v35 = vpop.f32.mrb[143].mxu0 }
 0x441   :  { %v2099_v47 = vpack.c.bf16 %v2045_v46, %v2042_v40 }
 0x443   :  { %3852 = vmatmul.mubr.bf16.gmra.mrb[180].mxu0 %v2099_v47 }
 0x444   :  { %v1824_v38 = vpop.f32.mrb[176].mxu1 }
 0x445   :  { %v1826_v58 = vpop.f32.mrb[177].mxu1  ;;  %v2050_v41 = vadd.f32 %v2049_v30, %v1824_v38 }
 0x446   :  { %v1827_v52 = vpop.f32.mrb[178].mxu1 }
 0x447   :  { %v1829_v49 = vpop.f32.mrb[179].mxu1  ;;  %v2053_v45 = vadd.f32 %v2052_v25, %v1827_v52 }
 0x449   :  { %v2100_v62 = vpack.c.bf16 %v2053_v45, %v2050_v41 }
 0x44b   :  { %3855 = vmatprep.mubr.bf16.mxu0 %v2100_v62 }
 0x44c   :  { %v1832_v56 = vpop.f32.mrb[180].mxu1 }
 0x44d   :  { %v2058_v57 = vadd.f32 %v3793_v36, %v1832_v56  ;;  %v1834_v60 = vpop.f32.mrb[181].mxu1 }
 0x44e   :  { %v1835_v61 = vpop.f32.mrb[182].mxu1 }
 0x44f   :  { %v2061_v44 = vadd.f32 %v3794_v16, %v1835_v61  ;;  %v1837_v5 = vpop.f32.mrb[183].mxu1 }
 0x451   :  { %v2101_v6 = vpack.c.bf16 %v2061_v44, %v2058_v57 }
 0x453   :  { %3856 = vmatmul.mubr.bf16.gmra.mrb[184].mxu0 %v2101_v6 }
 0x454   :  { %v1840_v2 = vpop.f32.mrb[184].mxu1 }
 0x455   :  { %v1842_v10 = vpop.f32.mrb[185].mxu1  ;;  %v2066_v39 = vadd.f32 %v2065_v63, %v1840_v2 }
 0x456   :  { %v1843_v14 = vpop.f32.mrb[186].mxu1 }
 0x457   :  { %v1845_v13 = vpop.f32.mrb[187].mxu1  ;;  %v2069_v19 = vadd.f32 %v2068_v35, %v1843_v14 }
 0x459   :  { %v2102_v3 = vpack.c.bf16 %v2069_v19, %v2066_v39 }
 0x45b   :  { %3859 = vmatprep.mubr.bf16.mxu0 %v2102_v3 }
 0x45c   :  { %v1848_v1 = vpop.f32.mrb[188].mxu1 }
 0x45d   :  { %v2074_v15 = vadd.f32 %v3797_v17, %v1848_v1  ;;  %v1850_v54 = vpop.f32.mrb[189].mxu1 }
 0x45e   :  { %v1851_v23 = vpop.f32.mrb[190].mxu1 }
 0x45f   :  { %v2077_v18 = vadd.f32 %v3798_v33, %v1851_v23  ;;  %v1853_v21 = vpop.f32.mrb[191].mxu1 }
 0x461   :  { %v2103_v4 = vpack.c.bf16 %v2077_v18, %v2074_v15 }
 0x463   :  { %3860 = vmatmul.mubr.bf16.gmra.mrb[188].mxu0 %v2103_v4 }
 0x464   :  { %2807 = vmatprep.mubr.bf16.mxu0 %v4219_v24 }
 0x4c1   :  { %v3817_v9 = vpop.f32.mrb[144].mxu0 }
 0x4c2   :  { %v2201_v55 = vadd.f32 %v3817_v9, %v4801_v12  ;;  %v2192_v26 = vpop.f32.mrb[145].mxu0 }
 0x4c3   :  { %v2193_v27 = vadd.f32 %v4801_v12, %v2192_v26  ;;  %v3818_v51 = vpop.f32.mrb[146].mxu0 }
 0x4c4   :  { %v2204_v50 = vadd.f32 %v3818_v51, %v4801_v12  ;;  %v2195_v22 = vpop.f32.mrb[147].mxu0  ;;  %v2385_v29 = vmax.f32 %v2201_v55, 0.0 }
 0x4c5   :  { %v2196_v8 = vadd.f32 %v4801_v12, %v2195_v22  ;;  %v2383_v31 = vmax.f32 %v2193_v27, 0.0 }
 0x4c6   :  { %v2386_v53 = vmax.f32 %v2204_v50, 0.0 }
 0x4c7   :  { %v2384_v32 = vmax.f32 %v2196_v8, 0.0 }
 0x4c8   :  { %v2432_v36 = vpack.c.bf16 %v2386_v53, %v2385_v29 }
 0x4c9   :  { %v2431_v20 = vpack.c.bf16 %v2384_v32, %v2383_v31  ;;  %v3821_v30 = vpop.f32.mrb[148].mxu0 }
 0x4ca   :  { %v2217_v37 = vadd.f32 %v3821_v30, %v4801_v12  ;;  %v2208_v34 = vpop.f32.mrb[149].mxu0 }
 0x4cb   :  { %3879 = vmatprep.mubr.bf16.mxu1 %v2431_v20  ;;  %v2209_v16 = vadd.f32 %v4801_v12, %v2208_v34  ;;  %v3822_v25 = vpop.f32.mrb[150].mxu0 }
 0x4cc   :  { %3880 = vmatmul.mubr.bf16.vlgmr.msra.gmra.mrb[192].mxu1 %v2432_v36  ;;  %v2220_v42 = vadd.f32 %v3822_v25, %v4801_v12  ;;  %v2211_v59 = vpop.f32.mrb[151].mxu0  ;;  %v2389_v43 = vmax.f32 %v2217_v37, 0.0 }
 0x4cd   :  { %v2212_v40 = vadd.f32 %v4801_v12, %v2211_v59  ;;  %v2387_v28 = vmax.f32 %v2209_v16, 0.0 }
 0x4ce   :  { %v2390_v17 = vmax.f32 %v2220_v42, 0.0 }
 0x4cf   :  { %v2388_v63 = vmax.f32 %v2212_v40, 0.0 }
 0x4d0   :  { %v2434_v46 = vpack.c.bf16 %v2390_v17, %v2389_v43 }
 0x4d1   :  { %v2433_v7 = vpack.c.bf16 %v2388_v63, %v2387_v28  ;;  %v3825_v33 = vpop.f32.mrb[152].mxu0 }
 0x4d2   :  { %v2233_v35 = vadd.f32 %v3825_v33, %v4801_v12  ;;  %v2224_v47 = vpop.f32.mrb[153].mxu0 }
 0x4d3   :  { %3883 = vmatprep.mubr.bf16.mxu1 %v2433_v7  ;;  %v2225_v48 = vadd.f32 %v4801_v12, %v2224_v47  ;;  %v3826_v38 = vpop.f32.mrb[154].mxu0 }
 0x4d4   :  { %3884 = vmatmul.mubr.bf16.gmra.mrb[196].mxu1 %v2434_v46  ;;  %v2236_v58 = vadd.f32 %v3826_v38, %v4801_v12  ;;  %v2227_v41 = vpop.f32.mrb[155].mxu0  ;;  %v2393_v11 = vmax.f32 %v2233_v35, 0.0 }
 0x4d5   :  { %v2228_v52 = vadd.f32 %v4801_v12, %v2227_v41  ;;  %v2391_v45 = vmax.f32 %v2225_v48, 0.0 }
 0x4d6   :  { %v2394_v49 = vmax.f32 %v2236_v58, 0.0 }
 0x4d7   :  { %v2392_v62 = vmax.f32 %v2228_v52, 0.0 }
 0x4d8   :  { %v2436_v56 = vpack.c.bf16 %v2394_v49, %v2393_v11 }
 0x4d9   :  { %v2435_v57 = vpack.c.bf16 %v2392_v62, %v2391_v45  ;;  %v3829_v60 = vpop.f32.mrb[156].mxu0 }
 0x4da   :  { %v2249_v61 = vadd.f32 %v3829_v60, %v4801_v12  ;;  %v2240_v44 = vpop.f32.mrb[157].mxu0 }
 0x4db   :  { %3887 = vmatprep.mubr.bf16.mxu1 %v2435_v57  ;;  %v2241_v5 = vadd.f32 %v4801_v12, %v2240_v44  ;;  %v3830_v6 = vpop.f32.mrb[158].mxu0 }
 0x4dc   :  { %3888 = vmatmul.mubr.bf16.gmra.mrb[200].mxu1 %v2436_v56  ;;  %v2252_v2 = vadd.f32 %v3830_v6, %v4801_v12  ;;  %v2243_v10 = vpop.f32.mrb[159].mxu0  ;;  %v2397_v14 = vmax.f32 %v2249_v61, 0.0 }
 0x4dd   :  { %v2244_v39 = vadd.f32 %v4801_v12, %v2243_v10  ;;  %v2395_v19 = vmax.f32 %v2241_v5, 0.0 }
 0x4de   :  { %v2398_v13 = vmax.f32 %v2252_v2, 0.0 }
 0x4df   :  { %v2396_v3 = vmax.f32 %v2244_v39, 0.0 }
 0x4e0   :  { %v2438_v1 = vpack.c.bf16 %v2398_v13, %v2397_v14 }
 0x4e1   :  { %v2437_v15 = vpack.c.bf16 %v2396_v3, %v2395_v19  ;;  %v3833_v54 = vpop.f32.mrb[160].mxu0 }
 0x4e2   :  { %v2265_v23 = vadd.f32 %v3833_v54, %v4801_v12  ;;  %v2256_v18 = vpop.f32.mrb[161].mxu0 }
 0x4e3   :  { %3891 = vmatprep.mubr.bf16.mxu1 %v2437_v15  ;;  %v2257_v21 = vadd.f32 %v4801_v12, %v2256_v18  ;;  %v3834_v4 = vpop.f32.mrb[162].mxu0 }
 0x4e4   :  { %3892 = vmatmul.mubr.bf16.gmra.mrb[204].mxu1 %v2438_v1  ;;  %v2268_v24 = vadd.f32 %v3834_v4, %v4801_v12  ;;  %v2259_v9 = vpop.f32.mrb[163].mxu0  ;;  %v2401_v26 = vmax.f32 %v2265_v23, 0.0 }
 0x4e5   :  { %v2260_v55 = vadd.f32 %v4801_v12, %v2259_v9  ;;  %v2399_v51 = vmax.f32 %v2257_v21, 0.0 }
 0x4e6   :  { %v2402_v27 = vmax.f32 %v2268_v24, 0.0 }
 0x4e7   :  { %v2400_v50 = vmax.f32 %v2260_v55, 0.0 }
 0x4e8   :  { %v2440_v22 = vpack.c.bf16 %v2402_v27, %v2401_v26 }
 0x4e9   :  { %v2439_v8 = vpack.c.bf16 %v2400_v50, %v2399_v51  ;;  %v3837_v29 = vpop.f32.mrb[164].mxu0 }
 0x4ea   :  { %v2281_v53 = vadd.f32 %v3837_v29, %v4801_v12  ;;  %v2272_v31 = vpop.f32.mrb[165].mxu0 }
 0x4eb   :  { %3895 = vmatprep.mubr.bf16.mxu1 %v2439_v8  ;;  %v2273_v32 = vadd.f32 %v4801_v12, %v2272_v31  ;;  %v3838_v36 = vpop.f32.mrb[166].mxu0 }
 0x4ec   :  { %3896 = vmatmul.mubr.bf16.gmra.mrb[208].mxu1 %v2440_v22  ;;  %v2284_v20 = vadd.f32 %v3838_v36, %v4801_v12  ;;  %v2275_v30 = vpop.f32.mrb[167].mxu0  ;;  %v2405_v34 = vmax.f32 %v2281_v53, 0.0 }
 0x4ed   :  { %v2276_v37 = vadd.f32 %v4801_v12, %v2275_v30  ;;  %v2403_v25 = vmax.f32 %v2273_v32, 0.0 }
 0x4ee   :  { %v2406_v16 = vmax.f32 %v2284_v20, 0.0 }
 0x4ef   :  { %v2404_v42 = vmax.f32 %v2276_v37, 0.0 }
 0x4f0   :  { %v2442_v59 = vpack.c.bf16 %v2406_v16, %v2405_v34 }
 0x4f1   :  { %v2441_v40 = vpack.c.bf16 %v2404_v42, %v2403_v25  ;;  %v3841_v43 = vpop.f32.mrb[168].mxu0 }
 0x4f2   :  { %v2297_v17 = vadd.f32 %v3841_v43, %v4801_v12  ;;  %v2288_v28 = vpop.f32.mrb[169].mxu0 }
 0x4f3   :  { %3899 = vmatprep.mubr.bf16.mxu1 %v2441_v40  ;;  %v2289_v63 = vadd.f32 %v4801_v12, %v2288_v28  ;;  %v3842_v46 = vpop.f32.mrb[170].mxu0 }
 0x4f4   :  { %3900 = vmatmul.mubr.bf16.gmra.mrb[212].mxu1 %v2442_v59  ;;  %v2300_v7 = vadd.f32 %v3842_v46, %v4801_v12  ;;  %v2291_v33 = vpop.f32.mrb[171].mxu0  ;;  %v2409_v47 = vmax.f32 %v2297_v17, 0.0 }
 0x4f5   :  { %v2292_v35 = vadd.f32 %v4801_v12, %v2291_v33  ;;  %v2407_v38 = vmax.f32 %v2289_v63, 0.0 }
 0x4f6   :  { %v2410_v48 = vmax.f32 %v2300_v7, 0.0 }
 0x4f7   :  { %v2408_v58 = vmax.f32 %v2292_v35, 0.0 }
 0x4f8   :  { %v2444_v41 = vpack.c.bf16 %v2410_v48, %v2409_v47 }
 0x4f9   :  { %v2443_v52 = vpack.c.bf16 %v2408_v58, %v2407_v38  ;;  %v3845_v11 = vpop.f32.mrb[172].mxu0 }
 0x4fa   :  { %v2313_v49 = vadd.f32 %v3845_v11, %v4801_v12  ;;  %v2304_v45 = vpop.f32.mrb[173].mxu0 }
 0x4fb   :  { %v2305_v62 = vadd.f32 %v4801_v12, %v2304_v45  ;;  %v3846_v56 = vpop.f32.mrb[174].mxu0  ;;  %3903 = vmatprep.mubr.bf16.mxu1 %v2443_v52 }
 0x4fc   :  { %v2316_v57 = vadd.f32 %v3846_v56, %v4801_v12  ;;  %v2307_v60 = vpop.f32.mrb[175].mxu0  ;;  %3904 = vmatmul.mubr.bf16.gmra.mrb[216].mxu1 %v2444_v41  ;;  %v2413_v44 = vmax.f32 %v2313_v49, 0.0 }
 0x4fd   :  { %v2308_v61 = vadd.f32 %v4801_v12, %v2307_v60  ;;  %v2411_v6 = vmax.f32 %v2305_v62, 0.0 }
 0x4fe   :  { %v2414_v5 = vmax.f32 %v2316_v57, 0.0 }
 0x4ff   :  { %v2412_v2 = vmax.f32 %v2308_v61, 0.0 }
 0x500   :  { %v2446_v10 = vpack.c.bf16 %v2414_v5, %v2413_v44  ;;  %v4220_v44 = vld [vmem:[#allocation2 + $0x8] ss:$12 sps:$4 sm:$0xff]  }
 0x501   :  { %v2445_v39 = vpack.c.bf16 %v2412_v2, %v2411_v6 }
 0x503   :  { %3907 = vmatprep.mubr.bf16.mxu1 %v2445_v39 }
 0x504   :  { %3908 = vmatmul.mubr.bf16.gmra.mrb[220].mxu1 %v2446_v10 }
 0x506   :  { %v3849_v14 = vpop.f32.mrb[176].mxu0 }
 0x507   :  { %v2329_v13 = vadd.f32 %v3849_v14, %v4801_v12  ;;  %v2320_v19 = vpop.f32.mrb[177].mxu0 }
 0x508   :  { %v2321_v3 = vadd.f32 %v4801_v12, %v2320_v19  ;;  %v3850_v1 = vpop.f32.mrb[178].mxu0 }
 0x509   :  { %v2417_v15 = vmax.f32 %v2329_v13, 0.0  ;;  %v2332_v54 = vadd.f32 %v3850_v1, %v4801_v12  ;;  %v2323_v23 = vpop.f32.mrb[179].mxu0 }
 0x50a   :  { %v2415_v18 = vmax.f32 %v2321_v3, 0.0  ;;  %v2324_v21 = vadd.f32 %v4801_v12, %v2323_v23 }
 0x50b   :  { %v2418_v4 = vmax.f32 %v2332_v54, 0.0 }
 0x50c   :  { %v2416_v24 = vmax.f32 %v2324_v21, 0.0 }
 0x50d   :  { %v2448_v9 = vpack.c.bf16 %v2418_v4, %v2417_v15 }
 0x50e   :  { %v2447_v55 = vpack.c.bf16 %v2416_v24, %v2415_v18 }
 0x510   :  { %3911 = vmatprep.mubr.bf16.mxu1 %v2447_v55 }
 0x511   :  { %3912 = vmatmul.mubr.bf16.gmra.mrb[224].mxu1 %v2448_v9 }
 0x516   :  { %v3853_v26 = vpop.f32.mrb[180].mxu0 }
 0x517   :  { %v2345_v27 = vadd.f32 %v3853_v26, %v4801_v12  ;;  %v2336_v51 = vpop.f32.mrb[181].mxu0 }
 0x518   :  { %v2337_v50 = vadd.f32 %v4801_v12, %v2336_v51  ;;  %v3854_v22 = vpop.f32.mrb[182].mxu0 }
 0x519   :  { %v2421_v8 = vmax.f32 %v2345_v27, 0.0  ;;  %v2348_v29 = vadd.f32 %v3854_v22, %v4801_v12  ;;  %v2339_v53 = vpop.f32.mrb[183].mxu0 }
 0x51a   :  { %v2419_v31 = vmax.f32 %v2337_v50, 0.0  ;;  %v2340_v32 = vadd.f32 %v4801_v12, %v2339_v53 }
 0x51b   :  { %v2422_v36 = vmax.f32 %v2348_v29, 0.0 }
 0x51c   :  { %v2420_v20 = vmax.f32 %v2340_v32, 0.0 }
 0x51d   :  { %v2450_v30 = vpack.c.bf16 %v2422_v36, %v2421_v8 }
 0x51e   :  { %v2449_v37 = vpack.c.bf16 %v2420_v20, %v2419_v31 }
 0x520   :  { %3915 = vmatprep.mubr.bf16.mxu1 %v2449_v37 }
 0x521   :  { %3916 = vmatmul.mubr.bf16.gmra.mrb[228].mxu1 %v2450_v30 }
 0x526   :  { %v3857_v34 = vpop.f32.mrb[184].mxu0 }
 0x527   :  { %v2361_v16 = vadd.f32 %v3857_v34, %v4801_v12  ;;  %v2352_v25 = vpop.f32.mrb[185].mxu0 }
 0x528   :  { %v2353_v42 = vadd.f32 %v4801_v12, %v2352_v25  ;;  %v3858_v59 = vpop.f32.mrb[186].mxu0 }
 0x529   :  { %v2425_v40 = vmax.f32 %v2361_v16, 0.0  ;;  %v2364_v43 = vadd.f32 %v3858_v59, %v4801_v12  ;;  %v2355_v17 = vpop.f32.mrb[187].mxu0 }
 0x52a   :  { %v2423_v28 = vmax.f32 %v2353_v42, 0.0  ;;  %v2356_v63 = vadd.f32 %v4801_v12, %v2355_v17 }
 0x52b   :  { %v2426_v46 = vmax.f32 %v2364_v43, 0.0 }
 0x52c   :  { %v2424_v7 = vmax.f32 %v2356_v63, 0.0 }
 0x52d   :  { %v2452_v33 = vpack.c.bf16 %v2426_v46, %v2425_v40 }
 0x52e   :  { %v2451_v35 = vpack.c.bf16 %v2424_v7, %v2423_v28 }
 0x530   :  { %3919 = vmatprep.mubr.bf16.mxu1 %v2451_v35 }
 0x531   :  { %3920 = vmatmul.mubr.bf16.gmra.mrb[232].mxu1 %v2452_v33 }
 0x536   :  { %v3861_v47 = vpop.f32.mrb[188].mxu0 }
 0x537   :  { %v2377_v48 = vadd.f32 %v3861_v47, %v4801_v12  ;;  %v2368_v38 = vpop.f32.mrb[189].mxu0 }
 0x538   :  { %v2369_v58 = vadd.f32 %v4801_v12, %v2368_v38  ;;  %v3862_v41 = vpop.f32.mrb[190].mxu0 }
 0x539   :  { %v2429_v52 = vmax.f32 %v2377_v48, 0.0  ;;  %v2380_v11 = vadd.f32 %v3862_v41, %v4801_v12  ;;  %v2371_v49 = vpop.f32.mrb[191].mxu0  ;;  %v4221_v48 = vld [vmem:[#allocation2] ss:$12 sps:$4 sm:$0xff]  }
 0x53a   :  { %v2427_v45 = vmax.f32 %v2369_v58, 0.0  ;;  %v2372_v62 = vadd.f32 %v4801_v12, %v2371_v49  ;;  %v4222_v58 = vld [vmem:[#allocation2 + $0x1c] ss:$12 sps:$4 sm:$0xff]  }
 0x53b   :  { %v2430_v56 = vmax.f32 %v2380_v11, 0.0 }
 0x53c   :  { %v2428_v57 = vmax.f32 %v2372_v62, 0.0  ;;  %v4224_v62 = vld [vmem:[#allocation2 + $0x34] ss:$12 sps:$4 sm:$0xff]  }
 0x53d   :  { %v2454_v60 = vpack.c.bf16 %v2430_v56, %v2429_v52  ;;  %v4225_v56 = vld [vmem:[#allocation2 + $0x30] ss:$12 sps:$4 sm:$0xff]  }
 0x53e   :  { %v2453_v61 = vpack.c.bf16 %v2428_v57, %v2427_v45  ;;  %v4223_v45 = vld [vmem:[#allocation2 + $0x18] ss:$12 sps:$4 sm:$0xff]  }
 0x540   :  { %3923 = vmatprep.mubr.bf16.mxu1 %v2453_v61 }
 0x541   :  { %3924 = vmatmul.mubr.bf16.gmra.mrb[236].mxu1 %v2454_v60  ;;  %v4226_v60 = vld [vmem:[#allocation2 + $0x4c] ss:$12 sps:$4 sm:$0xff]  }
 0x542   :  { %3943 = vmatprep.mubr.bf16.mxu1 %v4220_v44 }
 0x59f   :  { %v3881_v5 = vpop.f32.mrb[192].mxu1 }
 0x5a0   :  { %v2554_v6 = vpop.f32.mrb[193].mxu1 }
 0x5a1   :  { %v3882_v2 = vpop.f32.mrb[194].mxu1 }
 0x5a2   :  { %v2746_v10 = vpack.c.bf16 %v3882_v2, %v3881_v5  ;;  %v2557_v39 = vpop.f32.mrb[195].mxu1  ;;  %v4227_v2 = vld [vmem:[#allocation2 + $0x48] ss:$12 sps:$4 sm:$0xff]  }
 0x5a3   :  { %v2745_v14 = vpack.c.bf16 %v2557_v39, %v2554_v6 }
 0x5a5   :  { %2776 = vmatpush1.bf16.msra.mxu0 %v2745_v14  ;;  %v4229_v14 = vld [vmem:[#allocation2 + $0x60] ss:$12 sps:$4 sm:$0xff]  }
 0x5a6   :  { %2777 = vmatprep.subr.bf16.mxu0 %v4440_v0 }
 0x5a7   :  { %v3885_v13 = vpop.f32.mrb[196].mxu1 }
 0x5a8   :  { %v2570_v19 = vpop.f32.mrb[197].mxu1 }
 0x5a9   :  { %2778 = vmatpush1.bf16.msra.mxu0 %v2746_v10  ;;  %v3886_v12 = vpop.f32.mrb[198].mxu1  ;;  %v4228_v10 = vld [vmem:[#allocation2 + $0x64] ss:$12 sps:$4 sm:$0xff]  }
 0x5aa   :  { %v2748_v3 = vpack.c.bf16 %v3886_v12, %v3885_v13  ;;  %v2573_v1 = vpop.f32.mrb[199].mxu1  ;;  %2779 = vmatprep.subr.bf16.mxu0 %v4440_v0 }
 0x5ab   :  { %v2747_v15 = vpack.c.bf16 %v2573_v1, %v2570_v19  ;;  %v4230_v19 = vld [vmem:[#allocation2 + $0x7c] ss:$12 sps:$4 sm:$0xff]  }
 0x5ad   :  { %2780 = vmatpush1.bf16.msra.mxu0 %v2747_v15 }
 0x5ae   :  { %2781 = vmatprep.subr.bf16.mxu0 %v4440_v0 }
 0x5af   :  { %v3889_v54 = vpop.f32.mrb[200].mxu1 }
 0x5b0   :  { %v2586_v23 = vpop.f32.mrb[201].mxu1 }
 0x5b1   :  { %2782 = vmatpush1.bf16.msra.mxu0 %v2748_v3  ;;  %v3890_v18 = vpop.f32.mrb[202].mxu1 }
 0x5b2   :  { %v2750_v21 = vpack.c.bf16 %v3890_v18, %v3889_v54  ;;  %v2589_v4 = vpop.f32.mrb[203].mxu1  ;;  %2783 = vmatprep.subr.bf16.mxu0 %v4440_v0  ;;  %v4231_v54 = vld [vmem:[#allocation2 + $0x78] ss:$12 sps:$4 sm:$0xff]  }
 0x5b3   :  { %v2749_v24 = vpack.c.bf16 %v2589_v4, %v2586_v23  ;;  %v4232_v23 = vld [vmem:[#allocation2 + $0x94] ss:$12 sps:$4 sm:$0xff]  }
 0x5b5   :  { %2784 = vmatpush1.bf16.msra.mxu0 %v2749_v24  ;;  %v4234_v24 = vld [vmem:[#allocation2 + $0xac] ss:$12 sps:$4 sm:$0xff]  }
 0x5b6   :  { %2785 = vmatprep.subr.bf16.mxu0 %v4440_v0 }
 0x5b7   :  { %v3893_v9 = vpop.f32.mrb[204].mxu1 }
 0x5b8   :  { %v2602_v55 = vpop.f32.mrb[205].mxu1 }
 0x5b9   :  { %2786 = vmatpush1.bf16.msra.mxu0 %v2750_v21  ;;  %v3894_v26 = vpop.f32.mrb[206].mxu1  ;;  %v4233_v21 = vld [vmem:[#allocation2 + $0x90] ss:$12 sps:$4 sm:$0xff]  }
 0x5ba   :  { %v2752_v27 = vpack.c.bf16 %v3894_v26, %v3893_v9  ;;  %v2605_v51 = vpop.f32.mrb[207].mxu1  ;;  %2787 = vmatprep.subr.bf16.mxu0 %v4440_v0 }
 0x5bb   :  { %v2751_v50 = vpack.c.bf16 %v2605_v51, %v2602_v55  ;;  %v4235_v51 = vld [vmem:[#allocation2 + $0xa8] ss:$12 sps:$4 sm:$0xff]  }
 0x5bd   :  { %2788 = vmatpush1.bf16.msra.mxu0 %v2751_v50  ;;  %v4236_v50 = vld [vmem:[#allocation2 + $0xc4] ss:$12 sps:$4 sm:$0xff]  }
 0x5be   :  { %2789 = vmatprep.subr.bf16.mxu0 %v4440_v0 }
 0x5bf   :  { %v3897_v22 = vpop.f32.mrb[208].mxu1 }
 0x5c0   :  { %v2618_v8 = vpop.f32.mrb[209].mxu1 }
 0x5c1   :  { %2790 = vmatpush1.bf16.msra.mxu0 %v2752_v27  ;;  %v3898_v29 = vpop.f32.mrb[210].mxu1 }
 0x5c2   :  { %v2754_v53 = vpack.c.bf16 %v3898_v29, %v3897_v22  ;;  %v2621_v31 = vpop.f32.mrb[211].mxu1  ;;  %2791 = vmatprep.subr.bf16.mxu0 %v4440_v0  ;;  %v4237_v22 = vld [vmem:[#allocation2 + $0x20] ss:$12 sps:$4 sm:$0xff]  }
 0x5c3   :  { %v2753_v32 = vpack.c.bf16 %v2621_v31, %v2618_v8  ;;  %v4238_v8 = vld [vmem:[#allocation2 + $0x38] ss:$12 sps:$4 sm:$0xff]   ;;  %v4239_v29 = vld [vmem:[#allocation2 + $0xc0] ss:$12 sps:$4 sm:$0xff]   ;;  %v4241_v31 = vld [vmem:[#allocation2 + $0x50] ss:$12 sps:$4 sm:$0xff]  }
 0x5c5   :  { %2792 = vmatpush1.bf16.msra.mxu0 %v2753_v32  ;;  %v4242_v32 = vld [vmem:[#allocation2 + $0x68] ss:$12 sps:$4 sm:$0xff]  }
 0x5c6   :  { %2793 = vmatprep.subr.bf16.mxu0 %v4440_v0 }
 0x5c7   :  { %v3901_v36 = vpop.f32.mrb[212].mxu1 }
 0x5c8   :  { %v2634_v20 = vpop.f32.mrb[213].mxu1 }
 0x5c9   :  { %2794 = vmatpush1.bf16.msra.mxu0 %v2754_v53  ;;  %v3902_v30 = vpop.f32.mrb[214].mxu1  ;;  %v4240_v53 = vld [vmem:[#allocation2 + $0xdc] ss:$12 sps:$4 sm:$0xff]  }
 0x5ca   :  { %v2756_v37 = vpack.c.bf16 %v3902_v30, %v3901_v36  ;;  %v2637_v34 = vpop.f32.mrb[215].mxu1  ;;  %2795 = vmatprep.subr.bf16.mxu0 %v4440_v0  ;;  %v4243_v36 = vld [vmem:[#allocation2 + $0xd8] ss:$12 sps:$4 sm:$0xff]   ;;  %v4245_v30 = vld [vmem:[#allocation2 + $0x80] ss:$12 sps:$4 sm:$0xff]  }
 0x5cb   :  { %v2755_v16 = vpack.c.bf16 %v2637_v34, %v2634_v20  ;;  %v4244_v20 = vld [vmem:[#allocation2 + $0xf4] ss:$12 sps:$4 sm:$0xff]   ;;  %v4247_v34 = vld [vmem:[#allocation2 + $0xf0] ss:$12 sps:$4 sm:$0xff]  }
 0x5cd   :  { %2796 = vmatpush1.bf16.msra.mxu0 %v2755_v16  ;;  %v4248_v16 = vld [vmem:[#allocation2 + $0x10c] ss:$12 sps:$4 sm:$0xff]  }
 0x5ce   :  { %2797 = vmatprep.subr.bf16.mxu0 %v4440_v0 }
 0x5cf   :  { %v3905_v25 = vpop.f32.mrb[216].mxu1 }
 0x5d0   :  { %v2650_v42 = vpop.f32.mrb[217].mxu1 }
 0x5d1   :  { %2798 = vmatpush1.bf16.msra.mxu0 %v2756_v37  ;;  %v3906_v59 = vpop.f32.mrb[218].mxu1  ;;  %v4246_v37 = vld [vmem:[#allocation2 + $0x98] ss:$12 sps:$4 sm:$0xff]  }
 0x5d2   :  { %v2758_v40 = vpack.c.bf16 %v3906_v59, %v3905_v25  ;;  %v2653_v43 = vpop.f32.mrb[219].mxu1  ;;  %2799 = vmatprep.subr.bf16.mxu0 %v4440_v0  ;;  %v4249_v25 = vld [vmem:[#allocation2 + $0xb0] ss:$12 sps:$4 sm:$0xff]   ;;  %v4251_v59 = vld [vmem:[#allocation2 + $0x108] ss:$12 sps:$4 sm:$0xff]  }
 0x5d3   :  { %v2757_v17 = vpack.c.bf16 %v2653_v43, %v2650_v42  ;;  %v4250_v42 = vld [vmem:[#allocation2 + $0xc8] ss:$12 sps:$4 sm:$0xff]   ;;  %v4253_v43 = vld [vmem:[#allocation2 + $0xe0] ss:$12 sps:$4 sm:$0xff]  }
 0x5d5   :  { %2800 = vmatpush1.bf16.msra.mxu0 %v2757_v17  ;;  %v4254_v17 = vld [vmem:[#allocation2 + $0xf8] ss:$12 sps:$4 sm:$0xff]  }
 0x5d6   :  { %2801 = vmatprep.subr.bf16.mxu0 %v4440_v0 }
 0x5d7   :  { %v3909_v28 = vpop.f32.mrb[220].mxu1 }
 0x5d8   :  { %v2666_v63 = vpop.f32.mrb[221].mxu1 }
 0x5d9   :  { %v3910_v46 = vpop.f32.mrb[222].mxu1  ;;  %2802 = vmatpush1.bf16.msra.mxu0 %v2758_v40  ;;  %v4252_v40 = vld [vmem:[#allocation2 + $0x124] ss:$12 sps:$4 sm:$0xff]  }
 0x5da   :  { %v2760_v7 = vpack.c.bf16 %v3910_v46, %v3909_v28  ;;  %v2669_v33 = vpop.f32.mrb[223].mxu1  ;;  %2803 = vmatprep.subr.bf16.mxu0 %v4440_v0  ;;  %v4255_v28 = vld [vmem:[#allocation2 + $0x120] ss:$12 sps:$4 sm:$0xff]   ;;  %v4257_v46 = vld [vmem:[#allocation2 + $0x110] ss:$12 sps:$4 sm:$0xff]  }
 0x5db   :  { %v2759_v35 = vpack.c.bf16 %v2669_v33, %v2666_v63  ;;  %v4256_v63 = vld [vmem:[#allocation2 + $0x13c] ss:$12 sps:$4 sm:$0xff]   ;;  %v4259_v33 = vld [vmem:[#allocation2 + $0x138] ss:$12 sps:$4 sm:$0xff]  }
 0x5dd   :  { %2804 = vmatpush1.bf16.msra.mxu0 %v2759_v35  ;;  %v4260_v35 = vld [vmem:[#allocation2 + $0x154] ss:$12 sps:$4 sm:$0xff]  }
 0x5de   :  { %2805 = vmatprep.subr.bf16.mxu0 %v4440_v0 }
 0x5e1   :  { %2806 = vmatpush1.bf16.msra.mxu0 %v2760_v7  ;;  %v4258_v7 = vld [vmem:[#allocation2 + $0x128] ss:$12 sps:$4 sm:$0xff]  }
 0x5e4   :  { %v3913_v47 = vpop.f32.mrb[224].mxu1  ;;  %2808 = vmatmul.mubr.bf16.vlgmr.msra.gmra.mrb[192].mxu0 %v4221_v48  ;;  %v4262_v48 = vld [vmem:[#allocation2 + $0x158] ss:$12 sps:$4 sm:$0xff]  }
 0x5e5   :  { %v2682_v38 = vpop.f32.mrb[225].mxu1  ;;  %2815 = vmatprep.mubr.bf16.mxu0 %v4222_v58  ;;  %v4264_v58 = vld [vmem:[#allocation2 + $0x16c] ss:$12 sps:$4 sm:$0xff]  }
 0x5e6   :  { %v3914_v41 = vpop.f32.mrb[226].mxu1 }
 0x5e7   :  { %v2762_v52 = vpack.c.bf16 %v3914_v41, %v3913_v47  ;;  %v2685_v11 = vpop.f32.mrb[227].mxu1  ;;  %v4261_v47 = vld [vmem:[#allocation2 + $0x140] ss:$12 sps:$4 sm:$0xff]   ;;  %v4265_v41 = vld [vmem:[#allocation2 + $0x170] ss:$12 sps:$4 sm:$0xff]  }
 0x5e8   :  { %v2761_v49 = vpack.c.bf16 %v2685_v11, %v2682_v38  ;;  %v4263_v38 = vld [vmem:[#allocation2 + $0x150] ss:$12 sps:$4 sm:$0xff]   ;;  %v4267_v11 = vld [vmem:[#allocation2 + $0x168] ss:$12 sps:$4 sm:$0xff]  }
 0x5ea   :  { %3927 = vmatprep.subr.bf16.mxu1 %v2761_v49 }
 0x5eb   :  { %3928 = vmatpush3.bf16.msra.mxu1 %v2761_v49  ;;  %v4268_v49 = vld [vmem:[#allocation2 + $0x184] ss:$12 sps:$4 sm:$0xff]  }
 0x5ec   :  { %3929 = vmatprep.subr.bf16.mxu1 %v2762_v52  ;;  %2816 = vmatmul.mubr.bf16.gmra.mrb[196].mxu0 %v4223_v45  ;;  %v4269_v45 = vld [vmem:[#allocation2 + $0x1a0] ss:$12 sps:$4 sm:$0xff]  }
 0x5ed   :  { %2823 = vmatprep.mubr.bf16.mxu0 %v4224_v62  ;;  %v4270_v62 = vld [vmem:[#allocation2 + $0x1b8] ss:$12 sps:$4 sm:$0xff]  }
 0x5ef   :  { %3930 = vmatpush3.bf16.msra.mxu1 %v2762_v52  ;;  %v4266_v52 = vld [vmem:[#allocation2 + $0x188] ss:$12 sps:$4 sm:$0xff]  }
 0x5f4   :  { %v3917_v0 = vpop.f32.mrb[228].mxu1  ;;  %2824 = vmatmul.mubr.bf16.gmra.mrb[200].mxu0 %v4225_v56  ;;  %v4272_v56 = vld [vmem:[#allocation2 + $0x19c] ss:$12 sps:$4 sm:$0xff]  }
 0x5f5   :  { %v2698_v57 = vpop.f32.mrb[229].mxu1  ;;  %2831 = vmatprep.mubr.bf16.mxu0 %v4226_v60  ;;  %v4274_v60 = vld [vmem:[#allocation2 + $0x1e8] ss:$12 sps:$4 sm:$0xff]  }
 0x5f6   :  { %v3918_v61 = vpop.f32.mrb[230].mxu1 }
 0x5f7   :  { %v2764_v44 = vpack.c.bf16 %v3918_v61, %v3917_v0  ;;  %v2701_v5 = vpop.f32.mrb[231].mxu1  ;;  %v4271_v0 = vld [vmem:[#allocation2 + $0x180] ss:$12 sps:$4 sm:$0xff]   ;;  %v4275_v61 = vld [vmem:[#allocation2 + $0x198] ss:$12 sps:$4 sm:$0xff]  }
 0x5f8   :  { %v2763_v6 = vpack.c.bf16 %v2701_v5, %v2698_v57  ;;  %v4273_v57 = vld [vmem:[#allocation2 + $0x1d0] ss:$12 sps:$4 sm:$0xff]   ;;  %v4277_v5 = vld [vmem:[#allocation2 + $0x200] ss:$12 sps:$4 sm:$0xff]  }
 0x5fa   :  { %3931 = vmatprep.subr.bf16.mxu1 %v2763_v6 }
 0x5fb   :  { %3932 = vmatpush3.bf16.msra.mxu1 %v2763_v6  ;;  %v4278_v6 = vld [vmem:[#allocation2 + $0x218] ss:$12 sps:$4 sm:$0xff]  }
 0x5fc   :  { %3933 = vmatprep.subr.bf16.mxu1 %v2764_v44  ;;  %2832 = vmatmul.mubr.bf16.gmra.mrb[204].mxu0 %v4227_v2  ;;  %v4279_v2 = vld [vmem:[#allocation2 + $0x1b0] ss:$12 sps:$4 sm:$0xff]  }
 0x5fd   :  { %2839 = vmatprep.mubr.bf16.mxu0 %v4228_v10  ;;  %v4280_v10 = vld [vmem:[#allocation2 + $0x1cc] ss:$12 sps:$4 sm:$0xff]  }
 0x5ff   :  { %3934 = vmatpush3.bf16.msra.mxu1 %v2764_v44  ;;  %v4276_v44 = vld [vmem:[#allocation2 + $0x1b4] ss:$12 sps:$4 sm:$0xff]  }
 0x604   :  { %v3921_v39 = vpop.f32.mrb[232].mxu1  ;;  %2840 = vmatmul.mubr.bf16.gmra.mrb[208].mxu0 %v4229_v14  ;;  %v4282_v14 = vld [vmem:[#allocation2 + $0x1c8] ss:$12 sps:$4 sm:$0xff]  }
 0x605   :  { %v2714_v13 = vpop.f32.mrb[233].mxu1  ;;  %2847 = vmatprep.mubr.bf16.mxu0 %v4230_v19  ;;  %v4284_v19 = vld [vmem:[#allocation2 + $0x1e0] ss:$12 sps:$4 sm:$0xff]  }
 0x606   :  { %v3922_v12 = vpop.f32.mrb[234].mxu1 }
 0x607   :  { %v2766_v3 = vpack.c.bf16 %v3922_v12, %v3921_v39  ;;  %v2717_v1 = vpop.f32.mrb[235].mxu1  ;;  %v4281_v39 = vld [vmem:[#allocation2 + $0x230] ss:$12 sps:$4 sm:$0xff]  }
 0x608   :  { %v2765_v15 = vpack.c.bf16 %v2717_v1, %v2714_v13  ;;  %v4283_v13 = vld [vmem:[#allocation2 + $0x1e4] ss:$12 sps:$4 sm:$0xff]   ;;  %v4285_v12 = vld [vmem:[#allocation2 + $0x1fc] ss:$12 sps:$4 sm:$0xff]   ;;  %v4287_v1 = vld [vmem:[#allocation2 + $0x214] ss:$12 sps:$4 sm:$0xff]  }
 0x60a   :  { %3935 = vmatprep.subr.bf16.mxu1 %v2765_v15 }
 0x60b   :  { %3936 = vmatpush3.bf16.msra.mxu1 %v2765_v15  ;;  %v4288_v15 = vld [vmem:[#allocation2 + $0x210] ss:$12 sps:$4 sm:$0xff]  }
 0x60c   :  { %3937 = vmatprep.subr.bf16.mxu1 %v2766_v3  ;;  %2848 = vmatmul.mubr.bf16.gmra.mrb[212].mxu0 %v4231_v54  ;;  %v4289_v54 = vld [vmem:[#allocation2 + $0x22c] ss:$12 sps:$4 sm:$0xff]  }
 0x60d   :  { %2855 = vmatprep.mubr.bf16.mxu0 %v4232_v23  ;;  %v4290_v23 = vld [vmem:[#allocation2 + $0x228] ss:$12 sps:$4 sm:$0xff]  }
 0x60f   :  { %3938 = vmatpush3.bf16.msra.mxu1 %v2766_v3  ;;  %v4286_v3 = vld [vmem:[#allocation2 + $0x1f8] ss:$12 sps:$4 sm:$0xff]  }
 0x614   :  { %v3925_v18 = vpop.f32.mrb[236].mxu1  ;;  %2856 = vmatmul.mubr.bf16.gmra.mrb[216].mxu0 %v4233_v21 }
 0x615   :  { %v2730_v4 = vpop.f32.mrb[237].mxu1  ;;  %2863 = vmatprep.mubr.bf16.mxu0 %v4234_v24 }
 0x616   :  { %v3926_v9 = vpop.f32.mrb[238].mxu1 }
 0x617   :  { %v2768_v55 = vpack.c.bf16 %v3926_v9, %v3925_v18  ;;  %v2733_v26 = vpop.f32.mrb[239].mxu1 }
 0x618   :  { %v2767_v27 = vpack.c.bf16 %v2733_v26, %v2730_v4 }
 0x61a   :  { %3939 = vmatprep.subr.bf16.mxu1 %v2767_v27 }
 0x61b   :  { %3940 = vmatpush3.bf16.msra.mxu1 %v2767_v27 }
 0x61c   :  { %3941 = vmatprep.subr.bf16.mxu1 %v2768_v55  ;;  %2864 = vmatmul.mubr.bf16.gmra.mrb[220].mxu0 %v4235_v51 }
 0x61d   :  { %2871 = vmatprep.mubr.bf16.mxu0 %v4236_v50 }
 0x61f   :  { %3942 = vmatpush3.bf16.msra.mxu1 %v2768_v55 }
 0x622   :  { %3944 = vmatmul.mubr.bf16.vlgmr.msra.gmra.mrb[240].mxu1 %v4237_v22 }
 0x623   :  { %3947 = vmatprep.mubr.bf16.mxu1 %v4238_v8 }
 0x624   :  { %2872 = vmatmul.mubr.bf16.gmra.mrb[224].mxu0 %v4239_v29 }
 0x625   :  { %2879 = vmatprep.mubr.bf16.mxu0 %v4240_v53 }
 0x62a   :  { %3948 = vmatmul.mubr.bf16.gmra.mrb[244].mxu1 %v4241_v31 }
 0x62b   :  { %3951 = vmatprep.mubr.bf16.mxu1 %v4242_v32 }
 0x62c   :  { %2880 = vmatmul.mubr.bf16.gmra.mrb[228].mxu0 %v4243_v36 }
 0x62d   :  { %2887 = vmatprep.mubr.bf16.mxu0 %v4244_v20 }
 0x632   :  { %3952 = vmatmul.mubr.bf16.gmra.mrb[248].mxu1 %v4245_v30 }
 0x633   :  { %3955 = vmatprep.mubr.bf16.mxu1 %v4246_v37 }
 0x634   :  { %2888 = vmatmul.mubr.bf16.gmra.mrb[232].mxu0 %v4247_v34 }
 0x635   :  { %2895 = vmatprep.mubr.bf16.mxu0 %v4248_v16 }
 0x63a   :  { %3956 = vmatmul.mubr.bf16.gmra.mrb[252].mxu1 %v4249_v25 }
 0x63b   :  { %3959 = vmatprep.mubr.bf16.mxu1 %v4250_v42 }
 0x63c   :  { %2896 = vmatmul.mubr.bf16.gmra.mrb[236].mxu0 %v4251_v59 }
 0x63d   :  { %2903 = vmatprep.mubr.bf16.mxu0 %v4252_v40 }
 0x642   :  { %3960 = vmatmul.mubr.bf16.gmra.mrb[0].mxu1 %v4253_v43 }
 0x643   :  { %3963 = vmatprep.mubr.bf16.mxu1 %v4254_v17 }
 0x644   :  { %2904 = vmatmul.mubr.bf16.gmra.mrb[240].mxu0 %v4255_v28 }
 0x645   :  { %2911 = vmatprep.mubr.bf16.mxu0 %v4256_v63 }
 0x64a   :  { %3964 = vmatmul.mubr.bf16.gmra.mrb[4].mxu1 %v4257_v46 }
 0x64b   :  { %3967 = vmatprep.mubr.bf16.mxu1 %v4258_v7  ;;  %v4877_v7 = vld [vmem:[%s4956_s7] ss:$0 sm:$0xff]  ;;  %s4441_s7 = smov [#allocation11]  }
 0x64c   :  { %2912 = vmatmul.mubr.bf16.gmra.mrb[244].mxu0 %v4259_v33  ;;  %s3278_s25 = sshll.u32 %s4441_s7, 4  ;;  %s3279_s25 = int_to_ptr.vmem [resolvable:$true] %s3278_s25 }
 0x64d   :  { %2919 = vmatprep.mubr.bf16.mxu0 %v4260_v35  ;;  %s4401_s26 = scalar_lea.vmem %s3279_s25, 6144  ;;  %p4406_p13 = scmp.lt.s32.totalorder %s3279_s25, %s3279_s25 }
 0x64e   :  { %p4402_p12 = scmp.ne.s32.totalorder %s3279_s25, %s4401_s26  ;;  %p4407_p0 = scmp.lt.s32.totalorder %s4401_s26, %s4401_s26 }
 0x650   :  { %p4408_p1 = por %p4407_p0, %p4406_p13 }
 0x652   :  { %3968 = vmatmul.mubr.bf16.gmra.mrb[8].mxu1 %v4261_v47  ;;  %p4409_p2 = pnand %p4408_p1, %p4402_p12 }
 0x653   :  { %3971 = vmatprep.mubr.bf16.mxu1 %v4262_v48 }
 0x654   :  { %2920 = vmatmul.mubr.bf16.gmra.mrb[248].mxu0 %v4263_v38 }
 0x655   :  { %2927 = vmatprep.mubr.bf16.mxu0 %v4264_v58 }
 0x65a   :  { %3972 = vmatmul.mubr.bf16.gmra.mrb[12].mxu1 %v4265_v41 }
 0x65b   :  { %3975 = vmatprep.mubr.bf16.mxu1 %v4266_v52 }
 0x65c   :  { %2928 = vmatmul.mubr.bf16.gmra.mrb[252].mxu0 %v4267_v11 }
 0x65d   :  { %2935 = vmatprep.mubr.bf16.mxu0 %v4268_v49 }
 0x662   :  { %3976 = vmatmul.mubr.bf16.gmra.mrb[16].mxu1 %v4269_v45 }
 0x663   :  { %3979 = vmatprep.mubr.bf16.mxu1 %v4270_v62 }
 0x664   :  { %2936 = vmatmul.mubr.bf16.gmra.mrb[0].mxu0 %v4271_v0 }
 0x665   :  { %2943 = vmatprep.mubr.bf16.mxu0 %v4272_v56 }
 0x66a   :  { %3980 = vmatmul.mubr.bf16.gmra.mrb[20].mxu1 %v4273_v57 }
 0x66b   :  { %3983 = vmatprep.mubr.bf16.mxu1 %v4274_v60 }
 0x66c   :  { %2944 = vmatmul.mubr.bf16.gmra.mrb[4].mxu0 %v4275_v61 }
 0x66d   :  { %2951 = vmatprep.mubr.bf16.mxu0 %v4276_v44 }
 0x672   :  { %3984 = vmatmul.mubr.bf16.gmra.mrb[24].mxu1 %v4277_v5 }
 0x673   :  { %3987 = vmatprep.mubr.bf16.mxu1 %v4278_v6 }
 0x674   :  { %2952 = vmatmul.mubr.bf16.gmra.mrb[8].mxu0 %v4279_v2 }
 0x675   :  { %2959 = vmatprep.mubr.bf16.mxu0 %v4280_v10 }
 0x67a   :  { %3988 = vmatmul.mubr.bf16.gmra.mrb[28].mxu1 %v4281_v39 }
 0x67c   :  { %2960 = vmatmul.mubr.bf16.gmra.mrb[12].mxu0 %v4282_v14 }
 0x67d   :  { %2967 = vmatprep.mubr.bf16.mxu0 %v4283_v13 }
 0x684   :  { %2968 = vmatmul.mubr.bf16.gmra.mrb[16].mxu0 %v4284_v19 }
 0x685   :  { %2975 = vmatprep.mubr.bf16.mxu0 %v4285_v12 }
 0x68c   :  { %2976 = vmatmul.mubr.bf16.gmra.mrb[20].mxu0 %v4286_v3 }
 0x68d   :  { %2983 = vmatprep.mubr.bf16.mxu0 %v4287_v1 }
 0x694   :  { %2984 = vmatmul.mubr.bf16.gmra.mrb[24].mxu0 %v4288_v15 }
 0x695   :  { %2991 = vmatprep.mubr.bf16.mxu0 %v4289_v54 }
 0x69c   :  { %2992 = vmatmul.mubr.bf16.gmra.mrb[28].mxu0 %v4290_v23 }
 0x6b7   :  { %v2809_v18 = vpop.f32.mrb[192].mxu0 }
 0x6b8   :  { %v2811_v21 = vpop.f32.mrb[193].mxu0  ;;  %v2810_v47 = vadd.f32 %v4877_v7, %v2809_v18 }
 0x6b9   :  { %v2812_v4 = vpop.f32.mrb[194].mxu0 }
 0x6ba   :  { %v2814_v24 = vpop.f32.mrb[195].mxu0  ;;  %v2813_v52 = vadd.f32 %v4877_v7, %v2812_v4 }
 0x6bf   :  { %v2817_v9 = vpop.f32.mrb[196].mxu0 }
 0x6c0   :  { %v2819_v55 = vpop.f32.mrb[197].mxu0  ;;  %v2818_v35 = vadd.f32 %v4877_v7, %v2817_v9 }
 0x6c1   :  { %v2820_v26 = vpop.f32.mrb[198].mxu0 }
 0x6c2   :  { %v2822_v27 = vpop.f32.mrb[199].mxu0  ;;  %v2821_v41 = vadd.f32 %v4877_v7, %v2820_v26 }
 0x6c7   :  { %v2825_v51 = vpop.f32.mrb[200].mxu0 }
 0x6c8   :  { %v2827_v50 = vpop.f32.mrb[201].mxu0  ;;  %v2826_v5 = vadd.f32 %v4877_v7, %v2825_v51 }
 0x6c9   :  { %v2828_v22 = vpop.f32.mrb[202].mxu0 }
 0x6ca   :  { %v2830_v8 = vpop.f32.mrb[203].mxu0  ;;  %v2829_v14 = vadd.f32 %v4877_v7, %v2828_v22 }
 0x6cf   :  { %v2833_v29 = vpop.f32.mrb[204].mxu0 }
 0x6d0   :  { %v2835_v53 = vpop.f32.mrb[205].mxu0  ;;  %v2834_v44 = vadd.f32 %v4877_v7, %v2833_v29 }
 0x6d1   :  { %v2836_v31 = vpop.f32.mrb[206].mxu0 }
 0x6d2   :  { %v2838_v32 = vpop.f32.mrb[207].mxu0  ;;  %v2837_v39 = vadd.f32 %v4877_v7, %v2836_v31 }
 0x6d7   :  { %v2841_v36 = vpop.f32.mrb[208].mxu0 }
 0x6d8   :  { %v2843_v20 = vpop.f32.mrb[209].mxu0  ;;  %v2842_v4 = vadd.f32 %v4877_v7, %v2841_v36 }
 0x6d9   :  { %v2844_v30 = vpop.f32.mrb[210].mxu0 }
 0x6da   :  { %v2846_v37 = vpop.f32.mrb[211].mxu0  ;;  %v2845_v27 = vadd.f32 %v4877_v7, %v2844_v30 }
 0x6df   :  { %v2849_v34 = vpop.f32.mrb[212].mxu0 }
 0x6e0   :  { %v2851_v16 = vpop.f32.mrb[213].mxu0  ;;  %v2850_v21 = vadd.f32 %v4877_v7, %v2849_v34 }
 0x6e1   :  { %v2852_v25 = vpop.f32.mrb[214].mxu0 }
 0x6e2   :  { %v2854_v42 = vpop.f32.mrb[215].mxu0  ;;  %v2853_v26 = vadd.f32 %v4877_v7, %v2852_v25 }
 0x6e7   :  { %v4866_v59 = vpop.f32.mrb[216].mxu0 }
 0x6e8   :  { %v2859_v40 = vpop.f32.mrb[217].mxu0  ;;  %v2858_v37 = vadd.f32 %v4877_v7, %v4866_v59 }
 0x6e9   :  { %v4868_v43 = vpop.f32.mrb[218].mxu0 }
 0x6ea   :  { %v2862_v17 = vpop.f32.mrb[219].mxu0  ;;  %v2861_v42 = vadd.f32 %v4877_v7, %v4868_v43 }
 0x6ef   :  { %v4870_v28 = vpop.f32.mrb[220].mxu0 }
 0x6f0   :  { %v2867_v63 = vpop.f32.mrb[221].mxu0  ;;  %v2866_v36 = vadd.f32 %v4877_v7, %v4870_v28 }
 0x6f1   :  { %v4872_v46 = vpop.f32.mrb[222].mxu0 }
 0x6f2   :  { %v2870_v33 = vpop.f32.mrb[223].mxu0  ;;  %v2869_v25 = vadd.f32 %v4877_v7, %v4872_v46 }
 0x6f5   :  { %v3945_v48 = vpop.f32.mrb[240].mxu1 }
 0x6f6   :  { %v3034_v38 = vpop.f32.mrb[241].mxu1  ;;  %v3043_v58 = vadd.f32 %v3945_v48, %v2818_v35 }
 0x6f7   :  { %v3035_v11 = vadd.f32 %v3034_v38, %v2810_v47  ;;  %v3946_v49 = vpop.f32.mrb[242].mxu1  ;;  %v4883_v45 = vpop.f32.mrb[224].mxu0 }
 0x6f8   :  { %v3037_v62 = vpop.f32.mrb[243].mxu1  ;;  %3227 = vst [vmem:[#allocation11 + $0x10] sm:$0xff] %v3043_v58  ;;  %v3046_v0 = vadd.f32 %v3946_v49, %v2821_v41  ;;  %v2875_v56 = vpop.f32.mrb[225].mxu0  ;;  %v2874_v46 = vadd.f32 %v4877_v7, %v4883_v45 }
 0x6f9   :  { %3225 = vst [vmem:[#allocation11] sm:$0xff] %v3035_v11  ;;  %v3038_v57 = vadd.f32 %v3037_v62, %v2813_v52  ;;  %v4885_v60 = vpop.f32.mrb[226].mxu0 }
 0x6fa   :  { %3228 = vst [vmem:[#allocation11 + $0x18] sm:$0xff] %v3046_v0  ;;  %v2878_v61 = vpop.f32.mrb[227].mxu0  ;;  %v2877_v11 = vadd.f32 %v4877_v7, %v4885_v60 }
 0x6fb   :  { %3226 = vst [vmem:[#allocation11 + $0x8] sm:$0xff] %v3038_v57 }
 0x6fd   :  { %v3949_v6 = vpop.f32.mrb[244].mxu1 }
 0x6fe   :  { %v3050_v2 = vpop.f32.mrb[245].mxu1  ;;  %v3059_v10 = vadd.f32 %v3949_v6, %v2834_v44 }
 0x6ff   :  { %v3051_v13 = vadd.f32 %v3050_v2, %v2826_v5  ;;  %v3950_v19 = vpop.f32.mrb[246].mxu1  ;;  %v2881_v12 = vpop.f32.mrb[228].mxu0 }
 0x700   :  { %v3053_v3 = vpop.f32.mrb[247].mxu1  ;;  %3231 = vst [vmem:[#allocation11 + $0x30] sm:$0xff] %v3059_v10  ;;  %v3062_v1 = vadd.f32 %v3950_v19, %v2837_v39  ;;  %v2883_v15 = vpop.f32.mrb[229].mxu0  ;;  %v2882_v38 = vadd.f32 %v4877_v7, %v2881_v12 }
 0x701   :  { %3229 = vst [vmem:[#allocation11 + $0x20] sm:$0xff] %v3051_v13  ;;  %v3054_v54 = vadd.f32 %v3053_v3, %v2829_v14  ;;  %v2884_v23 = vpop.f32.mrb[230].mxu0 }
 0x702   :  { %3232 = vst [vmem:[#allocation11 + $0x38] sm:$0xff] %v3062_v1  ;;  %v2886_v18 = vpop.f32.mrb[231].mxu0  ;;  %v2885_v52 = vadd.f32 %v4877_v7, %v2884_v23 }
 0x703   :  { %3230 = vst [vmem:[#allocation11 + $0x28] sm:$0xff] %v3054_v54 }
 0x705   :  { %v3953_v24 = vpop.f32.mrb[248].mxu1 }
 0x706   :  { %v3066_v9 = vpop.f32.mrb[249].mxu1  ;;  %v3075_v55 = vadd.f32 %v3953_v24, %v2850_v21 }
 0x707   :  { %v3067_v51 = vadd.f32 %v3066_v9, %v2842_v4  ;;  %v3954_v50 = vpop.f32.mrb[250].mxu1  ;;  %v2889_v22 = vpop.f32.mrb[232].mxu0 }
 0x708   :  { %v3069_v8 = vpop.f32.mrb[251].mxu1  ;;  %3235 = vst [vmem:[#allocation11 + $0x50] sm:$0xff] %v3075_v55  ;;  %v3078_v29 = vadd.f32 %v3954_v50, %v2853_v26  ;;  %v2891_v53 = vpop.f32.mrb[233].mxu0  ;;  %v2890_v2 = vadd.f32 %v4877_v7, %v2889_v22 }
 0x709   :  { %3233 = vst [vmem:[#allocation11 + $0x40] sm:$0xff] %v3067_v51  ;;  %v3070_v31 = vadd.f32 %v3069_v8, %v2845_v27  ;;  %v2892_v32 = vpop.f32.mrb[234].mxu0 }
 0x70a   :  { %3236 = vst [vmem:[#allocation11 + $0x58] sm:$0xff] %v3078_v29  ;;  %v2894_v20 = vpop.f32.mrb[235].mxu0  ;;  %v2893_v13 = vadd.f32 %v4877_v7, %v2892_v32 }
 0x70b   :  { %3234 = vst [vmem:[#allocation11 + $0x48] sm:$0xff] %v3070_v31 }
 0x70d   :  { %v3957_v30 = vpop.f32.mrb[252].mxu1 }
 0x70e   :  { %v3082_v34 = vpop.f32.mrb[253].mxu1  ;;  %v3091_v16 = vadd.f32 %v3957_v30, %v2866_v36 }
 0x70f   :  { %v3083_v40 = vadd.f32 %v3082_v34, %v2858_v37  ;;  %v3958_v17 = vpop.f32.mrb[254].mxu1  ;;  %v2897_v63 = vpop.f32.mrb[236].mxu0 }
 0x710   :  { %v3085_v33 = vpop.f32.mrb[255].mxu1  ;;  %3239 = vst [vmem:[#allocation11 + $0x70] sm:$0xff] %v3091_v16  ;;  %v3094_v35 = vadd.f32 %v3958_v17, %v2869_v25  ;;  %v2899_v47 = vpop.f32.mrb[237].mxu0  ;;  %v2898_v6 = vadd.f32 %v4877_v7, %v2897_v63 }
 0x711   :  { %3237 = vst [vmem:[#allocation11 + $0x60] sm:$0xff] %v3083_v40  ;;  %v3086_v28 = vadd.f32 %v3085_v33, %v2861_v42  ;;  %v2900_v48 = vpop.f32.mrb[238].mxu0 }
 0x712   :  { %3240 = vst [vmem:[#allocation11 + $0x78] sm:$0xff] %v3094_v35  ;;  %v2902_v59 = vpop.f32.mrb[239].mxu0  ;;  %v2901_v14 = vadd.f32 %v4877_v7, %v2900_v48 }
 0x713   :  { %3238 = vst [vmem:[#allocation11 + $0x68] sm:$0xff] %v3086_v28 }
 0x715   :  { %v3961_v58 = vpop.f32.mrb[0].mxu1 }
 0x716   :  { %v3098_v43 = vpop.f32.mrb[1].mxu1  ;;  %v3107_v41 = vadd.f32 %v3961_v58, %v2882_v38 }
 0x717   :  { %v3099_v49 = vadd.f32 %v3098_v43, %v2874_v46  ;;  %v3962_v62 = vpop.f32.mrb[2].mxu1  ;;  %v2905_v0 = vpop.f32.mrb[240].mxu0 }
 0x718   :  { %v3101_v56 = vpop.f32.mrb[3].mxu1  ;;  %3243 = vst [vmem:[#allocation11 + $0x90] sm:$0xff] %v3107_v41  ;;  %v3110_v57 = vadd.f32 %v3962_v62, %v2885_v52  ;;  %v2907_v61 = vpop.f32.mrb[241].mxu0  ;;  %v2906_v24 = vadd.f32 %v4877_v7, %v2905_v0 }
 0x719   :  { %3241 = vst [vmem:[#allocation11 + $0x80] sm:$0xff] %v3099_v49  ;;  %v3102_v44 = vadd.f32 %v3101_v56, %v2877_v11  ;;  %v2908_v5 = vpop.f32.mrb[242].mxu0 }
 0x71a   :  { %3244 = vst [vmem:[#allocation11 + $0x98] sm:$0xff] %v3110_v57  ;;  %v2910_v45 = vpop.f32.mrb[243].mxu0  ;;  %v2909_v51 = vadd.f32 %v4877_v7, %v2908_v5 }
 0x71b   :  { %3242 = vst [vmem:[#allocation11 + $0x88] sm:$0xff] %v3102_v44 }
 0x71d   :  { %v3965_v10 = vpop.f32.mrb[4].mxu1 }
 0x71e   :  { %v3114_v39 = vpop.f32.mrb[5].mxu1  ;;  %v3123_v60 = vadd.f32 %v3965_v10, %v2898_v6 }
 0x71f   :  { %v3115_v19 = vadd.f32 %v3114_v39, %v2890_v2  ;;  %v3966_v12 = vpop.f32.mrb[6].mxu1  ;;  %v2913_v3 = vpop.f32.mrb[244].mxu0 }
 0x720   :  { %v3117_v1 = vpop.f32.mrb[7].mxu1  ;;  %3247 = vst [vmem:[#allocation11 + $0xb0] sm:$0xff] %v3123_v60  ;;  %v3126_v15 = vadd.f32 %v3966_v12, %v2901_v14  ;;  %v2915_v54 = vpop.f32.mrb[245].mxu0  ;;  %v2914_v4 = vadd.f32 %v4877_v7, %v2913_v3 }
 0x721   :  { %3245 = vst [vmem:[#allocation11 + $0xa0] sm:$0xff] %v3115_v19  ;;  %v3118_v23 = vadd.f32 %v3117_v1, %v2893_v13  ;;  %v2916_v18 = vpop.f32.mrb[246].mxu0 }
 0x722   :  { %3248 = vst [vmem:[#allocation11 + $0xb8] sm:$0xff] %v3126_v15  ;;  %v2918_v21 = vpop.f32.mrb[247].mxu0  ;;  %v2917_v27 = vadd.f32 %v4877_v7, %v2916_v18 }
 0x723   :  { %3246 = vst [vmem:[#allocation11 + $0xa8] sm:$0xff] %v3118_v23 }
 0x725   :  { %v3969_v9 = vpop.f32.mrb[8].mxu1 }
 0x726   :  { %v3130_v55 = vpop.f32.mrb[9].mxu1  ;;  %v3139_v26 = vadd.f32 %v3969_v9, %v2914_v4 }
 0x727   :  { %v3131_v50 = vadd.f32 %v3130_v55, %v2906_v24  ;;  %v3970_v22 = vpop.f32.mrb[10].mxu1  ;;  %v2921_v8 = vpop.f32.mrb[248].mxu0 }
 0x728   :  { %v3133_v29 = vpop.f32.mrb[11].mxu1  ;;  %3251 = vst [vmem:[#allocation11 + $0xd0] sm:$0xff] %v3139_v26  ;;  %v3142_v53 = vadd.f32 %v3970_v22, %v2917_v27  ;;  %v2923_v31 = vpop.f32.mrb[249].mxu0  ;;  %v2922_v37 = vadd.f32 %v4877_v7, %v2921_v8 }
 0x729   :  { %3249 = vst [vmem:[#allocation11 + $0xc0] sm:$0xff] %v3131_v50  ;;  %v3134_v32 = vadd.f32 %v3133_v29, %v2909_v51  ;;  %v2924_v20 = vpop.f32.mrb[250].mxu0 }
 0x72a   :  { %3252 = vst [vmem:[#allocation11 + $0xd8] sm:$0xff] %v3142_v53  ;;  %v2926_v36 = vpop.f32.mrb[251].mxu0  ;;  %v2925_v16 = vadd.f32 %v4877_v7, %v2924_v20 }
 0x72b   :  { %3250 = vst [vmem:[#allocation11 + $0xc8] sm:$0xff] %v3134_v32 }
 0x72d   :  { %v3973_v30 = vpop.f32.mrb[12].mxu1 }
 0x72e   :  { %v3146_v34 = vpop.f32.mrb[13].mxu1 }
 0x72f   :  { %v3147_v25 = vadd.f32 %v3146_v34, %v2922_v37  ;;  %v3974_v42 = vpop.f32.mrb[14].mxu1  ;;  %v2929_v40 = vpop.f32.mrb[252].mxu0 }
 0x730   :  { %v3149_v17 = vpop.f32.mrb[15].mxu1  ;;  %v2930_v63 = vadd.f32 %v4877_v7, %v2929_v40  ;;  %v2931_v33 = vpop.f32.mrb[253].mxu0 }
 0x731   :  { %3253 = vst [vmem:[#allocation11 + $0xe0] sm:$0xff] %v3147_v25  ;;  %v3150_v35 = vadd.f32 %v3149_v17, %v2925_v16  ;;  %v2932_v47 = vpop.f32.mrb[254].mxu0 }
 0x732   :  { %v3155_v28 = vadd.f32 %v3973_v30, %v2930_v63  ;;  %v2933_v48 = vadd.f32 %v4877_v7, %v2932_v47  ;;  %v2934_v59 = vpop.f32.mrb[255].mxu0 }
 0x733   :  { %3254 = vst [vmem:[#allocation11 + $0xe8] sm:$0xff] %v3150_v35 }
 0x734   :  { %3255 = vst [vmem:[#allocation11 + $0xf0] sm:$0xff] %v3155_v28  ;;  %v3158_v38 = vadd.f32 %v3974_v42, %v2933_v48 }
 0x735   :  { %v3977_v46 = vpop.f32.mrb[16].mxu1 }
 0x736   :  { %3256 = vst [vmem:[#allocation11 + $0xf8] sm:$0xff] %v3158_v38  ;;  %v3162_v58 = vpop.f32.mrb[17].mxu1 }
 0x737   :  { %v2937_v43 = vpop.f32.mrb[0].mxu0  ;;  %v3978_v41 = vpop.f32.mrb[18].mxu1 }
 0x738   :  { %v2938_v52 = vadd.f32 %v4877_v7, %v2937_v43  ;;  %v2939_v11 = vpop.f32.mrb[1].mxu0  ;;  %v3165_v49 = vpop.f32.mrb[19].mxu1 }
 0x739   :  { %v2940_v62 = vpop.f32.mrb[2].mxu0 }
 0x73a   :  { %v2941_v0 = vadd.f32 %v4877_v7, %v2940_v62  ;;  %v2942_v56 = vpop.f32.mrb[3].mxu0  ;;  %v3163_v57 = vadd.f32 %v3162_v58, %v2938_v52 }
 0x73c   :  { %3257 = vst [vmem:[#allocation11 + $0x100] sm:$0xff] %v3163_v57  ;;  %v3166_v61 = vadd.f32 %v3165_v49, %v2941_v0 }
 0x73d   :  { %v3981_v44 = vpop.f32.mrb[20].mxu1 }
 0x73e   :  { %3258 = vst [vmem:[#allocation11 + $0x108] sm:$0xff] %v3166_v61  ;;  %v3178_v5 = vpop.f32.mrb[21].mxu1 }
 0x73f   :  { %v2945_v45 = vpop.f32.mrb[4].mxu0  ;;  %v3982_v6 = vpop.f32.mrb[22].mxu1 }
 0x740   :  { %v2946_v2 = vadd.f32 %v4877_v7, %v2945_v45  ;;  %v2947_v10 = vpop.f32.mrb[5].mxu0  ;;  %v3181_v39 = vpop.f32.mrb[23].mxu1 }
 0x741   :  { %v2948_v60 = vpop.f32.mrb[6].mxu0 }
 0x742   :  { %v3171_v14 = vadd.f32 %v3977_v46, %v2946_v2  ;;  %v2949_v13 = vadd.f32 %v4877_v7, %v2948_v60  ;;  %v2950_v19 = vpop.f32.mrb[7].mxu0 }
 0x744   :  { %3259 = vst [vmem:[#allocation11 + $0x110] sm:$0xff] %v3171_v14  ;;  %v3174_v12 = vadd.f32 %v3978_v41, %v2949_v13 }
 0x745   :  { %v3985_v3 = vpop.f32.mrb[24].mxu1 }
 0x746   :  { %3260 = vst [vmem:[#allocation11 + $0x118] sm:$0xff] %v3174_v12  ;;  %v3194_v1 = vpop.f32.mrb[25].mxu1 }
 0x747   :  { %v2953_v15 = vpop.f32.mrb[8].mxu0  ;;  %v3986_v54 = vpop.f32.mrb[26].mxu1 }
 0x748   :  { %v2954_v23 = vadd.f32 %v4877_v7, %v2953_v15  ;;  %v2955_v18 = vpop.f32.mrb[9].mxu0  ;;  %v3197_v21 = vpop.f32.mrb[27].mxu1 }
 0x749   :  { %v2956_v4 = vpop.f32.mrb[10].mxu0 }
 0x74a   :  { %v2957_v24 = vadd.f32 %v4877_v7, %v2956_v4  ;;  %v2958_v9 = vpop.f32.mrb[11].mxu0  ;;  %v3179_v55 = vadd.f32 %v3178_v5, %v2954_v23 }
 0x74c   :  { %3261 = vst [vmem:[#allocation11 + $0x120] sm:$0xff] %v3179_v55  ;;  %v3182_v26 = vadd.f32 %v3181_v39, %v2957_v24 }
 0x74d   :  { %v3989_v27 = vpop.f32.mrb[28].mxu1 }
 0x74e   :  { %3262 = vst [vmem:[#allocation11 + $0x128] sm:$0xff] %v3182_v26  ;;  %v3210_v51 = vpop.f32.mrb[29].mxu1 }
 0x74f   :  { %v2961_v50 = vpop.f32.mrb[12].mxu0  ;;  %v3990_v22 = vpop.f32.mrb[30].mxu1 }
 0x750   :  { %v2962_v8 = vadd.f32 %v4877_v7, %v2961_v50  ;;  %v2963_v29 = vpop.f32.mrb[13].mxu0  ;;  %v3213_v53 = vpop.f32.mrb[31].mxu1 }
 0x751   :  { %v2964_v31 = vpop.f32.mrb[14].mxu0 }
 0x752   :  { %v3187_v32 = vadd.f32 %v3981_v44, %v2962_v8  ;;  %v2965_v20 = vadd.f32 %v4877_v7, %v2964_v31  ;;  %v2966_v36 = vpop.f32.mrb[15].mxu0 }
 0x754   :  { %3263 = vst [vmem:[#allocation11 + $0x130] sm:$0xff] %v3187_v32  ;;  %v3190_v37 = vadd.f32 %v3982_v6, %v2965_v20 }
 0x756   :  { %3264 = vst [vmem:[#allocation11 + $0x138] sm:$0xff] %v3190_v37 }
 0x757   :  { %v2969_v30 = vpop.f32.mrb[16].mxu0 }
 0x758   :  { %v2970_v34 = vadd.f32 %v4877_v7, %v2969_v30  ;;  %v2971_v16 = vpop.f32.mrb[17].mxu0 }
 0x759   :  { %v2972_v25 = vpop.f32.mrb[18].mxu0 }
 0x75a   :  { %v2973_v42 = vadd.f32 %v4877_v7, %v2972_v25  ;;  %v2974_v40 = vpop.f32.mrb[19].mxu0  ;;  %v3195_v17 = vadd.f32 %v3194_v1, %v2970_v34 }
 0x75c   :  { %3265 = vst [vmem:[#allocation11 + $0x140] sm:$0xff] %v3195_v17  ;;  %v3198_v63 = vadd.f32 %v3197_v21, %v2973_v42 }
 0x75e   :  { %3266 = vst [vmem:[#allocation11 + $0x148] sm:$0xff] %v3198_v63 }
 0x75f   :  { %v2977_v33 = vpop.f32.mrb[20].mxu0 }
 0x760   :  { %v2978_v35 = vadd.f32 %v4877_v7, %v2977_v33  ;;  %v2979_v47 = vpop.f32.mrb[21].mxu0 }
 0x761   :  { %v2980_v28 = vpop.f32.mrb[22].mxu0 }
 0x762   :  { %v3203_v48 = vadd.f32 %v3985_v3, %v2978_v35  ;;  %v2981_v59 = vadd.f32 %v4877_v7, %v2980_v28  ;;  %v2982_v38 = vpop.f32.mrb[23].mxu0 }
 0x764   :  { %3267 = vst [vmem:[#allocation11 + $0x150] sm:$0xff] %v3203_v48  ;;  %v3206_v46 = vadd.f32 %v3986_v54, %v2981_v59 }
 0x766   :  { %3268 = vst [vmem:[#allocation11 + $0x158] sm:$0xff] %v3206_v46 }
 0x767   :  { %v2985_v58 = vpop.f32.mrb[24].mxu0 }
 0x768   :  { %v2986_v43 = vadd.f32 %v4877_v7, %v2985_v58  ;;  %v2987_v41 = vpop.f32.mrb[25].mxu0 }
 0x769   :  { %v2988_v52 = vpop.f32.mrb[26].mxu0 }
 0x76a   :  { %v2989_v11 = vadd.f32 %v4877_v7, %v2988_v52  ;;  %v2990_v49 = vpop.f32.mrb[27].mxu0  ;;  %v3211_v62 = vadd.f32 %v3210_v51, %v2986_v43 }
 0x76c   :  { %3269 = vst [vmem:[#allocation11 + $0x160] sm:$0xff] %v3211_v62  ;;  %v3214_v0 = vadd.f32 %v3213_v53, %v2989_v11 }
 0x76e   :  { %3270 = vst [vmem:[#allocation11 + $0x168] sm:$0xff] %v3214_v0 }
 0x76f   :  { %v2993_v56 = vpop.f32.mrb[28].mxu0 }
 0x770   :  { %v2994_v57 = vadd.f32 %v4877_v7, %v2993_v56  ;;  %v2995_v61 = vpop.f32.mrb[29].mxu0 }
 0x771   :  { %v2996_v44 = vpop.f32.mrb[30].mxu0 }
 0x772   :  { %v3219_v5 = vadd.f32 %v3989_v27, %v2994_v57  ;;  %v2997_v45 = vadd.f32 %v4877_v7, %v2996_v44  ;;  %v2998_v6 = vpop.f32.mrb[31].mxu0 }
 0x774   :  { %3271 = vst [vmem:[#allocation11 + $0x170] sm:$0xff] %v3219_v5  ;;  %v3222_v2 = vadd.f32 %v3990_v22, %v2997_v45 }
 0x776   :  { %3272 = vst [vmem:[#allocation11 + $0x178] sm:$0xff] %v3222_v2 }
 0x777   :  { %4412 = shalt.err (!%p4409_p2)
}
 0x778   :  { %s4413_s30 = scalar_lea.hbm %s4957_s8, 6144 }
 0x779   :  { %p4414_p3 = scmp.ne.s32.totalorder %s4957_s8, %s4413_s30  ;;  %p4417_p4 = scmp.lt.u32.totalorder %s4413_s30, %s4957_s8 }
 0x77b   :  { %p4419_p5 = pnand %p4417_p4, %p4414_p3 }
 0x77d   :  { %4422 = shalt.err (!%p4419_p5)
}
 0x77e   :  { %s4442_s11 = smov 128   ;;  %s4443_s0 = smov 8  }
 0x77f   :  { %3284 = dma.vmem_to_hbm [thread:$0]  %s3279_s25, 6144, %s4957_s8, [#allocation4], %s4442_s11, %s4442_s11, %s4443_s0  }
 0x780   :  { %4429 = dma.done.wait [#allocation4], 6144  }
 0x781   :  { %4430 = vsyncadd [#allocation4], 4294961152 }
 0x782   :  { %3288 = vsyncpa [#allocation3], 1 }
 0x783   :  { %3289 = vsyncpa [#allocation6], 1 }
 0x784   :  { %3290 = vsyncpa [#allocation9], 1 }
 0x785   :  { %3291 = vsyncpa [#allocation4], 1 }

</bundles_post_ra>
